<compile_context>
chip_gen: v7x
topology: tpu7x:2x2x1
jax: 0.10.0
libtpu: 0.0.40
codegen_flags: <defaults>
</compile_context>

<pallas_src>
import functools
import math

import jax
import jax.numpy as jnp
from jax.experimental import pallas as pl
from jax.experimental.pallas import tpu as pltpu

# parameter order consumed by the kernel (already inference-folded)
KPARAM_ORDER = ["w1", "b1", "wp1", "bp1", "dwc", "wp2", "bp2", "w2", "b2"]

_PH = 3   # halo rows on each side (7 // 2)
_PW = 8   # left halo columns, padded to a sublane multiple so the interior
          # store starts at an aligned offset
_PW_EXTRA = 16  # total extra columns (left 8 + right 8 >= 3 needed)


def _gelu_tanh(x):
    # tanh-form GELU: exp/tanh run on the EUP slot, off the VALU critical path.
    c = 0.7978845608028654  # sqrt(2/pi)
    return 0.5 * x * (1.0 + jnp.tanh(c * (x + 0.044715 * x * x * x)))


def mixffn_kernel(H, W, C2,
                  x_ref,
                  w1_ref, b1_ref,
                  wp1_ref, bp1_ref,
                  dwc_ref,
                  wp2_ref, bp2_ref,
                  w2_ref, b2_ref,
                  o_ref,
                  pad_ref):
    Wp = W + _PW_EXTRA
    bf16 = jnp.bfloat16

    x = x_ref[0]                                                      # (N, C1)

    # fc1 : Linear(c1 -> c2)  (bf16 operands on the MXU, f32 accumulation)
    h = jnp.dot(x.astype(bf16), w1_ref[...],
                preferred_element_type=jnp.float32) + b1_ref[...]

    # pwconv1 : 1x1 conv + BN (BN folded into the weights host-side)
    h = jnp.dot(h.astype(bf16), wp1_ref[...],
                preferred_element_type=jnp.float32) + bp1_ref[...]

    # ---- stage the (H, W, C2) image in a zero-halo VMEM scratch ------------
    # Only the halo strips are zeroed (aligned stores); the interior is fully
    # overwritten every grid step, so no full-scratch memset and no reliance
    # on scratch persistence (safe with a "parallel" batch axis).
    pad_ref[0:_PH, :, :] = jnp.zeros((_PH, Wp, C2), jnp.float32)
    pad_ref[_PH + H:_PH + H + _PH, :, :] = jnp.zeros((_PH, Wp, C2), jnp.float32)
    pad_ref[_PH:_PH + H, 0:_PW, :] = jnp.zeros((H, _PW, C2), jnp.float32)
    pad_ref[_PH:_PH + H, _PW + W:Wp, :] = jnp.zeros((H, Wp - _PW - W, C2),
                                                    jnp.float32)
    # interior store starts at sublane offset 8 -> unmasked vst
    pad_ref[_PH:_PH + H, _PW:_PW + W, :] = h.reshape(H, W, C2)

    # ---- single folded 7x7 depthwise conv ----------------------------------
    # dw3, dw5, dw7, the identity residual (center tap) and their biases were
    # folded host-side; the bias was further pushed into pwconv2's bias.
    # Taps are kept in f32 for v5e portability (no bf16 VPU there).
    wk = dwc_ref[...]                                                 # (49, C2)
    acc = jnp.zeros((H, W, C2), jnp.float32)
    for oy in range(7):
        for ox in range(7):
            sl = pad_ref[oy:oy + H, _PW - 3 + ox:_PW - 3 + ox + W, :]
            acc = acc + sl * wk[oy * 7 + ox:oy * 7 + ox + 1, :]

    z = acc.reshape(H * W, C2)

    # pwconv2 (+ folded BN + folded dw bias), tanh-GELU, fc2
    z = jnp.dot(z.astype(bf16), wp2_ref[...],
                preferred_element_type=jnp.float32) + bp2_ref[...]
    z = _gelu_tanh(z)
    out = jnp.dot(z.astype(bf16), w2_ref[...],
                  preferred_element_type=jnp.float32) + b2_ref[...]
    o_ref[0] = out.astype(o_ref.dtype)


def mixffn(x, kparams, H, W):
    """x: (B, N=H*W, C1) f32; kparams: output of fold_inference_params."""
    B, N, C1 = x.shape
    assert N == H * W
    C2 = kparams["wp1"].shape[1]
    ordered = [kparams[k] for k in KPARAM_ORDER]

    def full_spec(arr):
        nd = arr.ndim
        return pl.BlockSpec(arr.shape, lambda b, _nd=nd: (0,) * _nd)

    kern = functools.partial(mixffn_kernel, H, W, C2)
    return pl.pallas_call(
        kern,
        out_shape=jax.ShapeDtypeStruct((B, N, C1), x.dtype),
        grid_spec=pltpu.PrefetchScalarGridSpec(
            num_scalar_prefetch=0,
            grid=(B,),
            in_specs=[pl.BlockSpec((1, N, C1), lambda b: (b, 0, 0))]
                     + [full_spec(a) for a in ordered],
            out_specs=pl.BlockSpec((1, N, C1), lambda b: (b, 0, 0)),
            scratch_shapes=[
                pltpu.VMEM((H + 2 * _PH, W + _PW_EXTRA, C2), jnp.float32)],
        ),
        compiler_params=pltpu.CompilerParams(
            dimension_semantics=("parallel",),       # batch elements independent
            vmem_limit_bytes=32 * 1024 * 1024,
        ),
    )(x, *ordered)


def make_params(key, c1, c2):
    """Module-style parameters (f32, eval-mode BN as per-channel scale/shift)."""
    ks = list(jax.random.split(key, 24))
    eps = 1e-5

    def nrm(k, shape, std):
        return (std * jax.random.normal(k, shape)).astype(jnp.float32)

    def bn_fold(kg, kb, km, kv):
        gamma = 1.0 + 0.1 * jax.random.normal(kg, (1, c2))
        beta = 0.05 * jax.random.normal(kb, (1, c2))
        mean = 0.1 * jax.random.normal(km, (1, c2))
        var = 1.0 + 0.1 * jax.random.uniform(kv, (1, c2))
        scale = gamma * jax.lax.rsqrt(var + eps)
        shift = beta - mean * scale
        return scale.astype(jnp.float32), shift.astype(jnp.float32)

    p = {}
    # fc1: kaiming_normal_(fan_in=c1, relu) -> std sqrt(2/c1); stored transposed (c1, c2)
    p["w1"] = nrm(ks[0], (c1, c2), math.sqrt(2.0 / c1))
    p["b1"] = nrm(ks[1], (1, c2), 1.0 / math.sqrt(c1))
    # pwconv1: Conv2d(c2, c2, 1) weight stored as (Cin, Cout)
    p["wp1"] = nrm(ks[2], (c2, c2), 1.0 / math.sqrt(c2))
    p["bp1"] = nrm(ks[3], (1, c2), 1.0 / math.sqrt(c2))
    p["s1"], p["t1"] = bn_fold(ks[4], ks[5], ks[6], ks[7])
    # depthwise convs: weight stored as (k*k, C) with element [dy*k+dx, c]
    for i, ksz in enumerate((3, 5, 7)):
        p[f"dw{ksz}"] = nrm(ks[8 + 2 * i], (ksz * ksz, c2), 1.0 / ksz)
        p[f"db{ksz}"] = nrm(ks[9 + 2 * i], (1, c2), 1.0 / ksz)
    p["wp2"] = nrm(ks[14], (c2, c2), 1.0 / math.sqrt(c2))
    p["bp2"] = nrm(ks[15], (1, c2), 1.0 / math.sqrt(c2))
    p["s2"], p["t2"] = bn_fold(ks[16], ks[17], ks[18], ks[19])
    # fc2: kaiming_normal_(fan_in=c2, relu); stored transposed (c2, c1)
    p["w2"] = nrm(ks[20], (c2, c1), math.sqrt(2.0 / c2))
    p["b2"] = nrm(ks[21], (1, c1), 1.0 / math.sqrt(c2))
    return p


def fold_inference_params(p):
    """Host-side inference folding (mathematically identical to the module):

      * BN scale/shift -> pwconv weights & biases
      * dw3 + dw5 + dw7 + identity residual -> one 7x7 depthwise kernel
        (zero-pad the small kernels, add 1.0 to the center tap)
      * db3 + db5 + db7 pushed through pwconv2 into its bias
      * matmul weights cast to bf16 for the MXU (f32 accumulation in-kernel)
    """
    c2 = p["w1"].shape[1]
    f32, bf16 = jnp.float32, jnp.bfloat16

    # BN folded into the 1x1 convs
    wp1f = (p["wp1"] * p["s1"]).astype(f32)
    bp1f = (p["bp1"] * p["s1"] + p["t1"]).astype(f32)
    wp2f = (p["wp2"] * p["s2"]).astype(f32)
    bp2f = (p["bp2"] * p["s2"] + p["t2"]).astype(f32)

    # combined 7x7 depthwise kernel (+1 on the center tap == identity residual)
    dwc = p["dw7"].reshape(7, 7, c2)
    dwc = dwc.at[1:6, 1:6, :].add(p["dw5"].reshape(5, 5, c2))
    dwc = dwc.at[2:5, 2:5, :].add(p["dw3"].reshape(3, 3, c2))
    dwc = dwc.at[3, 3, :].add(1.0)
    dwc = dwc.reshape(49, c2).astype(f32)

    # per-channel dw bias commutes through the 1x1 pwconv2
    dbc = p["db3"] + p["db5"] + p["db7"]                 # (1, c2)
    bp2_total = bp2f + jnp.matmul(dbc, wp2f)

    return {
        "w1": p["w1"].astype(bf16), "b1": p["b1"].astype(f32),
        "wp1": wp1f.astype(bf16),   "bp1": bp1f,
        "dwc": dwc,
        "wp2": wp2f.astype(bf16),   "bp2": bp2_total.astype(f32),
        "w2": p["w2"].astype(bf16), "b2": p["b2"].astype(f32),
    }


def mixffn_reference(x, p, H, W):
    # Pure-JAX, full-f32 reference (same math as the PyTorch forward, eval BN,
    # exact erf-GELU, no folding) — the kernel is compared against this.
    hp = jax.lax.Precision.HIGHEST
    B, N, C1 = x.shape
    C2 = p["w1"].shape[1]
    h = jnp.matmul(x, p["w1"], precision=hp) + p["b1"]
    h = jnp.matmul(h, p["wp1"], precision=hp) + p["bp1"]
    h = h * p["s1"] + p["t1"]
    img = h.reshape(B, H, W, C2)

    def dw(wflat, b, k):
        rhs = wflat.reshape(k, k, 1, C2)
        out = jax.lax.conv_general_dilated(
            img, rhs, window_strides=(1, 1), padding="SAME",
            dimension_numbers=("NHWC", "HWIO", "NHWC"),
            feature_group_count=C2, precision=hp)
        return out + b.reshape(1, 1, 1, C2)

    y = img + dw(p["dw3"], p["db3"], 3) + dw(p["dw5"], p["db5"], 5) \
            + dw(p["dw7"], p["db7"], 7)
    z = y.reshape(B, N, C2)
    z = jnp.matmul(z, p["wp2"], precision=hp) + p["bp2"]
    z = z * p["s2"] + p["t2"]
    z = jax.nn.gelu(z, approximate=False)
    return jnp.matmul(z, p["w2"], precision=hp) + p["b2"]


if __name__ == "__main__":
    B, H, W, C1, C2 = 2, 8, 8, 16, 32
    N = H * W

    key = jax.random.PRNGKey(0)
    kx, kp = jax.random.split(key)
    x = jax.random.normal(kx, (B, N, C1), dtype=jnp.float32)
    params = make_params(kp, C1, C2)
    kparams = fold_inference_params(params)

    out = mixffn(x, kparams, H, W)
    out = jax.block_until_ready(out)
    assert out.shape == (B, N, C1)

    ref = mixffn_reference(x, params, H, W)
    # bf16 MXU operands + tanh-GELU: check error relative to the output scale
    # (comfortably within a 2% budget; erf-poly/f32 version was ~2e-3).
    max_err = float(jnp.max(jnp.abs(out - ref)))
    scale = max(float(jnp.max(jnp.abs(ref))), 1.0)
    if max_err > 2e-2 * scale:
        raise AssertionError(
            f"Pallas kernel mismatch vs reference: max abs err {max_err} "
            f"(scale {scale})")

    print("KERNEL_OK")
</pallas_src>

<mosaic_0001>
module attributes {stable_mosaic.version = 11 : i64} {
  func.func @mixffn_kernel(%arg0: i32, %arg1: memref<1x64x16xf32, #tpu.memory_space<vmem>>, %arg2: memref<16x32xbf16, #tpu.memory_space<vmem>>, %arg3: memref<1x32xf32, #tpu.memory_space<vmem>>, %arg4: memref<32x32xbf16, #tpu.memory_space<vmem>>, %arg5: memref<1x32xf32, #tpu.memory_space<vmem>>, %arg6: memref<49x32xf32, #tpu.memory_space<vmem>>, %arg7: memref<32x32xbf16, #tpu.memory_space<vmem>>, %arg8: memref<1x32xf32, #tpu.memory_space<vmem>>, %arg9: memref<32x16xbf16, #tpu.memory_space<vmem>>, %arg10: memref<1x16xf32, #tpu.memory_space<vmem>>, %arg11: memref<1x64x16xf32, #tpu.memory_space<vmem>>, %arg12: memref<14x24x32xf32, #tpu.memory_space<vmem>>) attributes {dimension_semantics = [#tpu.dimension_semantics<parallel>], iteration_bounds = array<i64: 2>, scalar_prefetch = 0 : i64, scratch_operands = 1 : i64, tpu.core_type = #tpu.core_type<tc>, window_params = [{transform_indices = @transform_0, window_bounds = array<i64: 1, 64, 16>}, {pipeline_mode = #tpu.pipeline_mode<synchronous>, transform_indices = @transform_1, window_bounds = array<i64: 16, 32>}, {pipeline_mode = #tpu.pipeline_mode<synchronous>, transform_indices = @transform_2, window_bounds = array<i64: 1, 32>}, {pipeline_mode = #tpu.pipeline_mode<synchronous>, transform_indices = @transform_3, window_bounds = array<i64: 32, 32>}, {pipeline_mode = #tpu.pipeline_mode<synchronous>, transform_indices = @transform_4, window_bounds = array<i64: 1, 32>}, {pipeline_mode = #tpu.pipeline_mode<synchronous>, transform_indices = @transform_5, window_bounds = array<i64: 49, 32>}, {pipeline_mode = #tpu.pipeline_mode<synchronous>, transform_indices = @transform_6, window_bounds = array<i64: 32, 32>}, {pipeline_mode = #tpu.pipeline_mode<synchronous>, transform_indices = @transform_7, window_bounds = array<i64: 1, 32>}, {pipeline_mode = #tpu.pipeline_mode<synchronous>, transform_indices = @transform_8, window_bounds = array<i64: 32, 16>}, {pipeline_mode = #tpu.pipeline_mode<synchronous>, transform_indices = @transform_9, window_bounds = array<i64: 1, 16>}, {transform_indices = @transform_10, window_bounds = array<i64: 1, 64, 16>}]} {
    %c0 = arith.constant 0 : index
    %c0_0 = arith.constant 0 : index
    %c0_1 = arith.constant 0 : index
    %0 = vector.load %arg1[%c0, %c0_0, %c0_1] : memref<1x64x16xf32, #tpu.memory_space<vmem>>, vector<1x64x16xf32>
    %1 = vector.shape_cast %0 : vector<1x64x16xf32> to vector<64x16xf32>
    %2 = arith.truncf %1 : vector<64x16xf32> to vector<64x16xbf16>
    %c0_2 = arith.constant 0 : index
    %c0_3 = arith.constant 0 : index
    %3 = vector.load %arg2[%c0_2, %c0_3] : memref<16x32xbf16, #tpu.memory_space<vmem>>, vector<16x32xbf16>
    %cst = arith.constant dense<0.000000e+00> : vector<64x32xf32>
    %4 = tpu.matmul %2, %3, %cst {dimension_numbers = #tpu.dot_dimension_numbers<[1], [0], [0], [1], [0, 0, 1, 1], [], []>} : vector<64x16xbf16>, vector<16x32xbf16>, vector<64x32xf32> -> vector<64x32xf32>
    %c0_4 = arith.constant 0 : index
    %c0_5 = arith.constant 0 : index
    %5 = vector.load %arg3[%c0_4, %c0_5] : memref<1x32xf32, #tpu.memory_space<vmem>>, vector<1x32xf32>
    %6 = vector.broadcast %5 : vector<1x32xf32> to vector<64x32xf32>
    %7 = arith.addf %4, %6 : vector<64x32xf32>
    %8 = arith.truncf %7 : vector<64x32xf32> to vector<64x32xbf16>
    %c0_6 = arith.constant 0 : index
    %c0_7 = arith.constant 0 : index
    %9 = vector.load %arg4[%c0_6, %c0_7] : memref<32x32xbf16, #tpu.memory_space<vmem>>, vector<32x32xbf16>
    %cst_8 = arith.constant dense<0.000000e+00> : vector<64x32xf32>
    %10 = tpu.matmul %8, %9, %cst_8 {dimension_numbers = #tpu.dot_dimension_numbers<[1], [0], [0], [1], [0, 0, 1, 1], [], []>} : vector<64x32xbf16>, vector<32x32xbf16>, vector<64x32xf32> -> vector<64x32xf32>
    %c0_9 = arith.constant 0 : index
    %c0_10 = arith.constant 0 : index
    %11 = vector.load %arg5[%c0_9, %c0_10] : memref<1x32xf32, #tpu.memory_space<vmem>>, vector<1x32xf32>
    %12 = vector.broadcast %11 : vector<1x32xf32> to vector<64x32xf32>
    %13 = arith.addf %10, %12 : vector<64x32xf32>
    %cst_11 = arith.constant 0.000000e+00 : f32
    %14 = vector.broadcast %cst_11 : f32 to vector<3x24x32xf32>
    %c0_12 = arith.constant 0 : index
    %c0_13 = arith.constant 0 : index
    %c0_14 = arith.constant 0 : index
    %15 = vector.load %arg12[%c0_12, %c0_13, %c0_14] : memref<14x24x32xf32, #tpu.memory_space<vmem>>, vector<3x24x32xf32>
    tpu.vector_store %arg12[%c0_12, %c0_13, %c0_14], %14 {strides = array<i32>} : memref<14x24x32xf32, #tpu.memory_space<vmem>>, vector<3x24x32xf32>,
    %cst_15 = arith.constant 0.000000e+00 : f32
    %16 = vector.broadcast %cst_15 : f32 to vector<3x24x32xf32>
    %c11 = arith.constant 11 : index
    %c0_16 = arith.constant 0 : index
    %c0_17 = arith.constant 0 : index
    %17 = vector.load %arg12[%c11, %c0_16, %c0_17] : memref<14x24x32xf32, #tpu.memory_space<vmem>>, vector<3x24x32xf32>
    tpu.vector_store %arg12[%c11, %c0_16, %c0_17], %16 {strides = array<i32>} : memref<14x24x32xf32, #tpu.memory_space<vmem>>, vector<3x24x32xf32>,
    %cst_18 = arith.constant 0.000000e+00 : f32
    %18 = vector.broadcast %cst_18 : f32 to vector<8x8x32xf32>
    %c3 = arith.constant 3 : index
    %c0_19 = arith.constant 0 : index
    %c0_20 = arith.constant 0 : index
    %19 = vector.load %arg12[%c3, %c0_19, %c0_20] : memref<14x24x32xf32, #tpu.memory_space<vmem>>, vector<8x8x32xf32>
    tpu.vector_store %arg12[%c3, %c0_19, %c0_20], %18 {strides = array<i32>} : memref<14x24x32xf32, #tpu.memory_space<vmem>>, vector<8x8x32xf32>,
    %cst_21 = arith.constant 0.000000e+00 : f32
    %20 = vector.broadcast %cst_21 : f32 to vector<8x8x32xf32>
    %c3_22 = arith.constant 3 : index
    %c16 = arith.constant 16 : index
    %c0_23 = arith.constant 0 : index
    %21 = vector.load %arg12[%c3_22, %c16, %c0_23] : memref<14x24x32xf32, #tpu.memory_space<vmem>>, vector<8x8x32xf32>
    tpu.vector_store %arg12[%c3_22, %c16, %c0_23], %20 {strides = array<i32>} : memref<14x24x32xf32, #tpu.memory_space<vmem>>, vector<8x8x32xf32>,
    %22 = vector.shape_cast %13 : vector<64x32xf32> to vector<8x8x32xf32>
    %c3_24 = arith.constant 3 : index
    %c8 = arith.constant 8 : index
    %c0_25 = arith.constant 0 : index
    %23 = vector.load %arg12[%c3_24, %c8, %c0_25] : memref<14x24x32xf32, #tpu.memory_space<vmem>>, vector<8x8x32xf32>
    tpu.vector_store %arg12[%c3_24, %c8, %c0_25], %22 {strides = array<i32>} : memref<14x24x32xf32, #tpu.memory_space<vmem>>, vector<8x8x32xf32>,
    %c0_26 = arith.constant 0 : index
    %c0_27 = arith.constant 0 : index
    %24 = vector.load %arg6[%c0_26, %c0_27] : memref<49x32xf32, #tpu.memory_space<vmem>>, vector<49x32xf32>
    %cst_28 = arith.constant 0.000000e+00 : f32
    %25 = vector.broadcast %cst_28 : f32 to vector<8x8x32xf32>
    %c0_29 = arith.constant 0 : index
    %c5 = arith.constant 5 : index
    %c0_30 = arith.constant 0 : index
    %26 = vector.load %arg12[%c0_29, %c5, %c0_30] : memref<14x24x32xf32, #tpu.memory_space<vmem>>, vector<8x8x32xf32>
    %27 = vector.extract_strided_slice %24 {offsets = [0, 0], sizes = [1, 32], strides = [1, 1]} : vector<49x32xf32> to vector<1x32xf32>
    %28 = vector.shape_cast %27 : vector<1x32xf32> to vector<1x1x32xf32>
    %29 = vector.broadcast %28 : vector<1x1x32xf32> to vector<8x8x32xf32>
    %30 = arith.mulf %26, %29 : vector<8x8x32xf32>
    %31 = arith.addf %25, %30 : vector<8x8x32xf32>
    %c0_31 = arith.constant 0 : index
    %c6 = arith.constant 6 : index
    %c0_32 = arith.constant 0 : index
    %32 = vector.load %arg12[%c0_31, %c6, %c0_32] : memref<14x24x32xf32, #tpu.memory_space<vmem>>, vector<8x8x32xf32>
    %33 = vector.extract_strided_slice %24 {offsets = [1, 0], sizes = [1, 32], strides = [1, 1]} : vector<49x32xf32> to vector<1x32xf32>
    %34 = vector.shape_cast %33 : vector<1x32xf32> to vector<1x1x32xf32>
    %35 = vector.broadcast %34 : vector<1x1x32xf32> to vector<8x8x32xf32>
    %36 = arith.mulf %32, %35 : vector<8x8x32xf32>
    %37 = arith.addf %31, %36 : vector<8x8x32xf32>
    %c0_33 = arith.constant 0 : index
    %c7 = arith.constant 7 : index
    %c0_34 = arith.constant 0 : index
    %38 = vector.load %arg12[%c0_33, %c7, %c0_34] : memref<14x24x32xf32, #tpu.memory_space<vmem>>, vector<8x8x32xf32>
    %39 = vector.extract_strided_slice %24 {offsets = [2, 0], sizes = [1, 32], strides = [1, 1]} : vector<49x32xf32> to vector<1x32xf32>
    %40 = vector.shape_cast %39 : vector<1x32xf32> to vector<1x1x32xf32>
    %41 = vector.broadcast %40 : vector<1x1x32xf32> to vector<8x8x32xf32>
    %42 = arith.mulf %38, %41 : vector<8x8x32xf32>
    %43 = arith.addf %37, %42 : vector<8x8x32xf32>
    %c0_35 = arith.constant 0 : index
    %c8_36 = arith.constant 8 : index
    %c0_37 = arith.constant 0 : index
    %44 = vector.load %arg12[%c0_35, %c8_36, %c0_37] : memref<14x24x32xf32, #tpu.memory_space<vmem>>, vector<8x8x32xf32>
    %45 = vector.extract_strided_slice %24 {offsets = [3, 0], sizes = [1, 32], strides = [1, 1]} : vector<49x32xf32> to vector<1x32xf32>
    %46 = vector.shape_cast %45 : vector<1x32xf32> to vector<1x1x32xf32>
    %47 = vector.broadcast %46 : vector<1x1x32xf32> to vector<8x8x32xf32>
    %48 = arith.mulf %44, %47 : vector<8x8x32xf32>
    %49 = arith.addf %43, %48 : vector<8x8x32xf32>
    %c0_38 = arith.constant 0 : index
    %c9 = arith.constant 9 : index
    %c0_39 = arith.constant 0 : index
    %50 = vector.load %arg12[%c0_38, %c9, %c0_39] : memref<14x24x32xf32, #tpu.memory_space<vmem>>, vector<8x8x32xf32>
    %51 = vector.extract_strided_slice %24 {offsets = [4, 0], sizes = [1, 32], strides = [1, 1]} : vector<49x32xf32> to vector<1x32xf32>
    %52 = vector.shape_cast %51 : vector<1x32xf32> to vector<1x1x32xf32>
    %53 = vector.broadcast %52 : vector<1x1x32xf32> to vector<8x8x32xf32>
    %54 = arith.mulf %50, %53 : vector<8x8x32xf32>
    %55 = arith.addf %49, %54 : vector<8x8x32xf32>
    %c0_40 = arith.constant 0 : index
    %c10 = arith.constant 10 : index
    %c0_41 = arith.constant 0 : index
    %56 = vector.load %arg12[%c0_40, %c10, %c0_41] : memref<14x24x32xf32, #tpu.memory_space<vmem>>, vector<8x8x32xf32>
    %57 = vector.extract_strided_slice %24 {offsets = [5, 0], sizes = [1, 32], strides = [1, 1]} : vector<49x32xf32> to vector<1x32xf32>
    %58 = vector.shape_cast %57 : vector<1x32xf32> to vector<1x1x32xf32>
    %59 = vector.broadcast %58 : vector<1x1x32xf32> to vector<8x8x32xf32>
    %60 = arith.mulf %56, %59 : vector<8x8x32xf32>
    %61 = arith.addf %55, %60 : vector<8x8x32xf32>
    %c0_42 = arith.constant 0 : index
    %c11_43 = arith.constant 11 : index
    %c0_44 = arith.constant 0 : index
    %62 = vector.load %arg12[%c0_42, %c11_43, %c0_44] : memref<14x24x32xf32, #tpu.memory_space<vmem>>, vector<8x8x32xf32>
    %63 = vector.extract_strided_slice %24 {offsets = [6, 0], sizes = [1, 32], strides = [1, 1]} : vector<49x32xf32> to vector<1x32xf32>
    %64 = vector.shape_cast %63 : vector<1x32xf32> to vector<1x1x32xf32>
    %65 = vector.broadcast %64 : vector<1x1x32xf32> to vector<8x8x32xf32>
    %66 = arith.mulf %62, %65 : vector<8x8x32xf32>
    %67 = arith.addf %61, %66 : vector<8x8x32xf32>
    %c1 = arith.constant 1 : index
    %c5_45 = arith.constant 5 : index
    %c0_46 = arith.constant 0 : index
    %68 = vector.load %arg12[%c1, %c5_45, %c0_46] : memref<14x24x32xf32, #tpu.memory_space<vmem>>, vector<8x8x32xf32>
    %69 = vector.extract_strided_slice %24 {offsets = [7, 0], sizes = [1, 32], strides = [1, 1]} : vector<49x32xf32> to vector<1x32xf32>
    %70 = vector.shape_cast %69 : vector<1x32xf32> to vector<1x1x32xf32>
    %71 = vector.broadcast %70 : vector<1x1x32xf32> to vector<8x8x32xf32>
    %72 = arith.mulf %68, %71 : vector<8x8x32xf32>
    %73 = arith.addf %67, %72 : vector<8x8x32xf32>
    %c1_47 = arith.constant 1 : index
    %c6_48 = arith.constant 6 : index
    %c0_49 = arith.constant 0 : index
    %74 = vector.load %arg12[%c1_47, %c6_48, %c0_49] : memref<14x24x32xf32, #tpu.memory_space<vmem>>, vector<8x8x32xf32>
    %75 = vector.extract_strided_slice %24 {offsets = [8, 0], sizes = [1, 32], strides = [1, 1]} : vector<49x32xf32> to vector<1x32xf32>
    %76 = vector.shape_cast %75 : vector<1x32xf32> to vector<1x1x32xf32>
    %77 = vector.broadcast %76 : vector<1x1x32xf32> to vector<8x8x32xf32>
    %78 = arith.mulf %74, %77 : vector<8x8x32xf32>
    %79 = arith.addf %73, %78 : vector<8x8x32xf32>
    %c1_50 = arith.constant 1 : index
    %c7_51 = arith.constant 7 : index
    %c0_52 = arith.constant 0 : index
    %80 = vector.load %arg12[%c1_50, %c7_51, %c0_52] : memref<14x24x32xf32, #tpu.memory_space<vmem>>, vector<8x8x32xf32>
    %81 = vector.extract_strided_slice %24 {offsets = [9, 0], sizes = [1, 32], strides = [1, 1]} : vector<49x32xf32> to vector<1x32xf32>
    %82 = vector.shape_cast %81 : vector<1x32xf32> to vector<1x1x32xf32>
    %83 = vector.broadcast %82 : vector<1x1x32xf32> to vector<8x8x32xf32>
    %84 = arith.mulf %80, %83 : vector<8x8x32xf32>
    %85 = arith.addf %79, %84 : vector<8x8x32xf32>
    %c1_53 = arith.constant 1 : index
    %c8_54 = arith.constant 8 : index
    %c0_55 = arith.constant 0 : index
    %86 = vector.load %arg12[%c1_53, %c8_54, %c0_55] : memref<14x24x32xf32, #tpu.memory_space<vmem>>, vector<8x8x32xf32>
    %87 = vector.extract_strided_slice %24 {offsets = [10, 0], sizes = [1, 32], strides = [1, 1]} : vector<49x32xf32> to vector<1x32xf32>
    %88 = vector.shape_cast %87 : vector<1x32xf32> to vector<1x1x32xf32>
    %89 = vector.broadcast %88 : vector<1x1x32xf32> to vector<8x8x32xf32>
    %90 = arith.mulf %86, %89 : vector<8x8x32xf32>
    %91 = arith.addf %85, %90 : vector<8x8x32xf32>
    %c1_56 = arith.constant 1 : index
    %c9_57 = arith.constant 9 : index
    %c0_58 = arith.constant 0 : index
    %92 = vector.load %arg12[%c1_56, %c9_57, %c0_58] : memref<14x24x32xf32, #tpu.memory_space<vmem>>, vector<8x8x32xf32>
    %93 = vector.extract_strided_slice %24 {offsets = [11, 0], sizes = [1, 32], strides = [1, 1]} : vector<49x32xf32> to vector<1x32xf32>
    %94 = vector.shape_cast %93 : vector<1x32xf32> to vector<1x1x32xf32>
    %95 = vector.broadcast %94 : vector<1x1x32xf32> to vector<8x8x32xf32>
    %96 = arith.mulf %92, %95 : vector<8x8x32xf32>
    %97 = arith.addf %91, %96 : vector<8x8x32xf32>
    %c1_59 = arith.constant 1 : index
    %c10_60 = arith.constant 10 : index
    %c0_61 = arith.constant 0 : index
    %98 = vector.load %arg12[%c1_59, %c10_60, %c0_61] : memref<14x24x32xf32, #tpu.memory_space<vmem>>, vector<8x8x32xf32>
    %99 = vector.extract_strided_slice %24 {offsets = [12, 0], sizes = [1, 32], strides = [1, 1]} : vector<49x32xf32> to vector<1x32xf32>
    %100 = vector.shape_cast %99 : vector<1x32xf32> to vector<1x1x32xf32>
    %101 = vector.broadcast %100 : vector<1x1x32xf32> to vector<8x8x32xf32>
    %102 = arith.mulf %98, %101 : vector<8x8x32xf32>
    %103 = arith.addf %97, %102 : vector<8x8x32xf32>
    %c1_62 = arith.constant 1 : index
    %c11_63 = arith.constant 11 : index
    %c0_64 = arith.constant 0 : index
    %104 = vector.load %arg12[%c1_62, %c11_63, %c0_64] : memref<14x24x32xf32, #tpu.memory_space<vmem>>, vector<8x8x32xf32>
    %105 = vector.extract_strided_slice %24 {offsets = [13, 0], sizes = [1, 32], strides = [1, 1]} : vector<49x32xf32> to vector<1x32xf32>
    %106 = vector.shape_cast %105 : vector<1x32xf32> to vector<1x1x32xf32>
    %107 = vector.broadcast %106 : vector<1x1x32xf32> to vector<8x8x32xf32>
    %108 = arith.mulf %104, %107 : vector<8x8x32xf32>
    %109 = arith.addf %103, %108 : vector<8x8x32xf32>
    %c2 = arith.constant 2 : index
    %c5_65 = arith.constant 5 : index
    %c0_66 = arith.constant 0 : index
    %110 = vector.load %arg12[%c2, %c5_65, %c0_66] : memref<14x24x32xf32, #tpu.memory_space<vmem>>, vector<8x8x32xf32>
    %111 = vector.extract_strided_slice %24 {offsets = [14, 0], sizes = [1, 32], strides = [1, 1]} : vector<49x32xf32> to vector<1x32xf32>
    %112 = vector.shape_cast %111 : vector<1x32xf32> to vector<1x1x32xf32>
    %113 = vector.broadcast %112 : vector<1x1x32xf32> to vector<8x8x32xf32>
    %114 = arith.mulf %110, %113 : vector<8x8x32xf32>
    %115 = arith.addf %109, %114 : vector<8x8x32xf32>
    %c2_67 = arith.constant 2 : index
    %c6_68 = arith.constant 6 : index
    %c0_69 = arith.constant 0 : index
    %116 = vector.load %arg12[%c2_67, %c6_68, %c0_69] : memref<14x24x32xf32, #tpu.memory_space<vmem>>, vector<8x8x32xf32>
    %117 = vector.extract_strided_slice %24 {offsets = [15, 0], sizes = [1, 32], strides = [1, 1]} : vector<49x32xf32> to vector<1x32xf32>
    %118 = vector.shape_cast %117 : vector<1x32xf32> to vector<1x1x32xf32>
    %119 = vector.broadcast %118 : vector<1x1x32xf32> to vector<8x8x32xf32>
    %120 = arith.mulf %116, %119 : vector<8x8x32xf32>
    %121 = arith.addf %115, %120 : vector<8x8x32xf32>
    %c2_70 = arith.constant 2 : index
    %c7_71 = arith.constant 7 : index
    %c0_72 = arith.constant 0 : index
    %122 = vector.load %arg12[%c2_70, %c7_71, %c0_72] : memref<14x24x32xf32, #tpu.memory_space<vmem>>, vector<8x8x32xf32>
    %123 = vector.extract_strided_slice %24 {offsets = [16, 0], sizes = [1, 32], strides = [1, 1]} : vector<49x32xf32> to vector<1x32xf32>
    %124 = vector.shape_cast %123 : vector<1x32xf32> to vector<1x1x32xf32>
    %125 = vector.broadcast %124 : vector<1x1x32xf32> to vector<8x8x32xf32>
    %126 = arith.mulf %122, %125 : vector<8x8x32xf32>
    %127 = arith.addf %121, %126 : vector<8x8x32xf32>
    %c2_73 = arith.constant 2 : index
    %c8_74 = arith.constant 8 : index
    %c0_75 = arith.constant 0 : index
    %128 = vector.load %arg12[%c2_73, %c8_74, %c0_75] : memref<14x24x32xf32, #tpu.memory_space<vmem>>, vector<8x8x32xf32>
    %129 = vector.extract_strided_slice %24 {offsets = [17, 0], sizes = [1, 32], strides = [1, 1]} : vector<49x32xf32> to vector<1x32xf32>
    %130 = vector.shape_cast %129 : vector<1x32xf32> to vector<1x1x32xf32>
    %131 = vector.broadcast %130 : vector<1x1x32xf32> to vector<8x8x32xf32>
    %132 = arith.mulf %128, %131 : vector<8x8x32xf32>
    %133 = arith.addf %127, %132 : vector<8x8x32xf32>
    %c2_76 = arith.constant 2 : index
    %c9_77 = arith.constant 9 : index
    %c0_78 = arith.constant 0 : index
    %134 = vector.load %arg12[%c2_76, %c9_77, %c0_78] : memref<14x24x32xf32, #tpu.memory_space<vmem>>, vector<8x8x32xf32>
    %135 = vector.extract_strided_slice %24 {offsets = [18, 0], sizes = [1, 32], strides = [1, 1]} : vector<49x32xf32> to vector<1x32xf32>
    %136 = vector.shape_cast %135 : vector<1x32xf32> to vector<1x1x32xf32>
    %137 = vector.broadcast %136 : vector<1x1x32xf32> to vector<8x8x32xf32>
    %138 = arith.mulf %134, %137 : vector<8x8x32xf32>
    %139 = arith.addf %133, %138 : vector<8x8x32xf32>
    %c2_79 = arith.constant 2 : index
    %c10_80 = arith.constant 10 : index
    %c0_81 = arith.constant 0 : index
    %140 = vector.load %arg12[%c2_79, %c10_80, %c0_81] : memref<14x24x32xf32, #tpu.memory_space<vmem>>, vector<8x8x32xf32>
    %141 = vector.extract_strided_slice %24 {offsets = [19, 0], sizes = [1, 32], strides = [1, 1]} : vector<49x32xf32> to vector<1x32xf32>
    %142 = vector.shape_cast %141 : vector<1x32xf32> to vector<1x1x32xf32>
    %143 = vector.broadcast %142 : vector<1x1x32xf32> to vector<8x8x32xf32>
    %144 = arith.mulf %140, %143 : vector<8x8x32xf32>
    %145 = arith.addf %139, %144 : vector<8x8x32xf32>
    %c2_82 = arith.constant 2 : index
    %c11_83 = arith.constant 11 : index
    %c0_84 = arith.constant 0 : index
    %146 = vector.load %arg12[%c2_82, %c11_83, %c0_84] : memref<14x24x32xf32, #tpu.memory_space<vmem>>, vector<8x8x32xf32>
    %147 = vector.extract_strided_slice %24 {offsets = [20, 0], sizes = [1, 32], strides = [1, 1]} : vector<49x32xf32> to vector<1x32xf32>
    %148 = vector.shape_cast %147 : vector<1x32xf32> to vector<1x1x32xf32>
    %149 = vector.broadcast %148 : vector<1x1x32xf32> to vector<8x8x32xf32>
    %150 = arith.mulf %146, %149 : vector<8x8x32xf32>
    %151 = arith.addf %145, %150 : vector<8x8x32xf32>
    %c3_85 = arith.constant 3 : index
    %c5_86 = arith.constant 5 : index
    %c0_87 = arith.constant 0 : index
    %152 = vector.load %arg12[%c3_85, %c5_86, %c0_87] : memref<14x24x32xf32, #tpu.memory_space<vmem>>, vector<8x8x32xf32>
    %153 = vector.extract_strided_slice %24 {offsets = [21, 0], sizes = [1, 32], strides = [1, 1]} : vector<49x32xf32> to vector<1x32xf32>
    %154 = vector.shape_cast %153 : vector<1x32xf32> to vector<1x1x32xf32>
    %155 = vector.broadcast %154 : vector<1x1x32xf32> to vector<8x8x32xf32>
    %156 = arith.mulf %152, %155 : vector<8x8x32xf32>
    %157 = arith.addf %151, %156 : vector<8x8x32xf32>
    %c3_88 = arith.constant 3 : index
    %c6_89 = arith.constant 6 : index
    %c0_90 = arith.constant 0 : index
    %158 = vector.load %arg12[%c3_88, %c6_89, %c0_90] : memref<14x24x32xf32, #tpu.memory_space<vmem>>, vector<8x8x32xf32>
    %159 = vector.extract_strided_slice %24 {offsets = [22, 0], sizes = [1, 32], strides = [1, 1]} : vector<49x32xf32> to vector<1x32xf32>
    %160 = vector.shape_cast %159 : vector<1x32xf32> to vector<1x1x32xf32>
    %161 = vector.broadcast %160 : vector<1x1x32xf32> to vector<8x8x32xf32>
    %162 = arith.mulf %158, %161 : vector<8x8x32xf32>
    %163 = arith.addf %157, %162 : vector<8x8x32xf32>
    %c3_91 = arith.constant 3 : index
    %c7_92 = arith.constant 7 : index
    %c0_93 = arith.constant 0 : index
    %164 = vector.load %arg12[%c3_91, %c7_92, %c0_93] : memref<14x24x32xf32, #tpu.memory_space<vmem>>, vector<8x8x32xf32>
    %165 = vector.extract_strided_slice %24 {offsets = [23, 0], sizes = [1, 32], strides = [1, 1]} : vector<49x32xf32> to vector<1x32xf32>
    %166 = vector.shape_cast %165 : vector<1x32xf32> to vector<1x1x32xf32>
    %167 = vector.broadcast %166 : vector<1x1x32xf32> to vector<8x8x32xf32>
    %168 = arith.mulf %164, %167 : vector<8x8x32xf32>
    %169 = arith.addf %163, %168 : vector<8x8x32xf32>
    %c3_94 = arith.constant 3 : index
    %c8_95 = arith.constant 8 : index
    %c0_96 = arith.constant 0 : index
    %170 = vector.load %arg12[%c3_94, %c8_95, %c0_96] : memref<14x24x32xf32, #tpu.memory_space<vmem>>, vector<8x8x32xf32>
    %171 = vector.extract_strided_slice %24 {offsets = [24, 0], sizes = [1, 32], strides = [1, 1]} : vector<49x32xf32> to vector<1x32xf32>
    %172 = vector.shape_cast %171 : vector<1x32xf32> to vector<1x1x32xf32>
    %173 = vector.broadcast %172 : vector<1x1x32xf32> to vector<8x8x32xf32>
    %174 = arith.mulf %170, %173 : vector<8x8x32xf32>
    %175 = arith.addf %169, %174 : vector<8x8x32xf32>
    %c3_97 = arith.constant 3 : index
    %c9_98 = arith.constant 9 : index
    %c0_99 = arith.constant 0 : index
    %176 = vector.load %arg12[%c3_97, %c9_98, %c0_99] : memref<14x24x32xf32, #tpu.memory_space<vmem>>, vector<8x8x32xf32>
    %177 = vector.extract_strided_slice %24 {offsets = [25, 0], sizes = [1, 32], strides = [1, 1]} : vector<49x32xf32> to vector<1x32xf32>
    %178 = vector.shape_cast %177 : vector<1x32xf32> to vector<1x1x32xf32>
    %179 = vector.broadcast %178 : vector<1x1x32xf32> to vector<8x8x32xf32>
    %180 = arith.mulf %176, %179 : vector<8x8x32xf32>
    %181 = arith.addf %175, %180 : vector<8x8x32xf32>
    %c3_100 = arith.constant 3 : index
    %c10_101 = arith.constant 10 : index
    %c0_102 = arith.constant 0 : index
    %182 = vector.load %arg12[%c3_100, %c10_101, %c0_102] : memref<14x24x32xf32, #tpu.memory_space<vmem>>, vector<8x8x32xf32>
    %183 = vector.extract_strided_slice %24 {offsets = [26, 0], sizes = [1, 32], strides = [1, 1]} : vector<49x32xf32> to vector<1x32xf32>
    %184 = vector.shape_cast %183 : vector<1x32xf32> to vector<1x1x32xf32>
    %185 = vector.broadcast %184 : vector<1x1x32xf32> to vector<8x8x32xf32>
    %186 = arith.mulf %182, %185 : vector<8x8x32xf32>
    %187 = arith.addf %181, %186 : vector<8x8x32xf32>
    %c3_103 = arith.constant 3 : index
    %c11_104 = arith.constant 11 : index
    %c0_105 = arith.constant 0 : index
    %188 = vector.load %arg12[%c3_103, %c11_104, %c0_105] : memref<14x24x32xf32, #tpu.memory_space<vmem>>, vector<8x8x32xf32>
    %189 = vector.extract_strided_slice %24 {offsets = [27, 0], sizes = [1, 32], strides = [1, 1]} : vector<49x32xf32> to vector<1x32xf32>
    %190 = vector.shape_cast %189 : vector<1x32xf32> to vector<1x1x32xf32>
    %191 = vector.broadcast %190 : vector<1x1x32xf32> to vector<8x8x32xf32>
    %192 = arith.mulf %188, %191 : vector<8x8x32xf32>
    %193 = arith.addf %187, %192 : vector<8x8x32xf32>
    %c4 = arith.constant 4 : index
    %c5_106 = arith.constant 5 : index
    %c0_107 = arith.constant 0 : index
    %194 = vector.load %arg12[%c4, %c5_106, %c0_107] : memref<14x24x32xf32, #tpu.memory_space<vmem>>, vector<8x8x32xf32>
    %195 = vector.extract_strided_slice %24 {offsets = [28, 0], sizes = [1, 32], strides = [1, 1]} : vector<49x32xf32> to vector<1x32xf32>
    %196 = vector.shape_cast %195 : vector<1x32xf32> to vector<1x1x32xf32>
    %197 = vector.broadcast %196 : vector<1x1x32xf32> to vector<8x8x32xf32>
    %198 = arith.mulf %194, %197 : vector<8x8x32xf32>
    %199 = arith.addf %193, %198 : vector<8x8x32xf32>
    %c4_108 = arith.constant 4 : index
    %c6_109 = arith.constant 6 : index
    %c0_110 = arith.constant 0 : index
    %200 = vector.load %arg12[%c4_108, %c6_109, %c0_110] : memref<14x24x32xf32, #tpu.memory_space<vmem>>, vector<8x8x32xf32>
    %201 = vector.extract_strided_slice %24 {offsets = [29, 0], sizes = [1, 32], strides = [1, 1]} : vector<49x32xf32> to vector<1x32xf32>
    %202 = vector.shape_cast %201 : vector<1x32xf32> to vector<1x1x32xf32>
    %203 = vector.broadcast %202 : vector<1x1x32xf32> to vector<8x8x32xf32>
    %204 = arith.mulf %200, %203 : vector<8x8x32xf32>
    %205 = arith.addf %199, %204 : vector<8x8x32xf32>
    %c4_111 = arith.constant 4 : index
    %c7_112 = arith.constant 7 : index
    %c0_113 = arith.constant 0 : index
    %206 = vector.load %arg12[%c4_111, %c7_112, %c0_113] : memref<14x24x32xf32, #tpu.memory_space<vmem>>, vector<8x8x32xf32>
    %207 = vector.extract_strided_slice %24 {offsets = [30, 0], sizes = [1, 32], strides = [1, 1]} : vector<49x32xf32> to vector<1x32xf32>
    %208 = vector.shape_cast %207 : vector<1x32xf32> to vector<1x1x32xf32>
    %209 = vector.broadcast %208 : vector<1x1x32xf32> to vector<8x8x32xf32>
    %210 = arith.mulf %206, %209 : vector<8x8x32xf32>
    %211 = arith.addf %205, %210 : vector<8x8x32xf32>
    %c4_114 = arith.constant 4 : index
    %c8_115 = arith.constant 8 : index
    %c0_116 = arith.constant 0 : index
    %212 = vector.load %arg12[%c4_114, %c8_115, %c0_116] : memref<14x24x32xf32, #tpu.memory_space<vmem>>, vector<8x8x32xf32>
    %213 = vector.extract_strided_slice %24 {offsets = [31, 0], sizes = [1, 32], strides = [1, 1]} : vector<49x32xf32> to vector<1x32xf32>
    %214 = vector.shape_cast %213 : vector<1x32xf32> to vector<1x1x32xf32>
    %215 = vector.broadcast %214 : vector<1x1x32xf32> to vector<8x8x32xf32>
    %216 = arith.mulf %212, %215 : vector<8x8x32xf32>
    %217 = arith.addf %211, %216 : vector<8x8x32xf32>
    %c4_117 = arith.constant 4 : index
    %c9_118 = arith.constant 9 : index
    %c0_119 = arith.constant 0 : index
    %218 = vector.load %arg12[%c4_117, %c9_118, %c0_119] : memref<14x24x32xf32, #tpu.memory_space<vmem>>, vector<8x8x32xf32>
    %219 = vector.extract_strided_slice %24 {offsets = [32, 0], sizes = [1, 32], strides = [1, 1]} : vector<49x32xf32> to vector<1x32xf32>
    %220 = vector.shape_cast %219 : vector<1x32xf32> to vector<1x1x32xf32>
    %221 = vector.broadcast %220 : vector<1x1x32xf32> to vector<8x8x32xf32>
    %222 = arith.mulf %218, %221 : vector<8x8x32xf32>
    %223 = arith.addf %217, %222 : vector<8x8x32xf32>
    %c4_120 = arith.constant 4 : index
    %c10_121 = arith.constant 10 : index
    %c0_122 = arith.constant 0 : index
    %224 = vector.load %arg12[%c4_120, %c10_121, %c0_122] : memref<14x24x32xf32, #tpu.memory_space<vmem>>, vector<8x8x32xf32>
    %225 = vector.extract_strided_slice %24 {offsets = [33, 0], sizes = [1, 32], strides = [1, 1]} : vector<49x32xf32> to vector<1x32xf32>
    %226 = vector.shape_cast %225 : vector<1x32xf32> to vector<1x1x32xf32>
    %227 = vector.broadcast %226 : vector<1x1x32xf32> to vector<8x8x32xf32>
    %228 = arith.mulf %224, %227 : vector<8x8x32xf32>
    %229 = arith.addf %223, %228 : vector<8x8x32xf32>
    %c4_123 = arith.constant 4 : index
    %c11_124 = arith.constant 11 : index
    %c0_125 = arith.constant 0 : index
    %230 = vector.load %arg12[%c4_123, %c11_124, %c0_125] : memref<14x24x32xf32, #tpu.memory_space<vmem>>, vector<8x8x32xf32>
    %231 = vector.extract_strided_slice %24 {offsets = [34, 0], sizes = [1, 32], strides = [1, 1]} : vector<49x32xf32> to vector<1x32xf32>
    %232 = vector.shape_cast %231 : vector<1x32xf32> to vector<1x1x32xf32>
    %233 = vector.broadcast %232 : vector<1x1x32xf32> to vector<8x8x32xf32>
    %234 = arith.mulf %230, %233 : vector<8x8x32xf32>
    %235 = arith.addf %229, %234 : vector<8x8x32xf32>
    %c5_126 = arith.constant 5 : index
    %c5_127 = arith.constant 5 : index
    %c0_128 = arith.constant 0 : index
    %236 = vector.load %arg12[%c5_126, %c5_127, %c0_128] : memref<14x24x32xf32, #tpu.memory_space<vmem>>, vector<8x8x32xf32>
    %237 = vector.extract_strided_slice %24 {offsets = [35, 0], sizes = [1, 32], strides = [1, 1]} : vector<49x32xf32> to vector<1x32xf32>
    %238 = vector.shape_cast %237 : vector<1x32xf32> to vector<1x1x32xf32>
    %239 = vector.broadcast %238 : vector<1x1x32xf32> to vector<8x8x32xf32>
    %240 = arith.mulf %236, %239 : vector<8x8x32xf32>
    %241 = arith.addf %235, %240 : vector<8x8x32xf32>
    %c5_129 = arith.constant 5 : index
    %c6_130 = arith.constant 6 : index
    %c0_131 = arith.constant 0 : index
    %242 = vector.load %arg12[%c5_129, %c6_130, %c0_131] : memref<14x24x32xf32, #tpu.memory_space<vmem>>, vector<8x8x32xf32>
    %243 = vector.extract_strided_slice %24 {offsets = [36, 0], sizes = [1, 32], strides = [1, 1]} : vector<49x32xf32> to vector<1x32xf32>
    %244 = vector.shape_cast %243 : vector<1x32xf32> to vector<1x1x32xf32>
    %245 = vector.broadcast %244 : vector<1x1x32xf32> to vector<8x8x32xf32>
    %246 = arith.mulf %242, %245 : vector<8x8x32xf32>
    %247 = arith.addf %241, %246 : vector<8x8x32xf32>
    %c5_132 = arith.constant 5 : index
    %c7_133 = arith.constant 7 : index
    %c0_134 = arith.constant 0 : index
    %248 = vector.load %arg12[%c5_132, %c7_133, %c0_134] : memref<14x24x32xf32, #tpu.memory_space<vmem>>, vector<8x8x32xf32>
    %249 = vector.extract_strided_slice %24 {offsets = [37, 0], sizes = [1, 32], strides = [1, 1]} : vector<49x32xf32> to vector<1x32xf32>
    %250 = vector.shape_cast %249 : vector<1x32xf32> to vector<1x1x32xf32>
    %251 = vector.broadcast %250 : vector<1x1x32xf32> to vector<8x8x32xf32>
    %252 = arith.mulf %248, %251 : vector<8x8x32xf32>
    %253 = arith.addf %247, %252 : vector<8x8x32xf32>
    %c5_135 = arith.constant 5 : index
    %c8_136 = arith.constant 8 : index
    %c0_137 = arith.constant 0 : index
    %254 = vector.load %arg12[%c5_135, %c8_136, %c0_137] : memref<14x24x32xf32, #tpu.memory_space<vmem>>, vector<8x8x32xf32>
    %255 = vector.extract_strided_slice %24 {offsets = [38, 0], sizes = [1, 32], strides = [1, 1]} : vector<49x32xf32> to vector<1x32xf32>
    %256 = vector.shape_cast %255 : vector<1x32xf32> to vector<1x1x32xf32>
    %257 = vector.broadcast %256 : vector<1x1x32xf32> to vector<8x8x32xf32>
    %258 = arith.mulf %254, %257 : vector<8x8x32xf32>
    %259 = arith.addf %253, %258 : vector<8x8x32xf32>
    %c5_138 = arith.constant 5 : index
    %c9_139 = arith.constant 9 : index
    %c0_140 = arith.constant 0 : index
    %260 = vector.load %arg12[%c5_138, %c9_139, %c0_140] : memref<14x24x32xf32, #tpu.memory_space<vmem>>, vector<8x8x32xf32>
    %261 = vector.extract_strided_slice %24 {offsets = [39, 0], sizes = [1, 32], strides = [1, 1]} : vector<49x32xf32> to vector<1x32xf32>
    %262 = vector.shape_cast %261 : vector<1x32xf32> to vector<1x1x32xf32>
    %263 = vector.broadcast %262 : vector<1x1x32xf32> to vector<8x8x32xf32>
    %264 = arith.mulf %260, %263 : vector<8x8x32xf32>
    %265 = arith.addf %259, %264 : vector<8x8x32xf32>
    %c5_141 = arith.constant 5 : index
    %c10_142 = arith.constant 10 : index
    %c0_143 = arith.constant 0 : index
    %266 = vector.load %arg12[%c5_141, %c10_142, %c0_143] : memref<14x24x32xf32, #tpu.memory_space<vmem>>, vector<8x8x32xf32>
    %267 = vector.extract_strided_slice %24 {offsets = [40, 0], sizes = [1, 32], strides = [1, 1]} : vector<49x32xf32> to vector<1x32xf32>
    %268 = vector.shape_cast %267 : vector<1x32xf32> to vector<1x1x32xf32>
    %269 = vector.broadcast %268 : vector<1x1x32xf32> to vector<8x8x32xf32>
    %270 = arith.mulf %266, %269 : vector<8x8x32xf32>
    %271 = arith.addf %265, %270 : vector<8x8x32xf32>
    %c5_144 = arith.constant 5 : index
    %c11_145 = arith.constant 11 : index
    %c0_146 = arith.constant 0 : index
    %272 = vector.load %arg12[%c5_144, %c11_145, %c0_146] : memref<14x24x32xf32, #tpu.memory_space<vmem>>, vector<8x8x32xf32>
    %273 = vector.extract_strided_slice %24 {offsets = [41, 0], sizes = [1, 32], strides = [1, 1]} : vector<49x32xf32> to vector<1x32xf32>
    %274 = vector.shape_cast %273 : vector<1x32xf32> to vector<1x1x32xf32>
    %275 = vector.broadcast %274 : vector<1x1x32xf32> to vector<8x8x32xf32>
    %276 = arith.mulf %272, %275 : vector<8x8x32xf32>
    %277 = arith.addf %271, %276 : vector<8x8x32xf32>
    %c6_147 = arith.constant 6 : index
    %c5_148 = arith.constant 5 : index
    %c0_149 = arith.constant 0 : index
    %278 = vector.load %arg12[%c6_147, %c5_148, %c0_149] : memref<14x24x32xf32, #tpu.memory_space<vmem>>, vector<8x8x32xf32>
    %279 = vector.extract_strided_slice %24 {offsets = [42, 0], sizes = [1, 32], strides = [1, 1]} : vector<49x32xf32> to vector<1x32xf32>
    %280 = vector.shape_cast %279 : vector<1x32xf32> to vector<1x1x32xf32>
    %281 = vector.broadcast %280 : vector<1x1x32xf32> to vector<8x8x32xf32>
    %282 = arith.mulf %278, %281 : vector<8x8x32xf32>
    %283 = arith.addf %277, %282 : vector<8x8x32xf32>
    %c6_150 = arith.constant 6 : index
    %c6_151 = arith.constant 6 : index
    %c0_152 = arith.constant 0 : index
    %284 = vector.load %arg12[%c6_150, %c6_151, %c0_152] : memref<14x24x32xf32, #tpu.memory_space<vmem>>, vector<8x8x32xf32>
    %285 = vector.extract_strided_slice %24 {offsets = [43, 0], sizes = [1, 32], strides = [1, 1]} : vector<49x32xf32> to vector<1x32xf32>
    %286 = vector.shape_cast %285 : vector<1x32xf32> to vector<1x1x32xf32>
    %287 = vector.broadcast %286 : vector<1x1x32xf32> to vector<8x8x32xf32>
    %288 = arith.mulf %284, %287 : vector<8x8x32xf32>
    %289 = arith.addf %283, %288 : vector<8x8x32xf32>
    %c6_153 = arith.constant 6 : index
    %c7_154 = arith.constant 7 : index
    %c0_155 = arith.constant 0 : index
    %290 = vector.load %arg12[%c6_153, %c7_154, %c0_155] : memref<14x24x32xf32, #tpu.memory_space<vmem>>, vector<8x8x32xf32>
    %291 = vector.extract_strided_slice %24 {offsets = [44, 0], sizes = [1, 32], strides = [1, 1]} : vector<49x32xf32> to vector<1x32xf32>
    %292 = vector.shape_cast %291 : vector<1x32xf32> to vector<1x1x32xf32>
    %293 = vector.broadcast %292 : vector<1x1x32xf32> to vector<8x8x32xf32>
    %294 = arith.mulf %290, %293 : vector<8x8x32xf32>
    %295 = arith.addf %289, %294 : vector<8x8x32xf32>
    %c6_156 = arith.constant 6 : index
    %c8_157 = arith.constant 8 : index
    %c0_158 = arith.constant 0 : index
    %296 = vector.load %arg12[%c6_156, %c8_157, %c0_158] : memref<14x24x32xf32, #tpu.memory_space<vmem>>, vector<8x8x32xf32>
    %297 = vector.extract_strided_slice %24 {offsets = [45, 0], sizes = [1, 32], strides = [1, 1]} : vector<49x32xf32> to vector<1x32xf32>
    %298 = vector.shape_cast %297 : vector<1x32xf32> to vector<1x1x32xf32>
    %299 = vector.broadcast %298 : vector<1x1x32xf32> to vector<8x8x32xf32>
    %300 = arith.mulf %296, %299 : vector<8x8x32xf32>
    %301 = arith.addf %295, %300 : vector<8x8x32xf32>
    %c6_159 = arith.constant 6 : index
    %c9_160 = arith.constant 9 : index
    %c0_161 = arith.constant 0 : index
    %302 = vector.load %arg12[%c6_159, %c9_160, %c0_161] : memref<14x24x32xf32, #tpu.memory_space<vmem>>, vector<8x8x32xf32>
    %303 = vector.extract_strided_slice %24 {offsets = [46, 0], sizes = [1, 32], strides = [1, 1]} : vector<49x32xf32> to vector<1x32xf32>
    %304 = vector.shape_cast %303 : vector<1x32xf32> to vector<1x1x32xf32>
    %305 = vector.broadcast %304 : vector<1x1x32xf32> to vector<8x8x32xf32>
    %306 = arith.mulf %302, %305 : vector<8x8x32xf32>
    %307 = arith.addf %301, %306 : vector<8x8x32xf32>
    %c6_162 = arith.constant 6 : index
    %c10_163 = arith.constant 10 : index
    %c0_164 = arith.constant 0 : index
    %308 = vector.load %arg12[%c6_162, %c10_163, %c0_164] : memref<14x24x32xf32, #tpu.memory_space<vmem>>, vector<8x8x32xf32>
    %309 = vector.extract_strided_slice %24 {offsets = [47, 0], sizes = [1, 32], strides = [1, 1]} : vector<49x32xf32> to vector<1x32xf32>
    %310 = vector.shape_cast %309 : vector<1x32xf32> to vector<1x1x32xf32>
    %311 = vector.broadcast %310 : vector<1x1x32xf32> to vector<8x8x32xf32>
    %312 = arith.mulf %308, %311 : vector<8x8x32xf32>
    %313 = arith.addf %307, %312 : vector<8x8x32xf32>
    %c6_165 = arith.constant 6 : index
    %c11_166 = arith.constant 11 : index
    %c0_167 = arith.constant 0 : index
    %314 = vector.load %arg12[%c6_165, %c11_166, %c0_167] : memref<14x24x32xf32, #tpu.memory_space<vmem>>, vector<8x8x32xf32>
    %315 = vector.extract_strided_slice %24 {offsets = [48, 0], sizes = [1, 32], strides = [1, 1]} : vector<49x32xf32> to vector<1x32xf32>
    %316 = vector.shape_cast %315 : vector<1x32xf32> to vector<1x1x32xf32>
    %317 = vector.broadcast %316 : vector<1x1x32xf32> to vector<8x8x32xf32>
    %318 = arith.mulf %314, %317 : vector<8x8x32xf32>
    %319 = arith.addf %313, %318 : vector<8x8x32xf32>
    %320 = vector.shape_cast %319 : vector<8x8x32xf32> to vector<64x32xf32>
    %321 = arith.truncf %320 : vector<64x32xf32> to vector<64x32xbf16>
    %c0_168 = arith.constant 0 : index
    %c0_169 = arith.constant 0 : index
    %322 = vector.load %arg7[%c0_168, %c0_169] : memref<32x32xbf16, #tpu.memory_space<vmem>>, vector<32x32xbf16>
    %cst_170 = arith.constant dense<0.000000e+00> : vector<64x32xf32>
    %323 = tpu.matmul %321, %322, %cst_170 {dimension_numbers = #tpu.dot_dimension_numbers<[1], [0], [0], [1], [0, 0, 1, 1], [], []>} : vector<64x32xbf16>, vector<32x32xbf16>, vector<64x32xf32> -> vector<64x32xf32>
    %c0_171 = arith.constant 0 : index
    %c0_172 = arith.constant 0 : index
    %324 = vector.load %arg8[%c0_171, %c0_172] : memref<1x32xf32, #tpu.memory_space<vmem>>, vector<1x32xf32>
    %325 = vector.broadcast %324 : vector<1x32xf32> to vector<64x32xf32>
    %326 = arith.addf %323, %325 : vector<64x32xf32>
    %cst_173 = arith.constant 5.000000e-01 : f32
    %327 = vector.broadcast %cst_173 : f32 to vector<64x32xf32>
    %328 = arith.mulf %327, %326 : vector<64x32xf32>
    %cst_174 = arith.constant 4.471500e-02 : f32
    %329 = vector.broadcast %cst_174 : f32 to vector<64x32xf32>
    %330 = arith.mulf %329, %326 : vector<64x32xf32>
    %331 = arith.mulf %330, %326 : vector<64x32xf32>
    %332 = arith.mulf %331, %326 : vector<64x32xf32>
    %333 = arith.addf %326, %332 : vector<64x32xf32>
    %cst_175 = arith.constant 0.797884583 : f32
    %334 = vector.broadcast %cst_175 : f32 to vector<64x32xf32>
    %335 = arith.mulf %334, %333 : vector<64x32xf32>
    %336 = math.tanh %335 : vector<64x32xf32>
    %cst_176 = arith.constant 1.000000e+00 : f32
    %337 = vector.broadcast %cst_176 : f32 to vector<64x32xf32>
    %338 = arith.addf %337, %336 : vector<64x32xf32>
    %339 = arith.mulf %328, %338 : vector<64x32xf32>
    %340 = arith.truncf %339 : vector<64x32xf32> to vector<64x32xbf16>
    %c0_177 = arith.constant 0 : index
    %c0_178 = arith.constant 0 : index
    %341 = vector.load %arg9[%c0_177, %c0_178] : memref<32x16xbf16, #tpu.memory_space<vmem>>, vector<32x16xbf16>
    %cst_179 = arith.constant dense<0.000000e+00> : vector<64x16xf32>
    %342 = tpu.matmul %340, %341, %cst_179 {dimension_numbers = #tpu.dot_dimension_numbers<[1], [0], [0], [1], [0, 0, 1, 1], [], []>} : vector<64x32xbf16>, vector<32x16xbf16>, vector<64x16xf32> -> vector<64x16xf32>
    %c0_180 = arith.constant 0 : index
    %c0_181 = arith.constant 0 : index
    %343 = vector.load %arg10[%c0_180, %c0_181] : memref<1x16xf32, #tpu.memory_space<vmem>>, vector<1x16xf32>
    %344 = vector.broadcast %343 : vector<1x16xf32> to vector<64x16xf32>
    %345 = arith.addf %342, %344 : vector<64x16xf32>
    %c0_182 = arith.constant 0 : index
    %c0_183 = arith.constant 0 : index
    %c0_184 = arith.constant 0 : index
    %346 = vector.load %arg11[%c0_182, %c0_183, %c0_184] : memref<1x64x16xf32, #tpu.memory_space<vmem>>, vector<1x64x16xf32>
    %347 = vector.shape_cast %346 : vector<1x64x16xf32> to vector<64x16xf32>
    %348 = vector.shape_cast %345 : vector<64x16xf32> to vector<1x64x16xf32>
    tpu.vector_store %arg11[%c0_182, %c0_183, %c0_184], %348 {strides = array<i32>} : memref<1x64x16xf32, #tpu.memory_space<vmem>>, vector<1x64x16xf32>,
    return
  }
  func.func @transform_0(%arg0: i32) -> (i32, i32, i32) {
    %c0_i32 = arith.constant 0 : i32
    %c0_i32_0 = arith.constant 0 : i32
    %c0_i32_1 = arith.constant 0 : i32
    return %arg0, %c0_i32, %c0_i32_0 : i32, i32, i32
  }
  func.func @transform_1(%arg0: i32) -> (i32, i32) {
    %c0_i32 = arith.constant 0 : i32
    %c0_i32_0 = arith.constant 0 : i32
    %c0_i32_1 = arith.constant 0 : i32
    return %c0_i32, %c0_i32_0 : i32, i32
  }
  func.func @transform_2(%arg0: i32) -> (i32, i32) {
    %c0_i32 = arith.constant 0 : i32
    %c0_i32_0 = arith.constant 0 : i32
    %c0_i32_1 = arith.constant 0 : i32
    return %c0_i32, %c0_i32_0 : i32, i32
  }
  func.func @transform_3(%arg0: i32) -> (i32, i32) {
    %c0_i32 = arith.constant 0 : i32
    %c0_i32_0 = arith.constant 0 : i32
    %c0_i32_1 = arith.constant 0 : i32
    return %c0_i32, %c0_i32_0 : i32, i32
  }
  func.func @transform_4(%arg0: i32) -> (i32, i32) {
    %c0_i32 = arith.constant 0 : i32
    %c0_i32_0 = arith.constant 0 : i32
    %c0_i32_1 = arith.constant 0 : i32
    return %c0_i32, %c0_i32_0 : i32, i32
  }
  func.func @transform_5(%arg0: i32) -> (i32, i32) {
    %c0_i32 = arith.constant 0 : i32
    %c0_i32_0 = arith.constant 0 : i32
    %c0_i32_1 = arith.constant 0 : i32
    return %c0_i32, %c0_i32_0 : i32, i32
  }
  func.func @transform_6(%arg0: i32) -> (i32, i32) {
    %c0_i32 = arith.constant 0 : i32
    %c0_i32_0 = arith.constant 0 : i32
    %c0_i32_1 = arith.constant 0 : i32
    return %c0_i32, %c0_i32_0 : i32, i32
  }
  func.func @transform_7(%arg0: i32) -> (i32, i32) {
    %c0_i32 = arith.constant 0 : i32
    %c0_i32_0 = arith.constant 0 : i32
    %c0_i32_1 = arith.constant 0 : i32
    return %c0_i32, %c0_i32_0 : i32, i32
  }
  func.func @transform_8(%arg0: i32) -> (i32, i32) {
    %c0_i32 = arith.constant 0 : i32
    %c0_i32_0 = arith.constant 0 : i32
    %c0_i32_1 = arith.constant 0 : i32
    return %c0_i32, %c0_i32_0 : i32, i32
  }
  func.func @transform_9(%arg0: i32) -> (i32, i32) {
    %c0_i32 = arith.constant 0 : i32
    %c0_i32_0 = arith.constant 0 : i32
    %c0_i32_1 = arith.constant 0 : i32
    return %c0_i32, %c0_i32_0 : i32, i32
  }
  func.func @transform_10(%arg0: i32) -> (i32, i32, i32) {
    %c0_i32 = arith.constant 0 : i32
    %c0_i32_0 = arith.constant 0 : i32
    %c0_i32_1 = arith.constant 0 : i32
    return %arg0, %c0_i32, %c0_i32_0 : i32, i32, i32
  }
}

</mosaic_0001>

<bundles_post_ra>
// kernel: tpu_custom_call.1
= control target key start
LH: loop header
LB: loop body
LE: loop exit
PB: predicated region body
PF: predicated region fallthrough
CT: control target
= control target key end

     0   :  { %s2550_s13 = smov 0   ;;  %s3919_s0 = inlined_call_operand.vmem [shape: f32[2,64,16], index: 0, kind: input, shape index: {}]   ;;  %s3920_s1 = inlined_call_operand.vmem [shape: bf16[16,32], index: 1, kind: input, shape index: {}]   ;;  %s3921_s2 = inlined_call_operand.vmem [shape: f32[1,32], index: 2, kind: input, shape index: {}]   ;;  %s3922_s3 = inlined_call_operand.vmem [shape: bf16[32,32], index: 3, kind: input, shape index: {}]   ;;  %s3923_s4 = inlined_call_operand.vmem [shape: f32[1,32], index: 4, kind: input, shape index: {}]   ;;  %s3924_s5 = inlined_call_operand.vmem [shape: f32[49,32], index: 5, kind: input, shape index: {}]   ;;  %s3925_s6 = inlined_call_operand.vmem [shape: bf16[32,32], index: 6, kind: input, shape index: {}]   ;;  %s3926_s7 = inlined_call_operand.vmem [shape: f32[1,32], index: 7, kind: input, shape index: {}]   ;;  %s3927_s8 = inlined_call_operand.vmem [shape: bf16[32,16], index: 8, kind: input, shape index: {}]   ;;  %s3928_s9 = inlined_call_operand.vmem [shape: f32[1,16], index: 9, kind: input, shape index: {}]   ;;  %s3929_s10 = inlined_call_operand.vmem [shape: f32[2,64,16], index: 10, kind: output, shape index: {}]  }
   0x1 LB: > { %s2342_s14 = sadd.s32 4294967295, %s2492_s13   ;;  %p2346_p0 = scmp.ge.s32.totalorder %s2492_s13, 1  ;;  %s2492_s13 = sphi %s2550_s13, %s20_s13  }
   0x2   : > { %p312_p1 = scmp.lt.s32.totalorder %s2492_s13, 3 }
   0x4   : > { %p313_p2 = pnand %p2346_p0, %p312_p1 }
   0x6   : > { %316 = sbr.rel (%p313_p2) target bundleno = 1135 (0x46f), region = 60 }
   0xd   : > { %v2461_v0 = vld [vmem:[%s3920_s1] sm:$0xff]   ;;  %p350_p3 = scmp.lt.s32.totalorder %s2342_s14, 1  ;;  %vm388_vm0 = vcmask 130048   ;;  %v2463_v14 = vld [vmem:[%s3922_s3 + $0x8] sm:$0xff]   ;;  %vm493_vm1 = vcmask 261120   ;;  %v2494_v36 = vmov 0.0   ;;  %v630_v37 = vlaneseq }
   0xe   : > { %2406 = vmatprep.subr.bf16.mxu0 %v2461_v0  ;;  %v2462_v13 = vld [vmem:[%s3922_s3] sm:$0xff]   ;;  %571 = vst.msk [vmem:[#allocation2] sm:$0xff] %vm493_vm1, %v2494_v36  ;;  %572 = vst.msk [vmem:[#allocation2 + $0x8] sm:$0xff] %vm493_vm1, %v2494_v36 }
   0xf   : > { %s4350_s14 = smov (!%p350_p3, %s2342_s14), 1  ;;  %2407 = vmatpush3.bf16.msra.mxu0 %v2461_v0  ;;  %2416 = vmatprep.subr.bf16.mxu1 %v2462_v13  ;;  %v2351_v16 = vld [vmem:[%s3921_s2] ss:$0 sm:$0xff]  ;;  %573 = vst.msk [vmem:[#allocation2 + $0x10] sm:$0xff] %vm493_vm1, %v2494_v36  ;;  %574 = vst.msk [vmem:[#allocation2 + $0x18] sm:$0xff] %vm493_vm1, %v2494_v36  ;;  %v631_v38 = vshrl.u32 %v630_v37, 7 }
  0x10   : > { %s2381_s17 = sshll.u32 %s4350_s14, 6  ;;  %2417 = vmatpush3.bf16.msra.mxu1 %v2462_v13  ;;  %575 = vst.msk [vmem:[#allocation2 + $0x20] sm:$0xff] %vm493_vm1, %v2494_v36  ;;  %576 = vst.msk [vmem:[#allocation2 + $0x28] sm:$0xff] %vm493_vm1, %v2494_v36  ;;  %v615_v41 = vld [vmem:[%s3924_s5] sm:$0xff] }
  0x11   : > { %s354_s20 = scalar_lea.vmem %s3919_s0, %s2381_s17  ;;  %2418 = vmatprep.subr.bf16.mxu1 %v2463_v14  ;;  %577 = vst.msk [vmem:[#allocation2 + $0x30] sm:$0xff] %vm493_vm1, %v2494_v36  ;;  %578 = vst.msk [vmem:[#allocation2 + $0x38] sm:$0xff] %vm493_vm1, %v2494_v36  ;;  %v2620_v39 = vsub.s32 0, %v631_v38  ;;  %v2622_v40 = vsub.s32 1, %v631_v38  ;;  %v2633_v44 = vsub.s32 2, %v631_v38  ;;  %v2640_v50 = vsub.s32 3, %v631_v38  ;;  %s359_s23 = scalar_lea.vmem %s3929_s10, %s2381_s17 }
  0x12   : > { %v361_v1 = vld [vmem:[%s354_s20] sm:$0xff]  ;;  %v362_v2 = vld [vmem:[%s354_s20 + $0x8] sm:$0xff]  ;;  %v363_v3 = vld [vmem:[%s354_s20 + $0x10] sm:$0xff]  ;;  %579 = vst.msk [vmem:[#allocation2 + $0x40] sm:$0xff] %vm493_vm1, %v2494_v36  ;;  %v2646_v55 = vsub.s32 4, %v631_v38  ;;  %v2652_v60 = vsub.s32 5, %v631_v38 }
  0x13   : > { %v369_v4 = vpack.c.bf16 %v362_v2, %v361_v1  ;;  %v364_v5 = vld [vmem:[%s354_s20 + $0x18] sm:$0xff]  ;;  %v365_v6 = vld [vmem:[%s354_s20 + $0x20] sm:$0xff]  ;;  %v366_v7 = vld [vmem:[%s354_s20 + $0x28] sm:$0xff]  ;;  %591 = vst.msk [vmem:[#allocation2 + $0x48] sm:$0xff] %vm493_vm1, %v2494_v36  ;;  %v2628_v42 = vrot.slane %v615_v41, %v2620_v39  ;;  %v2631_v43 = vrot.slane %v615_v41, %v2622_v40  ;;  %v2638_v49 = vrot.slane %v615_v41, %v2633_v44 }
  0x14   : > { %v370_v8 = vpack.c.bf16 %v364_v5, %v363_v3  ;;  %v371_v9 = vpack.c.bf16 %v366_v7, %v365_v6  ;;  %v367_v10 = vld [vmem:[%s354_s20 + $0x30] sm:$0xff]  ;;  %v368_v11 = vld [vmem:[%s354_s20 + $0x38] sm:$0xff]  ;;  %2419 = vmatpush3.bf16.msra.mxu1 %v2463_v14  ;;  %592 = vst.msk [vmem:[#allocation2 + $0x60] sm:$0xff] %vm493_vm1, %v2494_v36  ;;  %593 = vst.msk [vmem:[#allocation2 + $0x78] sm:$0xff] %vm493_vm1, %v2494_v36  ;;  %v2644_v54 = vrot.slane %v615_v41, %v2640_v50 }
  0x15   : > { %2408 = vmatprep.mubr.msk.bf16.mxu0 %vm388_vm0, %v369_v4  ;;  %v372_v12 = vpack.c.bf16 %v368_v11, %v367_v10  ;;  %599 = vst.msk [vmem:[#allocation2 + $0x58] sm:$0xff] %vm493_vm1, %v2494_v36  ;;  %600 = vst.msk [vmem:[#allocation2 + $0x70] sm:$0xff] %vm493_vm1, %v2494_v36  ;;  %v622_v45 = vld [vmem:[#allocation2 + $0x5] sm:$0xff]  ;;  %v2650_v59 = vrot.slane %v615_v41, %v2646_v55  ;;  %v2656_v0 = vrot.slane %v615_v41, %v2652_v60 }
  0x16   : > { %2409 = vmatmul.mubr.msk.bf16.vlgmr.msra.gmra.mrb[0].mxu0 %vm388_vm0, %v370_v8  ;;  %581 = vst.msk [vmem:[#allocation2 + $0x108] sm:$0xff] %vm493_vm1, %v2494_v36  ;;  %582 = vst.msk [vmem:[#allocation2 + $0x110] sm:$0xff] %vm493_vm1, %v2494_v36  ;;  %v650_v46 = vld [vmem:[#allocation2 + $0x6] sm:$0xff]  ;;  %v634_v47 = vmul.f32 %v2628_v42, %v622_v45  ;;  %v2658_v1 = vsub.s32 6, %v631_v38  ;;  %v2664_v6 = vsub.s32 7, %v631_v38 }
  0x17   : > { %2412 = vmatprep.mubr.msk.bf16.mxu0 %vm388_vm0, %v371_v9  ;;  %583 = vst.msk [vmem:[#allocation2 + $0x118] sm:$0xff] %vm493_vm1, %v2494_v36  ;;  %584 = vst.msk [vmem:[#allocation2 + $0x120] sm:$0xff] %vm493_vm1, %v2494_v36  ;;  %v662_v48 = vmul.f32 %v2631_v43, %v650_v46  ;;  %v678_v51 = vld [vmem:[#allocation2 + $0x7] sm:$0xff]  ;;  %v651_v13 = vld [vmem:[#allocation2 + $0x1e] sm:$0xff] }
  0x18   : > { %585 = vst.msk [vmem:[#allocation2 + $0x128] sm:$0xff] %vm493_vm1, %v2494_v36  ;;  %586 = vst.msk [vmem:[#allocation2 + $0x130] sm:$0xff] %vm493_vm1, %v2494_v36  ;;  %v690_v53 = vmul.f32 %v2638_v49, %v678_v51  ;;  %v706_v56 = vld [vmem:[#allocation2 + $0x8] sm:$0xff]  ;;  %v2662_v5 = vrot.slane %v615_v41, %v2658_v1  ;;  %v2668_v10 = vrot.slane %v615_v41, %v2664_v6 }
  0x19   : > { %587 = vst.msk [vmem:[#allocation2 + $0x138] sm:$0xff] %vm493_vm1, %v2494_v36  ;;  %588 = vst.msk [vmem:[#allocation2 + $0x140] sm:$0xff] %vm493_vm1, %v2494_v36  ;;  %v670_v52 = vadd.f32 %v662_v48, %v634_v47  ;;  %v718_v58 = vmul.f32 %v2644_v54, %v706_v56  ;;  %v734_v61 = vld [vmem:[#allocation2 + $0x9] sm:$0xff] }
  0x1a   : > { %589 = vst.msk [vmem:[#allocation2 + $0x148] sm:$0xff] %vm493_vm1, %v2494_v36  ;;  %594 = vst.msk [vmem:[#allocation2 + $0x90] sm:$0xff] %vm493_vm1, %v2494_v36  ;;  %v746_v63 = vmul.f32 %v2650_v59, %v734_v61  ;;  %v762_v2 = vld [vmem:[#allocation2 + $0xa] sm:$0xff]  ;;  %v763_v37 = vld [vmem:[#allocation2 + $0x22] sm:$0xff] }
  0x1b   : > { %595 = vst.msk [vmem:[#allocation2 + $0xa8] sm:$0xff] %vm493_vm1, %v2494_v36  ;;  %596 = vst.msk [vmem:[#allocation2 + $0xc0] sm:$0xff] %vm493_vm1, %v2494_v36  ;;  %v698_v57 = vadd.f32 %v690_v53, %v670_v52  ;;  %v774_v4 = vmul.f32 %v2656_v0, %v762_v2  ;;  %v790_v7 = vld [vmem:[#allocation2 + $0xb] sm:$0xff]  ;;  %v775_v47 = vmul.f32 %v2656_v0, %v763_v37  ;;  %v791_v48 = vld [vmem:[#allocation2 + $0x23] sm:$0xff] }
  0x1c   : > { %597 = vst.msk [vmem:[#allocation2 + $0xd8] sm:$0xff] %vm493_vm1, %v2494_v36  ;;  %598 = vst.msk [vmem:[#allocation2 + $0xf0] sm:$0xff] %vm493_vm1, %v2494_v36  ;;  %v802_v9 = vmul.f32 %v2662_v5, %v790_v7  ;;  %v616_v11 = vld [vmem:[%s3924_s5 + $0x8] sm:$0xff]  ;;  %v652_v2 = vld [vmem:[#allocation2 + $0x36] sm:$0xff] }
  0x1d   : > { %601 = vst.msk [vmem:[#allocation2 + $0x88] sm:$0xff] %vm493_vm1, %v2494_v36  ;;  %602 = vst.msk [vmem:[#allocation2 + $0xa0] sm:$0xff] %vm493_vm1, %v2494_v36  ;;  %v726_v62 = vadd.f32 %v718_v58, %v698_v57  ;;  %v2696_v45 = vrot.slane %v616_v11, %v2646_v55  ;;  %v2701_v53 = vrot.slane %v616_v11, %v2652_v60  ;;  %v624_v58 = vld [vmem:[#allocation2 + $0x35] sm:$0xff] }
  0x1e   : > { %2413 = vmatmul.mubr.msk.bf16.gmra.mrb[4].mxu0 %vm388_vm0, %v372_v12  ;;  %603 = vst.msk [vmem:[#allocation2 + $0xb8] sm:$0xff] %vm493_vm1, %v2494_v36  ;;  %604 = vst.msk [vmem:[#allocation2 + $0xd0] sm:$0xff] %vm493_vm1, %v2494_v36  ;;  %v623_v12 = vld [vmem:[#allocation2 + $0x1d] sm:$0xff]  ;;  %v803_v57 = vmul.f32 %v2662_v5, %v791_v48 }
  0x1f   : > { %605 = vst.msk [vmem:[#allocation2 + $0xe8] sm:$0xff] %vm493_vm1, %v2494_v36  ;;  %606 = vst.msk [vmem:[#allocation2 + $0x100] sm:$0xff] %vm493_vm1, %v2494_v36  ;;  %v754_v3 = vadd.f32 %v746_v63, %v726_v62  ;;  %v971_v52 = vmul.f32 %v2696_v45, %v763_v37  ;;  %v999_v62 = vmul.f32 %v2701_v53, %v791_v48  ;;  %v736_v37 = vld [vmem:[#allocation2 + $0x39] sm:$0xff] }
  0x20   : > { %4077 = vst [vmem:[#allocation3_spill] sm:$0xff] %v2628_v42  ;;  %4078 = vst [vmem:[#allocation4_spill] sm:$0xff] %v2631_v43  ;;  %v2706_v63 = vrot.slane %v616_v11, %v2658_v1 }
  0x21   : > { %4079 = vst [vmem:[#allocation5_spill] sm:$0xff] %v2638_v49  ;;  %4080 = vst [vmem:[#allocation6_spill] sm:$0xff] %v2644_v54  ;;  %v782_v8 = vadd.f32 %v774_v4, %v754_v3  ;;  %v832_v4 = vmul.f32 %v2668_v10, %v624_v58 }
  0x22   : > { %4081 = vst [vmem:[#allocation7_spill] sm:$0xff] %v2650_v59  ;;  %4082 = vst [vmem:[#allocation8_spill] sm:$0xff] %v2656_v0 }
  0x23   : > { %4083 = vst [vmem:[#allocation9_spill] sm:$0xff] %v2662_v5  ;;  %4084 = vst [vmem:[#allocation10_spill] sm:$0xff] %v2668_v10  ;;  %v810_v14 = vadd.f32 %v802_v9, %v782_v8  ;;  %v1028_v8 = vmul.f32 %v2706_v63, %v624_v58  ;;  %v2711_v9 = vrot.slane %v616_v11, %v2664_v6 }
  0x24   : > { %4086 = vst [vmem:[#allocation12_spill] sm:$0xff] %v2706_v63 }
  0x25   : > { %4087 = vst [vmem:[#allocation13_spill] sm:$0xff] %v2711_v9 }
  0xe9   : > { %v2410_v15 = vpop.f32.mrb[0].mxu0 }
  0xea   : > { %v435_v17 = vpop.f32.mrb[1].mxu0  ;;  %v444_v19 = vadd.f32 %v2410_v15, %v2351_v16  ;;  %v831_v15 = vmul.f32 %v2668_v10, %v623_v12 }
  0xeb   : > { %v2411_v18 = vpop.f32.mrb[2].mxu0  ;;  %v436_v22 = vadd.f32 %v2351_v16, %v435_v17  ;;  %v635_v17 = vmul.f32 %v2628_v42, %v623_v12  ;;  %v2716_v12 = vld [vmem:[%s3924_s5 + $0x10] sm:$0xff] }
  0xec   : > { %v447_v20 = vadd.f32 %v2411_v18, %v2351_v16  ;;  %v438_v21 = vpop.f32.mrb[3].mxu0  ;;  %v663_v18 = vmul.f32 %v2631_v43, %v651_v13  ;;  %v2749_v48 = vrot.slane %v2716_v12, %v2633_v44 }
  0xed   : > { %v439_v23 = vadd.f32 %v2351_v16, %v438_v21 }
  0xee   : > { %v467_v24 = vpack.c.bf16 %v447_v20, %v444_v19  ;;  %v679_v19 = vld [vmem:[#allocation2 + $0x1f] sm:$0xff]  ;;  %v839_v20 = vadd.f32 %v831_v15, %v810_v14  ;;  %v664_v14 = vmul.f32 %v2631_v43, %v652_v2  ;;  %v680_v15 = vld [vmem:[#allocation2 + $0x37] sm:$0xff]  ;;  %4090 = vst [vmem:[#allocation16_spill] sm:$0xff] %v2749_v48 }
  0xef   : > { %v466_v25 = vpack.c.bf16 %v439_v23, %v436_v22  ;;  %v2681_v22 = vrot.slane %v616_v11, %v2622_v40  ;;  %v671_v23 = vadd.f32 %v663_v18, %v635_v17 }
  0xf1   : > { %v2414_v26 = vpop.f32.mrb[4].mxu0  ;;  %2420 = vmatprep.mubr.msk.bf16.mxu1 %vm493_vm1, %v466_v25  ;;  %v707_v25 = vld [vmem:[#allocation2 + $0x20] sm:$0xff] }
  0xf2   : > { %v451_v27 = vpop.f32.mrb[5].mxu0  ;;  %2421 = vmatmul.mubr.msk.bf16.vlgmr.msra.gmra.mrb[0].mxu1 %vm493_vm1, %v467_v24  ;;  %v460_v29 = vadd.f32 %v2414_v26, %v2351_v16  ;;  %v691_v24 = vmul.f32 %v2638_v49, %v679_v19 }
  0xf3   : > { %v2415_v28 = vpop.f32.mrb[6].mxu0  ;;  %v452_v32 = vadd.f32 %v2351_v16, %v451_v27  ;;  %v887_v27 = vmul.f32 %v2681_v22, %v679_v19 }
  0xf4   : > { %v463_v30 = vadd.f32 %v2415_v28, %v2351_v16  ;;  %v454_v31 = vpop.f32.mrb[7].mxu0  ;;  %v2686_v28 = vrot.slane %v616_v11, %v2633_v44 }
  0xf5   : > { %v455_v33 = vadd.f32 %v2351_v16, %v454_v31  ;;  %v2675_v16 = vrot.slane %v616_v11, %v2620_v39  ;;  %v735_v31 = vld [vmem:[#allocation2 + $0x21] sm:$0xff] }
  0xf6   : > { %v469_v34 = vpack.c.bf16 %v463_v30, %v460_v29  ;;  %v699_v29 = vadd.f32 %v691_v24, %v671_v23  ;;  %v719_v30 = vmul.f32 %v2644_v54, %v707_v25  ;;  %v747_v36 = vmul.f32 %v2650_v59, %v735_v31  ;;  %v2464_v24 = vld [vmem:[%s3925_s6] sm:$0xff]  }
  0xf7   : > { %v468_v35 = vpack.c.bf16 %v455_v33, %v452_v32  ;;  %4085 = vst [vmem:[#allocation11_spill] sm:$0xff] %v2675_v16  ;;  %v859_v21 = vmul.f32 %v2675_v16, %v651_v13  ;;  %v915_v33 = vmul.f32 %v2686_v28, %v707_v25  ;;  %v636_v13 = vmul.f32 %v2628_v42, %v624_v58  ;;  %v2465_v25 = vld [vmem:[%s3925_s6 + $0x8] sm:$0xff]  }
  0xf8   : > { %v860_v18 = vmul.f32 %v2675_v16, %v652_v2  ;;  %v692_v23 = vmul.f32 %v2638_v49, %v680_v15  ;;  %2428 = vmatprep.subr.bf16.mxu0 %v2464_v24  ;;  %v748_v58 = vmul.f32 %v2650_v59, %v736_v37 }
  0xf9   : > { %2424 = vmatprep.mubr.msk.bf16.mxu1 %vm493_vm1, %v468_v35  ;;  %v867_v26 = vadd.f32 %v859_v21, %v839_v20  ;;  %v727_v35 = vadd.f32 %v719_v30, %v699_v29  ;;  %v1056_v20 = vmul.f32 %v2711_v9, %v652_v2  ;;  %v672_v21 = vadd.f32 %v664_v14, %v636_v13 }
  0xfa   : > { %2425 = vmatmul.mubr.msk.bf16.gmra.mrb[4].mxu1 %vm493_vm1, %v469_v34  ;;  %v2691_v34 = vrot.slane %v616_v11, %v2640_v50  ;;  %v2724_v11 = vrot.slane %v2716_v12, %v2620_v39  ;;  %v888_v29 = vmul.f32 %v2681_v22, %v680_v15  ;;  %2429 = vmatpush3.bf16.msra.mxu0 %v2464_v24 }
  0xfb   : > { %v895_v32 = vadd.f32 %v887_v27, %v867_v26  ;;  %v755_v46 = vadd.f32 %v747_v36, %v727_v35  ;;  %v708_v26 = vld [vmem:[#allocation2 + $0x38] sm:$0xff]  ;;  %2430 = vmatprep.subr.bf16.mxu0 %v2465_v25  ;;  %v2743_v36 = vld [vmem:[%s3923_s4] ss:$0 sm:$0xff]  ;;  %v2759_v13 = vrot.slane %v2716_v12, %v2640_v50 }
  0xfc   : > { %v943_v41 = vmul.f32 %v2691_v34, %v735_v31  ;;  %4088 = vst [vmem:[#allocation14_spill] sm:$0xff] %v2724_v11  ;;  %v1084_v31 = vmul.f32 %v2724_v11, %v680_v15  ;;  %v720_v35 = vmul.f32 %v2644_v54, %v708_v26 }
  0xfd   : > { %v923_v38 = vadd.f32 %v915_v33, %v895_v32  ;;  %v783_v56 = vadd.f32 %v775_v47, %v755_v46  ;;  %v2737_v32 = vrot.slane %v2716_v12, %v2622_v40  ;;  %v700_v33 = vadd.f32 %v692_v23, %v672_v21  ;;  %4091 = vst [vmem:[#allocation17_spill] sm:$0xff] %v2759_v13 }
  0xfe   : > { %2431 = vmatpush3.bf16.msra.mxu0 %v2465_v25 }
  0xff   : > { %v951_v51 = vadd.f32 %v943_v41, %v923_v38  ;;  %v811_v3 = vadd.f32 %v803_v57, %v783_v56  ;;  %4089 = vst [vmem:[#allocation15_spill] sm:$0xff] %v2737_v32  ;;  %v916_v41 = vmul.f32 %v2686_v28, %v708_v26  ;;  %v1112_v47 = vmul.f32 %v2737_v32, %v708_v26 }
 0x100   : > { %v728_v57 = vadd.f32 %v720_v35, %v700_v33  ;;  %v2771_v26 = vrot.slane %v2716_v12, %v2646_v55 }
 0x101   : > { %v979_v61 = vadd.f32 %v971_v52, %v951_v51  ;;  %v840_v17 = vadd.f32 %v832_v4, %v811_v3  ;;  %v944_v3 = vmul.f32 %v2691_v34, %v736_v37 }
 0x102   : > { %4092 = vst [vmem:[#allocation18_spill] sm:$0xff] %v2771_v26 }
 0x103   : > { %v1007_v7 = vadd.f32 %v999_v62, %v979_v61  ;;  %v868_v27 = vadd.f32 %v860_v18, %v840_v17  ;;  %v764_v62 = vld [vmem:[#allocation2 + $0x3a] sm:$0xff]  ;;  %v756_v18 = vadd.f32 %v748_v58, %v728_v57 }
 0x104   : > { %v972_v23 = vmul.f32 %v2696_v45, %v764_v62  ;;  %v1168_v25 = vmul.f32 %v2759_v13, %v764_v62  ;;  %v618_v57 = vld [vmem:[%s3924_s5 + $0x18] sm:$0xff] }
 0x105   : > { %v1036_v19 = vadd.f32 %v1028_v8, %v1007_v7  ;;  %v896_v38 = vadd.f32 %v888_v29, %v868_v27  ;;  %v1140_v8 = vmul.f32 %v2749_v48, %v736_v37 }
 0x107   : > { %v1064_v30 = vadd.f32 %v1056_v20, %v1036_v19  ;;  %v924_v2 = vadd.f32 %v916_v41, %v896_v38  ;;  %v776_v19 = vmul.f32 %v2656_v0, %v764_v62  ;;  %v792_v20 = vld [vmem:[#allocation2 + $0x3b] sm:$0xff] }
 0x108   : > { %v1000_v37 = vmul.f32 %v2701_v53, %v792_v20 }
 0x109   : > { %v1092_v46 = vadd.f32 %v1084_v31, %v1064_v30  ;;  %v952_v21 = vadd.f32 %v944_v3, %v924_v2  ;;  %v784_v29 = vadd.f32 %v776_v19, %v756_v18  ;;  %v804_v30 = vmul.f32 %v2662_v5, %v792_v20 }
 0x10a   : > { %v2804_v18 = vrot.slane %v618_v57, %v2620_v39  ;;  %v2807_v19 = vrot.slane %v618_v57, %v2622_v40 }
 0x10b   : > { %v1120_v7 = vadd.f32 %v1112_v47, %v1092_v46  ;;  %v980_v35 = vadd.f32 %v972_v23, %v952_v21  ;;  %v812_v62 = vadd.f32 %v804_v30, %v784_v29  ;;  %v619_v21 = vld [vmem:[%s3924_s5 + $0x20] sm:$0xff]  ;;  %v2822_v29 = vrot.slane %v618_v57, %v2652_v60 }
 0x10c   : > { %4097 = vst [vmem:[#allocation23_spill] sm:$0xff] %v2804_v18  ;;  %4098 = vst [vmem:[#allocation24_spill] sm:$0xff] %v2807_v19  ;;  %v2825_v30 = vrot.slane %v618_v57, %v2658_v1 }
 0x10d   : > { %v1148_v24 = vadd.f32 %v1140_v8, %v1120_v7  ;;  %v1008_v3 = vadd.f32 %v1000_v37, %v980_v35  ;;  %v2792_v7 = vrot.slane %v2716_v12, %v2652_v60  ;;  %v2796_v8 = vrot.slane %v2716_v12, %v2658_v1  ;;  %4102 = vst [vmem:[#allocation28_spill] sm:$0xff] %v2822_v29 }
 0x10e   : > { %4103 = vst [vmem:[#allocation29_spill] sm:$0xff] %v2825_v30 }
 0x10f   : > { %4094 = vst [vmem:[#allocation20_spill] sm:$0xff] %v2792_v7  ;;  %4095 = vst [vmem:[#allocation21_spill] sm:$0xff] %v2796_v8 }
 0x1c5   : > { %v2422_v51 = vpop.f32.mrb[0].mxu1 }
 0x1c6   : > { %v549_v52 = vadd.f32 %v2422_v51, %v2743_v36  ;;  %v540_v56 = vpop.f32.mrb[1].mxu1  ;;  %v1176_v51 = vadd.f32 %v1168_v25, %v1148_v24  ;;  %v2819_v25 = vrot.slane %v618_v57, %v2646_v55 }
 0x1c7   : > { %v541_v61 = vadd.f32 %v2743_v36, %v540_v56  ;;  %v2423_v4 = vpop.f32.mrb[2].mxu1 }
 0x1c8   : > { %609 = vst.msk [vmem:[#allocation2 + $0x80] sm:$0xff] %vm493_vm1, %v549_v52  ;;  %v552_v14 = vadd.f32 %v2423_v4, %v2743_v36  ;;  %v543_v15 = vpop.f32.mrb[3].mxu1  ;;  %v1196_v52 = vmul.f32 %v2771_v26, %v792_v20  ;;  %v2810_v20 = vrot.slane %v618_v57, %v2633_v44  ;;  %4101 = vst [vmem:[#allocation27_spill] sm:$0xff] %v2819_v25 }
 0x1c9   : > { %607 = vst.msk [vmem:[#allocation2 + $0x50] sm:$0xff] %vm493_vm1, %v541_v61  ;;  %v544_v17 = vadd.f32 %v2743_v36, %v543_v15 }
 0x1ca   : > { %610 = vst.msk [vmem:[#allocation2 + $0x98] sm:$0xff] %vm493_vm1, %v552_v14  ;;  %v1204_v4 = vadd.f32 %v1196_v52, %v1176_v51  ;;  %v2800_v14 = vrot.slane %v2716_v12, %v2664_v6  ;;  %4099 = vst [vmem:[#allocation25_spill] sm:$0xff] %v2810_v20  ;;  %v2816_v12 = vrot.slane %v618_v57, %v2640_v50 }
 0x1cb   : > { %608 = vst.msk [vmem:[#allocation2 + $0x68] sm:$0xff] %vm493_vm1, %v544_v17 }
 0x1cc   : > { %4096 = vst [vmem:[#allocation22_spill] sm:$0xff] %v2800_v14  ;;  %4100 = vst [vmem:[#allocation26_spill] sm:$0xff] %v2816_v12 }
 0x1cd   : > { %v2426_v27 = vpop.f32.mrb[4].mxu1 }
 0x1ce   : > { %v565_v31 = vadd.f32 %v2426_v27, %v2743_v36  ;;  %v556_v33 = vpop.f32.mrb[5].mxu1 }
 0x1cf   : > { %v557_v38 = vadd.f32 %v2743_v36, %v556_v33  ;;  %v2777_v41 = vpop.f32.mrb[6].mxu1 }
 0x1d0   : > { %v625_v46 = vld [vmem:[#allocation2 + $0x4d] sm:$0xff]  ;;  %613 = vst.msk [vmem:[#allocation2 + $0xe0] sm:$0xff] %vm493_vm1, %v565_v31  ;;  %v2781_v56 = vpop.f32.mrb[7].mxu1  ;;  %v2828_v31 = vrot.slane %v618_v57, %v2664_v6  ;;  %v2844_v57 = vrot.slane %v619_v21, %v2640_v50 }
 0x1d1   : > { %v653_v47 = vld [vmem:[#allocation2 + $0x4e] sm:$0xff]  ;;  %4093 = vst [vmem:[#allocation19_spill] sm:$0xff] %v2781_v56  ;;  %611 = vst.msk [vmem:[#allocation2 + $0xb0] sm:$0xff] %vm493_vm1, %v557_v38  ;;  %v637_v58 = vmul.f32 %v2628_v42, %v625_v46  ;;  %v833_v2 = vmul.f32 %v2668_v10, %v625_v46  ;;  %v1029_v17 = vmul.f32 %v2706_v63, %v625_v46 }
 0x1d2   : > { %v665_v61 = vmul.f32 %v2631_v43, %v653_v47  ;;  %v681_v15 = vld [vmem:[#allocation2 + $0x4f] sm:$0xff]  ;;  %4104 = vst [vmem:[#allocation30_spill] sm:$0xff] %v2828_v31  ;;  %v861_v35 = vmul.f32 %v2675_v16, %v653_v47  ;;  %v1224_v37 = vmul.f32 %v2792_v7, %v625_v46  ;;  %v2834_v38 = vrot.slane %v619_v21, %v2620_v39 }
 0x1d3   : > { %v841_v24 = vadd.f32 %v833_v2, %v812_v62  ;;  %v1037_v27 = vadd.f32 %v1029_v17, %v1008_v3  ;;  %v693_v33 = vmul.f32 %v2638_v49, %v681_v15  ;;  %v709_v51 = vld [vmem:[#allocation2 + $0x50] sm:$0xff]  ;;  %v1057_v52 = vmul.f32 %v2711_v9, %v653_v47  ;;  %4108 = vst [vmem:[#allocation34_spill] sm:$0xff] %v2844_v57  ;;  %v620_v16 = vld [vmem:[%s3924_s5 + $0x28] sm:$0xff] }
 0x1d4   : > { %v673_v23 = vadd.f32 %v665_v61, %v637_v58  ;;  %4105 = vst [vmem:[#allocation31_spill] sm:$0xff] %v2834_v38  ;;  %v2838_v58 = vrot.slane %v619_v21, %v2622_v40  ;;  %v2841_v61 = vrot.slane %v619_v21, %v2633_v44  ;;  %v1232_v3 = vadd.f32 %v1224_v37, %v1204_v4  ;;  %v1416_v17 = vld [vmem:[#allocation2 + $0x10d] sm:$0xff] }
 0x1d5   : > { %v869_v2 = vadd.f32 %v861_v35, %v841_v24  ;;  %v1252_v46 = vmul.f32 %v2796_v8, %v653_v47  ;;  %v1444_v31 = vld [vmem:[#allocation2 + $0x10e] sm:$0xff]  ;;  %v1065_v38 = vadd.f32 %v1057_v52, %v1037_v27  ;;  %v721_v4 = vmul.f32 %v2644_v54, %v709_v51 }
 0x1d6   : > { %4106 = vst [vmem:[#allocation32_spill] sm:$0xff] %v2838_v58  ;;  %4107 = vst [vmem:[#allocation33_spill] sm:$0xff] %v2841_v61  ;;  %v701_v62 = vadd.f32 %v693_v33, %v673_v23  ;;  %v1472_v56 = vld [vmem:[#allocation2 + $0x10f] sm:$0xff]  ;;  %v2851_v58 = vrot.slane %v619_v21, %v2646_v55  ;;  %v2854_v61 = vrot.slane %v619_v21, %v2652_v60 }
 0x1d7   : > { %v2857_v23 = vrot.slane %v619_v21, %v2658_v1  ;;  %v889_v47 = vmul.f32 %v2681_v22, %v681_v15  ;;  %v1260_v24 = vadd.f32 %v1252_v46, %v1232_v3  ;;  %v2862_v27 = vrot.slane %v619_v21, %v2664_v6  ;;  %v737_v33 = vld [vmem:[#allocation2 + $0x51] sm:$0xff]  ;;  %v2878_v21 = vld [vmem:[#allocation2 + $0x7d] sm:$0xff] }
 0x1d8   : > { %4109 = vst [vmem:[#allocation35_spill] sm:$0xff] %v2851_v58  ;;  %4110 = vst [vmem:[#allocation36_spill] sm:$0xff] %v2854_v61  ;;  %v1085_v35 = vmul.f32 %v2724_v11, %v681_v15  ;;  %v1280_v37 = vmul.f32 %v2800_v14, %v681_v15  ;;  %v2867_v52 = vmul.f32 %v2819_v25, %v1416_v17 }
 0x1d9   : > { %4111 = vst [vmem:[#allocation37_spill] sm:$0xff] %v2857_v23  ;;  %4112 = vst [vmem:[#allocation38_spill] sm:$0xff] %v2862_v27  ;;  %v2870_v61 = vmul.f32 %v2822_v29, %v1444_v31  ;;  %v729_v23 = vadd.f32 %v721_v4, %v701_v62  ;;  %v897_v58 = vadd.f32 %v889_v47, %v869_v2  ;;  %v2888_v2 = vld [vmem:[#allocation2 + $0x7e] sm:$0xff]  ;;  %v765_v4 = vld [vmem:[#allocation2 + $0x52] sm:$0xff] }
 0x1da   : > { %4113 = vst [vmem:[#allocation39_spill] sm:$0xff] %v2867_v52  ;;  %v2873_v57 = vmul.f32 %v2825_v30, %v1472_v56  ;;  %v2876_v3 = vrot.slane %v620_v16, %v2620_v39  ;;  %v1093_v46 = vadd.f32 %v1085_v35, %v1065_v38  ;;  %v1288_v27 = vadd.f32 %v1280_v37, %v1260_v24  ;;  %v2890_v56 = vld [vmem:[#allocation2 + $0x7f] sm:$0xff]  ;;  %v2921_v52 = vld [vmem:[#allocation2 + $0x95] sm:$0xff] }
 0x1db   : > { %4114 = vst [vmem:[#allocation40_spill] sm:$0xff] %v2870_v61  ;;  %v2881_v15 = vrot.slane %v620_v16, %v2622_v40  ;;  %v2884_v17 = vrot.slane %v620_v16, %v2633_v44  ;;  %v749_v31 = vmul.f32 %v2650_v59, %v737_v33  ;;  %v917_v62 = vmul.f32 %v2686_v28, %v709_v51  ;;  %v793_v40 = vld [vmem:[#allocation2 + $0x53] sm:$0xff] }
 0x1dc   : > { %4115 = vst [vmem:[#allocation41_spill] sm:$0xff] %v2873_v57  ;;  %4116 = vst [vmem:[#allocation42_spill] sm:$0xff] %v2876_v3  ;;  %v2893_v39 = vrot.slane %v620_v16, %v2640_v50  ;;  %v2896_v38 = vrot.slane %v620_v16, %v2646_v55  ;;  %v1113_v47 = vmul.f32 %v2737_v32, %v709_v51 }
 0x1dd   : > { %4117 = vst [vmem:[#allocation43_spill] sm:$0xff] %v2881_v15  ;;  %4118 = vst [vmem:[#allocation44_spill] sm:$0xff] %v2884_v17  ;;  %v1308_v44 = vmul.f32 %v2804_v18, %v709_v51  ;;  %v2901_v24 = vrot.slane %v620_v16, %v2652_v60  ;;  %v2904_v35 = vrot.slane %v620_v16, %v2658_v1 }
 0x1de   : > { %4119 = vst [vmem:[#allocation45_spill] sm:$0xff] %v2888_v2  ;;  %4120 = vst [vmem:[#allocation46_spill] sm:$0xff] %v2890_v56  ;;  %v757_v37 = vadd.f32 %v749_v31, %v729_v23  ;;  %v925_v57 = vadd.f32 %v917_v62, %v897_v58  ;;  %v2908_v50 = vmul.f32 %v2706_v63, %v2878_v21  ;;  %v2932_v62 = vld [vmem:[#allocation2 + $0x96] sm:$0xff] }
 0x1df   : > { %4121 = vst [vmem:[#allocation47_spill] sm:$0xff] %v2893_v39  ;;  %4122 = vst [vmem:[#allocation48_spill] sm:$0xff] %v2896_v38  ;;  %v2911_v55 = vrot.slane %v620_v16, %v2664_v6  ;;  %v2915_v61 = vmul.f32 %v2711_v9, %v2888_v2  ;;  %v2919_v60 = vmul.f32 %v2724_v11, %v2890_v56  ;;  %v2926_v6 = vld [vmem:[#allocation2 + $0x80] sm:$0xff]  ;;  %v2942_v38 = vld [vmem:[#allocation2 + $0x97] sm:$0xff] }
 0x1e0   : > { %4123 = vst [vmem:[#allocation49_spill] sm:$0xff] %v2901_v24  ;;  %4124 = vst [vmem:[#allocation50_spill] sm:$0xff] %v2904_v35  ;;  %v1121_v51 = vadd.f32 %v1113_v47, %v1093_v46  ;;  %v1316_v1 = vadd.f32 %v1308_v44, %v1288_v27  ;;  %v777_v58 = vmul.f32 %v2656_v0, %v765_v4  ;;  %v822_v39 = vld [vmem:[#allocation2 + $0x65] sm:$0xff] }
 0x1e1   : > { %4125 = vst [vmem:[#allocation51_spill] sm:$0xff] %v2908_v50  ;;  %4126 = vst [vmem:[#allocation52_spill] sm:$0xff] %v2911_v55  ;;  %v805_v23 = vmul.f32 %v2662_v5, %v793_v40  ;;  %v945_v31 = vmul.f32 %v2691_v34, %v737_v33  ;;  %v2930_v16 = vmul.f32 %v2792_v7, %v2878_v21 }
 0x1e2   : > { %4127 = vst [vmem:[#allocation53_spill] sm:$0xff] %v2915_v61  ;;  %4128 = vst [vmem:[#allocation54_spill] sm:$0xff] %v2919_v60  ;;  %v973_v55 = vmul.f32 %v2696_v45, %v765_v4  ;;  %v1001_v27 = vmul.f32 %v2701_v53, %v793_v40  ;;  %v1141_v46 = vmul.f32 %v2749_v48, %v737_v33 }
 0x1e3   : > { %4129 = vst [vmem:[#allocation55_spill] sm:$0xff] %v2921_v52  ;;  %4130 = vst [vmem:[#allocation56_spill] sm:$0xff] %v2926_v6  ;;  %v1336_v47 = vmul.f32 %v2807_v19, %v737_v33  ;;  %v785_v44 = vadd.f32 %v777_v58, %v757_v37  ;;  %v953_v35 = vadd.f32 %v945_v31, %v925_v57  ;;  %v2960_v31 = vld [vmem:[#allocation2 + $0x66] sm:$0xff] }
 0x1e4   : > { %4131 = vst [vmem:[#allocation57_spill] sm:$0xff] %v2930_v16  ;;  %4132 = vst [vmem:[#allocation58_spill] sm:$0xff] %v2932_v62  ;;  %v568_v24 = vadd.f32 %v2777_v41, %v2743_v36  ;;  %v640_v60 = vmul.f32 %v2628_v42, %v2921_v52  ;;  %v2946_v61 = vmul.f32 %v2737_v32, %v2926_v6  ;;  %v2988_v52 = vld [vmem:[#allocation2 + $0x99] sm:$0xff] }
 0x1e5   : > { %4133 = vst [vmem:[#allocation59_spill] sm:$0xff] %v2942_v38  ;;  %v1149_v16 = vadd.f32 %v1141_v46, %v1121_v51  ;;  %v1344_v50 = vadd.f32 %v1336_v47, %v1316_v1  ;;  %v668_v33 = vmul.f32 %v2631_v43, %v2932_v62  ;;  %v1169_v57 = vmul.f32 %v2759_v13, %v765_v4  ;;  %v2963_v51 = vld [vmem:[#allocation2 + $0x98] sm:$0xff]  ;;  %v2970_v47 = vld [vmem:[#allocation2 + $0x67] sm:$0xff] }
 0x1e6   : > { %4134 = vst [vmem:[#allocation60_spill] sm:$0xff] %v2946_v61  ;;  %v1197_v37 = vmul.f32 %v2771_v26, %v793_v40  ;;  %v2954_v41 = vmul.f32 %v2796_v8, %v2888_v2  ;;  %v2958_v58 = vmul.f32 %v2800_v14, %v2890_v56  ;;  %614 = vst.msk [vmem:[#allocation2 + $0xf8] sm:$0xff] %vm493_vm1, %v568_v24  ;;  %v2972_v61 = vld [vmem:[#allocation2 + $0xad] sm:$0xff] }
 0x1e7   : > { %4137 = vst [vmem:[#allocation63_spill] sm:$0xff] %v2963_v51  ;;  %v2967_v1 = vmul.f32 %v2804_v18, %v2926_v6  ;;  %v1364_v46 = vmul.f32 %v2810_v20, %v765_v4  ;;  %4139 = vst [vmem:[#allocation65_spill] sm:$0xff] %v2972_v61  ;;  %v676_v17 = vadd.f32 %v668_v33, %v640_v60  ;;  %v2981_v62 = vld [vmem:[#allocation2 + $0x68] sm:$0xff] }
 0x1e8   : > { %4135 = vst [vmem:[#allocation61_spill] sm:$0xff] %v2954_v41  ;;  %4136 = vst [vmem:[#allocation62_spill] sm:$0xff] %v2958_v58  ;;  %v2974_v41 = vld [vmem:[#allocation2 + $0xae] sm:$0xff]  ;;  %v696_v58 = vmul.f32 %v2638_v49, %v2942_v38  ;;  %v2978_v15 = vadd.f32 %v805_v23, %v785_v44  ;;  %v981_v24 = vadd.f32 %v973_v55, %v953_v35 }
 0x1e9   : > { %4138 = vst [vmem:[#allocation64_spill] sm:$0xff] %v2967_v1  ;;  %4140 = vst [vmem:[#allocation66_spill] sm:$0xff] %v2974_v41  ;;  %v1392_v3 = vmul.f32 %v2816_v12, %v793_v40  ;;  %v2983_v1 = vld [vmem:[#allocation2 + $0x69] sm:$0xff]  ;;  %v2986_v4 = vmul.f32 %v2668_v10, %v822_v39  ;;  %v1177_v6 = vadd.f32 %v1169_v57, %v1149_v16  ;;  %v3008_v57 = vld [vmem:[#allocation2 + $0x9a] sm:$0xff] }
 0x1ea   : > { %4141 = vst [vmem:[#allocation67_spill] sm:$0xff] %v2988_v52  ;;  %v1372_v56 = vadd.f32 %v1364_v46, %v1344_v50  ;;  %v2990_v60 = vld [vmem:[#allocation2 + $0x6a] sm:$0xff]  ;;  %v704_v23 = vadd.f32 %v696_v58, %v676_v17  ;;  %v724_v35 = vmul.f32 %v2644_v54, %v2963_v51  ;;  %v3002_v44 = vmul.f32 %v2681_v22, %v2970_v47 }
 0x1eb   : > { %v2992_v33 = vld [vmem:[#allocation2 + $0x6b] sm:$0xff]  ;;  %v641_v16 = vmul.f32 %v2628_v42, %v2972_v61  ;;  %v669_v50 = vmul.f32 %v2631_v43, %v2974_v41  ;;  %4145 = vst [vmem:[#allocation70_spill] sm:$0xff] %v3008_v57  ;;  %v3012_v17 = vmul.f32 %v2686_v28, %v2981_v62  ;;  %v3016_v58 = vmul.f32 %v2691_v34, %v2983_v1 }
 0x1ec   : > { %v4142_v40 = vld [vmem:[#allocation11_spill] sm:$0xff]  ;;  %4144 = vst [vmem:[#allocation69_spill] sm:$0xff] %v3002_v44  ;;  %v732_v46 = vadd.f32 %v724_v35, %v704_v23  ;;  %v752_v51 = vmul.f32 %v2650_v59, %v2988_v52  ;;  %v1009_v38 = vadd.f32 %v1001_v27, %v981_v24  ;;  %v3022_v44 = vmul.f32 %v2696_v45, %v2990_v60 }
 0x1ed   : > { %v2998_v55 = vmul.f32 %v4142_v40, %v2960_v31  ;;  %4146 = vst [vmem:[#allocation71_spill] sm:$0xff] %v3012_v17  ;;  %4147 = vst [vmem:[#allocation72_spill] sm:$0xff] %v3016_v58  ;;  %v3026_v43 = vmul.f32 %v2701_v53, %v2992_v33  ;;  %v1030_v42 = vmul.f32 %v2706_v63, %v822_v39  ;;  %v3029_v17 = vld [vmem:[#allocation2 + $0x9b] sm:$0xff]  ;;  %v3031_v58 = vld [vmem:[#allocation2 + $0xaf] sm:$0xff] }
 0x1ee   : > { %4148 = vst [vmem:[#allocation73_spill] sm:$0xff] %v3022_v44  ;;  %4150 = vst [vmem:[#allocation75_spill] sm:$0xff] %v3029_v17  ;;  %v1205_v2 = vadd.f32 %v1197_v37, %v1177_v6  ;;  %v760_v23 = vadd.f32 %v752_v51, %v732_v46  ;;  %v780_v27 = vmul.f32 %v2656_v0, %v3008_v57 }
 0x1ef   : > { %4143 = vst [vmem:[#allocation68_spill] sm:$0xff] %v2998_v55  ;;  %4149 = vst [vmem:[#allocation74_spill] sm:$0xff] %v3026_v43  ;;  %v1400_v55 = vadd.f32 %v1392_v3, %v1372_v56  ;;  %v3037_v24 = vmul.f32 %v2711_v9, %v2960_v31  ;;  %v3041_v35 = vmul.f32 %v2724_v11, %v2970_v47 }
 0x1f0   : > { %v3045_v43 = vmul.f32 %v2737_v32, %v2981_v62  ;;  %v677_v6 = vadd.f32 %v669_v50, %v641_v16  ;;  %v1225_v3 = vmul.f32 %v2792_v7, %v822_v39  ;;  %v1421_v56 = vmul.f32 %v2819_v25, %v822_v39 }
 0x1f1   : > { %4151 = vst [vmem:[#allocation76_spill] sm:$0xff] %v3041_v35  ;;  %v788_v37 = vadd.f32 %v780_v27, %v760_v23  ;;  %v808_v51 = vmul.f32 %v2662_v5, %v3029_v17  ;;  %v3053_v46 = vmul.f32 %v2749_v48, %v2983_v1  ;;  %v3057_v44 = vmul.f32 %v2759_v13, %v2990_v60  ;;  %v3065_v23 = vld [vmem:[#allocation2 + $0xb0] sm:$0xff]  ;;  %v3103_v35 = vld [vmem:[#allocation2 + $0xde] sm:$0xff] }
 0x1f2   : > { %4152 = vst [vmem:[#allocation77_spill] sm:$0xff] %v3045_v43  ;;  %v3061_v43 = vmul.f32 %v2771_v26, %v2992_v33  ;;  %v697_v16 = vmul.f32 %v2638_v49, %v3031_v58  ;;  %v1233_v39 = vadd.f32 %v1225_v3, %v1205_v2  ;;  %v1429_v50 = vadd.f32 %v1421_v56, %v1400_v55  ;;  %v3079_v3 = vld [vmem:[#allocation2 + $0xb1] sm:$0xff]  ;;  %v3101_v49 = vld [vmem:[#allocation2 + $0xdd] sm:$0xff] }
 0x1f3   : > { %4153 = vst [vmem:[#allocation78_spill] sm:$0xff] %v3053_v46  ;;  %4154 = vst [vmem:[#allocation79_spill] sm:$0xff] %v3057_v44  ;;  %v816_v27 = vadd.f32 %v808_v51, %v788_v37  ;;  %v837_v17 = vmul.f32 %v2668_v10, %v2972_v61  ;;  %v1253_v46 = vmul.f32 %v2796_v8, %v2960_v31 }
 0x1f4   : > { %4155 = vst [vmem:[#allocation80_spill] sm:$0xff] %v3061_v43  ;;  %v1281_v44 = vmul.f32 %v2800_v14, %v2970_v47  ;;  %v1309_v43 = vmul.f32 %v2804_v18, %v2981_v62  ;;  %v705_v57 = vadd.f32 %v697_v16, %v677_v6  ;;  %v1337_v2 = vmul.f32 %v2807_v19, %v2983_v1  ;;  %v3089_v16 = vld [vmem:[#allocation2 + $0xb2] sm:$0xff] }
 0x1f5   : > { %v1449_v55 = vmul.f32 %v2822_v29, %v2960_v31  ;;  %v845_v56 = vadd.f32 %v837_v17, %v816_v27  ;;  %v865_v37 = vmul.f32 %v4142_v40, %v2974_v41  ;;  %v1365_v51 = vmul.f32 %v2810_v20, %v2990_v60  ;;  %4156 = vst [vmem:[#allocation81_spill] sm:$0xff] %v3089_v16  ;;  %v3091_v19 = vld [vmem:[#allocation2 + $0xb3] sm:$0xff] }
 0x1f6   : > { %v1477_v61 = vmul.f32 %v2825_v30, %v2970_v47  ;;  %v725_v6 = vmul.f32 %v2644_v54, %v3065_v23  ;;  %4157 = vst [vmem:[#allocation82_spill] sm:$0xff] %v3091_v19  ;;  %v893_v31 = vmul.f32 %v2681_v22, %v3031_v58  ;;  %v1261_v27 = vadd.f32 %v1253_v46, %v1233_v39  ;;  %v4158_v41 = vld [vmem:[#allocation19_spill] sm:$0xff] }
 0x1f7   : > { %v873_v17 = vadd.f32 %v865_v37, %v845_v56  ;;  %v1457_v10 = vadd.f32 %v1449_v55, %v1429_v50  ;;  %v560_v40 = vadd.f32 %v2743_v36, %v4158_v41  ;;  %v842_v20 = vadd.f32 %v2986_v4, %v2978_v15  ;;  %4159 = vst [vmem:[#allocation19_spill] sm:$0xff] %v3101_v49  ;;  %v3111_v41 = vld [vmem:[#allocation2 + $0xdf] sm:$0xff] }
 0x1f8   : > { %v1038_v47 = vadd.f32 %v1030_v42, %v1009_v38  ;;  %v733_v52 = vadd.f32 %v725_v6, %v705_v57  ;;  %v753_v54 = vmul.f32 %v2650_v59, %v3079_v3  ;;  %4160 = vst [vmem:[#allocation83_spill] sm:$0xff] %v3103_v35  ;;  %v781_v56 = vmul.f32 %v2656_v0, %v3089_v16  ;;  %v3113_v15 = vld [vmem:[#allocation2 + $0xe0] sm:$0xff]  ;;  %v3140_v6 = vld [vmem:[#allocation2 + $0xf5] sm:$0xff] }
 0x1f9   : > { %v3109_v46 = vmul.f32 %v2662_v5, %v3091_v19  ;;  %v901_v36 = vadd.f32 %v893_v31, %v873_v17  ;;  %4161 = vst [vmem:[#allocation84_spill] sm:$0xff] %v3111_v41  ;;  %4162 = vst [vmem:[#allocation85_spill] sm:$0xff] %v3113_v15  ;;  %v3115_v42 = vld [vmem:[#allocation2 + $0xe1] sm:$0xff]  ;;  %v1289_v38 = vadd.f32 %v1281_v44, %v1261_v27 }
 0x1fa   : > { %4163 = vst [vmem:[#allocation86_spill] sm:$0xff] %v3115_v42  ;;  %612 = vst.msk [vmem:[#allocation2 + $0xc8] sm:$0xff] %vm493_vm1, %v560_v40  ;;  %v921_v4 = vmul.f32 %v2686_v28, %v3065_v23  ;;  %v949_v57 = vmul.f32 %v2691_v34, %v3079_v3  ;;  %v977_v39 = vmul.f32 %v2696_v45, %v3089_v16  ;;  %v3128_v55 = vld [vmem:[#allocation2 + $0xe2] sm:$0xff] }
 0x1fb   : > { %v3126_v50 = vmul.f32 %v2701_v53, %v3091_v19  ;;  %4164 = vst [vmem:[#allocation87_spill] sm:$0xff] %v3128_v55  ;;  %v3132_v37 = vmul.f32 %v2706_v63, %v3101_v49  ;;  %v3136_v40 = vmul.f32 %v2711_v9, %v3103_v35  ;;  %v3138_v44 = vld [vmem:[#allocation2 + $0xe3] sm:$0xff]  ;;  %4166 = vst [vmem:[#allocation89_spill] sm:$0xff] %v3140_v6 }
 0x1fc   : > { %4165 = vst [vmem:[#allocation88_spill] sm:$0xff] %v3138_v44  ;;  %v1485_v31 = vadd.f32 %v1477_v61, %v1457_v10  ;;  %v1317_v17 = vadd.f32 %v1309_v43, %v1289_v38  ;;  %v761_v27 = vadd.f32 %v753_v54, %v733_v52  ;;  %v3144_v5 = vmul.f32 %v2724_v11, %v3111_v41  ;;  %v3158_v10 = vld [vmem:[#allocation2 + $0xf6] sm:$0xff]  ;;  %v4172_v54 = vld [vmem:[#allocation30_spill] sm:$0xff] }
 0x1fd   : > { %v3148_v0 = vmul.f32 %v2737_v32, %v3113_v15  ;;  %v3152_v59 = vmul.f32 %v2749_v48, %v3115_v42  ;;  %v929_v19 = vadd.f32 %v921_v4, %v901_v36  ;;  %v3156_v16 = vmul.f32 %v2759_v13, %v3128_v55  ;;  %4171 = vst [vmem:[#allocation94_spill] sm:$0xff] %v3158_v10  ;;  %v4196_v42 = vld [vmem:[#allocation5_spill] sm:$0xff] }
 0x1fe   : > { %4167 = vst [vmem:[#allocation90_spill] sm:$0xff] %v3144_v5  ;;  %v1345_v43 = vadd.f32 %v1337_v2, %v1317_v17  ;;  %v1505_v61 = vmul.f32 %v4172_v54, %v2981_v62  ;;  %v3164_v52 = vmul.f32 %v2771_v26, %v3138_v44  ;;  %v3168_v38 = vmul.f32 %v2792_v7, %v3101_v49  ;;  %v3178_v2 = vld [vmem:[#allocation2 + $0xf7] sm:$0xff] }
 0x1ff   : > { %4168 = vst [vmem:[#allocation91_spill] sm:$0xff] %v3148_v0  ;;  %4169 = vst [vmem:[#allocation92_spill] sm:$0xff] %v3152_v59  ;;  %v3172_v36 = vmul.f32 %v2792_v7, %v3140_v6  ;;  %v3176_v4 = vmul.f32 %v2796_v8, %v3103_v35  ;;  %v1393_v62 = vmul.f32 %v2816_v12, %v2992_v33  ;;  %v4198_v0 = vld [vmem:[#allocation56_spill] sm:$0xff] }
 0x200   : > { %4170 = vst [vmem:[#allocation93_spill] sm:$0xff] %v3156_v16  ;;  %4173 = vst [vmem:[#allocation95_spill] sm:$0xff] %v3164_v52  ;;  %v1373_v17 = vadd.f32 %v1365_v51, %v1345_v43  ;;  %v1513_v16 = vadd.f32 %v1505_v61, %v1485_v31  ;;  %v4178_v52 = vld [vmem:[#allocation31_spill] sm:$0xff]  ;;  %v789_v49 = vadd.f32 %v781_v56, %v761_v27  ;;  %v3194_v43 = vld [vmem:[#allocation2 + $0xf8] sm:$0xff] }
 0x201   : > { %4174 = vst [vmem:[#allocation96_spill] sm:$0xff] %v3168_v38  ;;  %4175 = vst [vmem:[#allocation97_spill] sm:$0xff] %v3172_v36  ;;  %v1533_v44 = vmul.f32 %v4178_v52, %v2983_v1  ;;  %v3186_v55 = vmul.f32 %v2796_v8, %v3158_v10  ;;  %v3190_v36 = vmul.f32 %v2800_v14, %v3111_v41  ;;  %v4182_v61 = vld [vmem:[#allocation32_spill] sm:$0xff]  ;;  %v3296_v8 = vld [vmem:[#allocation2 + $0xc8] sm:$0xff] }
 0x202   : > { %4176 = vst [vmem:[#allocation98_spill] sm:$0xff] %v3176_v4  ;;  %4177 = vst [vmem:[#allocation99_spill] sm:$0xff] %v3178_v2  ;;  %v1422_v35 = vmul.f32 %v2819_v25, %v2878_v21  ;;  %v957_v51 = vadd.f32 %v949_v57, %v929_v19  ;;  %v1401_v6 = vadd.f32 %v1393_v62, %v1373_v17  ;;  %v4185_v41 = vld [vmem:[#allocation68_spill] sm:$0xff]  ;;  %v4186_v57 = vld [vmem:[#allocation45_spill] sm:$0xff] }
 0x203   : > { %4179 = vst [vmem:[#allocation100_spill] sm:$0xff] %v3186_v55  ;;  %4180 = vst [vmem:[#allocation101_spill] sm:$0xff] %v3190_v36  ;;  %v1541_v31 = vadd.f32 %v1533_v44, %v1513_v16  ;;  %v1561_v1 = vmul.f32 %v4182_v61, %v2990_v60  ;;  %v3200_v56 = vmul.f32 %v2800_v14, %v3178_v2  ;;  %v4187_v44 = vld [vmem:[#allocation33_spill] sm:$0xff]  ;;  %v4190_v2 = vld [vmem:[#allocation4_spill] sm:$0xff] }
 0x204   : > { %4181 = vst [vmem:[#allocation102_spill] sm:$0xff] %v3194_v43  ;;  %v3204_v27 = vmul.f32 %v2804_v18, %v3113_v15  ;;  %v870_v55 = vadd.f32 %v4185_v41, %v842_v20  ;;  %v1066_v10 = vadd.f32 %v3037_v24, %v1038_v47  ;;  %v1430_v19 = vadd.f32 %v1422_v35, %v1401_v6  ;;  %v4191_v41 = vld [vmem:[#allocation46_spill] sm:$0xff] }
 0x205   : > { %4183 = vst [vmem:[#allocation103_spill] sm:$0xff] %v3200_v56  ;;  %v1450_v17 = vmul.f32 %v2822_v29, %v4186_v57  ;;  %v1569_v16 = vadd.f32 %v1561_v1, %v1541_v31  ;;  %v1589_v60 = vmul.f32 %v4187_v44, %v2992_v33  ;;  %v3214_v62 = vmul.f32 %v2804_v18, %v3194_v43  ;;  %v4189_v56 = vld [vmem:[#allocation3_spill] sm:$0xff]  ;;  %v3222_v47 = vld [vmem:[#allocation2 + $0x81] sm:$0xff] }
 0x206   : > { %4184 = vst [vmem:[#allocation104_spill] sm:$0xff] %v3204_v27  ;;  %v639_v15 = vmul.f32 %v2878_v21, %v4189_v56  ;;  %v667_v20 = vmul.f32 %v4186_v57, %v4190_v2  ;;  %v1478_v24 = vmul.f32 %v2825_v30, %v4191_v41  ;;  %v985_v35 = vadd.f32 %v977_v39, %v957_v51  ;;  %v3224_v6 = vld [vmem:[#allocation2 + $0x82] sm:$0xff]  ;;  %v4195_v2 = vld [vmem:[#allocation76_spill] sm:$0xff] }
 0x207   : > { %4188 = vst [vmem:[#allocation68_spill] sm:$0xff] %v3214_v62  ;;  %v3226_v31 = vld [vmem:[#allocation2 + $0x83] sm:$0xff]  ;;  %v1458_v33 = vadd.f32 %v1450_v17, %v1430_v19  ;;  %v1597_v1 = vadd.f32 %v1589_v60, %v1569_v16  ;;  %v817_v56 = vadd.f32 %v3109_v46, %v789_v49  ;;  %v1094_v36 = vadd.f32 %v4195_v2, %v1066_v10  ;;  %v4199_v19 = vld [vmem:[#allocation35_spill] sm:$0xff] }
 0x208   : > { %4192 = vst [vmem:[#allocation45_spill] sm:$0xff] %v3226_v31  ;;  %v4193_v62 = vld [vmem:[#allocation34_spill] sm:$0xff]  ;;  %v4194_v27 = vld [vmem:[#allocation69_spill] sm:$0xff]  ;;  %v3235_v39 = vmul.f32 %v4191_v41, %v4196_v42  ;;  %v1506_v18 = vmul.f32 %v4172_v54, %v4198_v0  ;;  %v1646_v17 = vmul.f32 %v4199_v19, %v4186_v57  ;;  %v3241_v16 = vadd.f32 %v667_v20, %v639_v15  ;;  %v4202_v60 = vld [vmem:[#allocation55_spill] sm:$0xff] }
 0x209   : > { %v1618_v43 = vmul.f32 %v4193_v62, %v2878_v21  ;;  %v898_v59 = vadd.f32 %v4194_v27, %v870_v55  ;;  %v1486_v51 = vadd.f32 %v1478_v24, %v1458_v33  ;;  %v1534_v49 = vmul.f32 %v4178_v52, %v3222_v47  ;;  %v4203_v57 = vld [vmem:[#allocation58_spill] sm:$0xff]  ;;  %v4204_v24 = vld [vmem:[#allocation59_spill] sm:$0xff] }
 0x20a   : > { %4197 = vst [vmem:[#allocation46_spill] sm:$0xff] %v3235_v39  ;;  %4200 = vst [vmem:[#allocation69_spill] sm:$0xff] %v3241_v16  ;;  %v1562_v21 = vmul.f32 %v4182_v61, %v3224_v6  ;;  %v1590_v46 = vmul.f32 %v4187_v44, %v3226_v31  ;;  %v1013_v55 = vadd.f32 %v3126_v50, %v985_v35  ;;  %v3260_v44 = vld [vmem:[#allocation2 + $0xc5] sm:$0xff]  ;;  %v4214_v16 = vld [vmem:[#allocation75_spill] sm:$0xff] }
 0x20b   : > { %v1626_v4 = vadd.f32 %v1618_v43, %v1597_v1  ;;  %v1514_v10 = vadd.f32 %v1506_v18, %v1486_v51  ;;  %v4201_v43 = vld [vmem:[#allocation36_spill] sm:$0xff]  ;;  %v1619_v15 = vmul.f32 %v4193_v62, %v4202_v60  ;;  %v1647_v20 = vmul.f32 %v4199_v19, %v4203_v57  ;;  %v4205_v1 = vld [vmem:[#allocation37_spill] sm:$0xff]  ;;  %4206 = vst [vmem:[#allocation76_spill] sm:$0xff] %v3260_v44  ;;  %v4209_v62 = vld [vmem:[#allocation67_spill] sm:$0xff] }
 0x20c   : > { %v1674_v27 = vmul.f32 %v4201_v43, %v4191_v41  ;;  %v1675_v33 = vmul.f32 %v4201_v43, %v4204_v24  ;;  %v1702_v42 = vmul.f32 %v4205_v1, %v4198_v0  ;;  %v4208_v41 = vld [vmem:[#allocation38_spill] sm:$0xff] }
 0x20d   : > { %v1654_v2 = vadd.f32 %v1646_v17, %v1626_v4  ;;  %v1542_v50 = vadd.f32 %v1534_v49, %v1514_v10  ;;  %v4207_v4 = vld [vmem:[#allocation63_spill] sm:$0xff]  ;;  %v1730_v51 = vmul.f32 %v4208_v41, %v3222_v47  ;;  %v3266_v17 = vld [vmem:[#allocation2 + $0xc6] sm:$0xff]  ;;  %v1731_v19 = vmul.f32 %v4208_v41, %v4209_v62  ;;  %v4215_v41 = vld [vmem:[#allocation44_spill] sm:$0xff] }
 0x20e   : > { %v1703_v35 = vmul.f32 %v4205_v1, %v4207_v4  ;;  %v4210_v43 = vld [vmem:[#allocation42_spill] sm:$0xff]  ;;  %v4212_v49 = vld [vmem:[#allocation71_spill] sm:$0xff]  ;;  %v1815_v14 = vmul.f32 %v4215_v41, %v4202_v60  ;;  %v1062_v38 = vmul.f32 %v2711_v9, %v3266_v17 }
 0x20f   : > { %v1682_v18 = vadd.f32 %v1674_v27, %v1654_v2  ;;  %v1758_v61 = vmul.f32 %v4210_v43, %v3224_v6  ;;  %v4211_v52 = vld [vmem:[#allocation70_spill] sm:$0xff]  ;;  %v926_v10 = vadd.f32 %v4212_v49, %v898_v59  ;;  %v1570_v2 = vadd.f32 %v1562_v21, %v1542_v50  ;;  %v4213_v1 = vld [vmem:[#allocation43_spill] sm:$0xff]  ;;  %v4217_v21 = vld [vmem:[#allocation77_spill] sm:$0xff] }
 0x210   : > { %v3274_v0 = vmul.f32 %v4210_v43, %v4211_v52  ;;  %v1786_v39 = vmul.f32 %v4213_v1, %v3226_v31  ;;  %v3281_v54 = vmul.f32 %v4213_v1, %v4214_v16  ;;  %v3283_v30 = vld [vmem:[#allocation2 + $0xc7] sm:$0xff]  ;;  %v1034_v59 = vmul.f32 %v2706_v63, %v3260_v44  ;;  %v4218_v49 = vld [vmem:[#allocation47_spill] sm:$0xff] }
 0x211   : > { %v1710_v27 = vadd.f32 %v1702_v42, %v1682_v18  ;;  %v4216_v29 = vld [vmem:[#allocation10_spill] sm:$0xff]  ;;  %v1122_v42 = vadd.f32 %v4217_v21, %v1094_v36  ;;  %v1598_v50 = vadd.f32 %v1590_v46, %v1570_v2  ;;  %v1843_v5 = vmul.f32 %v4218_v49, %v4203_v57  ;;  %v4219_v1 = vld [vmem:[#allocation11_spill] sm:$0xff] }
 0x212   : > { %v838_v43 = vmul.f32 %v4216_v29, %v3260_v44  ;;  %v866_v16 = vmul.f32 %v4219_v1, %v3266_v17  ;;  %v4220_v29 = vld [vmem:[#allocation72_spill] sm:$0xff]  ;;  %v1042_v7 = vadd.f32 %v1034_v59, %v1013_v55  ;;  %v894_v36 = vmul.f32 %v2681_v22, %v3283_v30  ;;  %v4221_v46 = vld [vmem:[#allocation78_spill] sm:$0xff]  ;;  %v4222_v1 = vld [vmem:[#allocation73_spill] sm:$0xff] }
 0x213   : > { %v1738_v18 = vadd.f32 %v1730_v51, %v1710_v27  ;;  %v954_v25 = vadd.f32 %v4220_v29, %v926_v10  ;;  %v1627_v63 = vadd.f32 %v1619_v15, %v1598_v50  ;;  %v1150_v51 = vadd.f32 %v4221_v46, %v1122_v42  ;;  %v3304_v2 = vld [vmem:[#allocation2 + $0xc9] sm:$0xff] }
 0x214   : > { %v846_v52 = vadd.f32 %v838_v43, %v817_v56  ;;  %v1090_v27 = vmul.f32 %v2724_v11, %v3283_v30  ;;  %v1070_v9 = vadd.f32 %v1062_v38, %v1042_v7  ;;  %v922_v29 = vmul.f32 %v2686_v28, %v3296_v8  ;;  %v4224_v59 = vld [vmem:[#allocation74_spill] sm:$0xff]  ;;  %v4225_v7 = vld [vmem:[#allocation80_spill] sm:$0xff] }
 0x215   : > { %v1766_v44 = vadd.f32 %v1758_v61, %v1738_v18  ;;  %v982_v57 = vadd.f32 %v4222_v1, %v954_v25  ;;  %v1655_v56 = vadd.f32 %v1647_v20, %v1627_v63  ;;  %v4223_v61 = vld [vmem:[#allocation79_spill] sm:$0xff]  ;;  %v1118_v15 = vmul.f32 %v2737_v32, %v3296_v8 }
 0x216   : > { %v874_v21 = vadd.f32 %v866_v16, %v846_v52  ;;  %v1178_v55 = vadd.f32 %v4223_v61, %v1150_v51  ;;  %v1098_v50 = vadd.f32 %v1090_v27, %v1070_v9  ;;  %v3315_v18 = vld [vmem:[#allocation2 + $0xca] sm:$0xff]  ;;  %v950_v63 = vmul.f32 %v2691_v34, %v3304_v2  ;;  %v4227_v9 = vld [vmem:[#allocation65_spill] sm:$0xff] }
 0x217   : > { %v1794_v43 = vadd.f32 %v1786_v39, %v1766_v44  ;;  %v1010_v42 = vadd.f32 %v4224_v59, %v982_v57  ;;  %v1683_v52 = vadd.f32 %v1675_v33, %v1655_v56  ;;  %v1146_v38 = vmul.f32 %v2749_v48, %v3304_v2  ;;  %v4226_v39 = vld [vmem:[#allocation51_spill] sm:$0xff]  ;;  %v4229_v56 = vld [vmem:[#allocation53_spill] sm:$0xff] }
 0x218   : > { %v902_v10 = vadd.f32 %v894_v36, %v874_v21  ;;  %v1206_v25 = vadd.f32 %v4225_v7, %v1178_v55  ;;  %v1126_v1 = vadd.f32 %v1118_v15, %v1098_v50  ;;  %v3323_v36 = vld [vmem:[#allocation2 + $0xcb] sm:$0xff]  ;;  %v1816_v46 = vmul.f32 %v4215_v41, %v4227_v9  ;;  %v4232_v59 = vld [vmem:[#allocation61_spill] sm:$0xff] }
 0x219   : > { %v1823_v16 = vadd.f32 %v1815_v14, %v1794_v43  ;;  %v1039_v20 = vadd.f32 %v4226_v39, %v1010_v42  ;;  %v1711_v57 = vadd.f32 %v1703_v35, %v1683_v52  ;;  %v4228_v14 = vld [vmem:[#allocation57_spill] sm:$0xff]  ;;  %v978_v27 = vmul.f32 %v2696_v45, %v3315_v18  ;;  %v4230_v55 = vld [vmem:[#allocation66_spill] sm:$0xff] }
 0x21a   : > { %v930_v44 = vadd.f32 %v922_v29, %v902_v10  ;;  %v1234_v51 = vadd.f32 %v4228_v14, %v1206_v25  ;;  %v1154_v61 = vadd.f32 %v1146_v38, %v1126_v1  ;;  %v1844_v15 = vmul.f32 %v4218_v49, %v4230_v55  ;;  %v4231_v10 = vld [vmem:[#allocation48_spill] sm:$0xff]  ;;  %v4234_v38 = vld [vmem:[#allocation62_spill] sm:$0xff] }
 0x21b   : > { %v1851_v33 = vadd.f32 %v1843_v5, %v1823_v16  ;;  %v1067_v43 = vadd.f32 %v4229_v56, %v1039_v20  ;;  %v1739_v29 = vadd.f32 %v1731_v19, %v1711_v57  ;;  %v1871_v35 = vmul.f32 %v4231_v10, %v4204_v24  ;;  %v4233_v16 = vld [vmem:[#allocation54_spill] sm:$0xff]  ;;  %v4235_v20 = vld [vmem:[#allocation60_spill] sm:$0xff] }
 0x21c   : > { %v958_v21 = vadd.f32 %v950_v63, %v930_v44  ;;  %v1262_v42 = vadd.f32 %v4232_v59, %v1234_v51  ;;  %v1006_v5 = vmul.f32 %v2701_v53, %v3323_v36  ;;  %v1174_v50 = vmul.f32 %v2759_v13, %v3315_v18  ;;  %v4237_v56 = vld [vmem:[#allocation64_spill] sm:$0xff] }
 0x21d   : > { %v1095_v63 = vadd.f32 %v4233_v16, %v1067_v43  ;;  %v1767_v7 = vadd.f32 %v3274_v0, %v1739_v29  ;;  %v1872_v19 = vmul.f32 %v4231_v10, %v3031_v58  ;;  %v1879_v25 = vadd.f32 %v1871_v35, %v1851_v33  ;;  %v4238_v43 = vld [vmem:[#allocation24_spill] sm:$0xff]  ;;  %v4240_v16 = vld [vmem:[#allocation50_spill] sm:$0xff] }
 0x21e   : > { %v986_v52 = vadd.f32 %v978_v27, %v958_v21  ;;  %v1290_v44 = vadd.f32 %v4234_v38, %v1262_v42  ;;  %v1182_v57 = vadd.f32 %v1174_v50, %v1154_v61  ;;  %v1143_v14 = vmul.f32 %v2749_v48, %v3222_v47  ;;  %v4236_v27 = vld [vmem:[#allocation49_spill] sm:$0xff] }
 0x21f   : > { %v1123_v1 = vadd.f32 %v4235_v20, %v1095_v63  ;;  %v1795_v51 = vadd.f32 %v3281_v54, %v1767_v7  ;;  %v1899_v21 = vmul.f32 %v4236_v27, %v4207_v4  ;;  %v1338_v29 = vmul.f32 %v4238_v43, %v3222_v47  ;;  %v4239_v50 = vld [vmem:[#allocation25_spill] sm:$0xff] }
 0x220   : > { %v1014_v39 = vadd.f32 %v1006_v5, %v986_v52  ;;  %v1318_v0 = vadd.f32 %v4237_v56, %v1290_v44  ;;  %v1202_v33 = vmul.f32 %v2771_v26, %v3323_v36  ;;  %v1171_v61 = vmul.f32 %v2759_v13, %v3224_v6 }
 0x221   : > { %v1151_v59 = vadd.f32 %v1143_v14, %v1123_v1  ;;  %v1824_v42 = vadd.f32 %v1816_v46, %v1795_v51  ;;  %v1907_v5 = vadd.f32 %v1899_v21, %v1879_v25  ;;  %v1366_v52 = vmul.f32 %v4239_v50, %v3224_v6 }
 0x222   : > { %v1043_v35 = vadd.f32 %v3132_v37, %v1014_v39  ;;  %v1346_v54 = vadd.f32 %v1338_v29, %v1318_v0  ;;  %v1927_v63 = vmul.f32 %v4240_v16, %v4209_v62  ;;  %v1210_v7 = vadd.f32 %v1202_v33, %v1182_v57  ;;  %v4241_v57 = vld [vmem:[#allocation20_spill] sm:$0xff]  ;;  %v4243_v0 = vld [vmem:[#allocation27_spill] sm:$0xff]  ;;  %v4244_v33 = vld [vmem:[#allocation70_spill] sm:$0xff] }
 0x223   : > { %v1179_v38 = vadd.f32 %v1171_v61, %v1151_v59  ;;  %v1199_v44 = vmul.f32 %v2771_v26, %v3226_v31  ;;  %v1852_v20 = vadd.f32 %v1844_v15, %v1824_v42  ;;  %v1394_v46 = vmul.f32 %v2816_v12, %v3226_v31  ;;  %v3377_v15 = vld [vmem:[%s3924_s5 + $0x30] ss:$0 sm:$0xff]  ;;  %v4246_v61 = vld [vmem:[#allocation96_spill] sm:$0xff]  ;;  %v4249_v26 = vld [vmem:[#allocation90_spill] sm:$0xff] }
 0x224   : > { %v1071_v37 = vadd.f32 %v3136_v40, %v1043_v35  ;;  %v1374_v39 = vadd.f32 %v1366_v52, %v1346_v54  ;;  %v1900_v25 = vmul.f32 %v4236_v27, %v3065_v23  ;;  %v1928_v1 = vmul.f32 %v4240_v16, %v3079_v3  ;;  %4242 = vst [vmem:[#allocation55_spill] sm:$0xff] %v3377_v15  ;;  %v4245_v35 = vld [vmem:[#allocation52_spill] sm:$0xff]  ;;  %v4247_v52 = vld [vmem:[#allocation58_spill] sm:$0xff] }
 0x225   : > { %v1207_v14 = vadd.f32 %v1199_v44, %v1179_v38  ;;  %v1227_v51 = vmul.f32 %v4241_v57, %v4202_v60  ;;  %v1880_v40 = vadd.f32 %v1872_v19, %v1852_v20  ;;  %v1935_v21 = vadd.f32 %v1927_v63, %v1907_v5  ;;  %v4248_v38 = vld [vmem:[#allocation21_spill] sm:$0xff]  ;;  %v4250_v19 = vld [vmem:[#allocation28_spill] sm:$0xff] }
 0x226   : > { %v1402_v56 = vadd.f32 %v1394_v46, %v1374_v39  ;;  %v1423_v29 = vmul.f32 %v4243_v0, %v4202_v60  ;;  %v1955_v59 = vmul.f32 %v4245_v35, %v4244_v33  ;;  %v1238_v42 = vadd.f32 %v4246_v61, %v1210_v7  ;;  %v4251_v63 = vld [vmem:[#allocation81_spill] sm:$0xff]  ;;  %v4252_v60 = vld [vmem:[#allocation75_spill] sm:$0xff]  ;;  %v4253_v7 = vld [vmem:[#allocation22_spill] sm:$0xff] }
 0x227   : > { %v1235_v54 = vadd.f32 %v1227_v51, %v1207_v14  ;;  %v1255_v44 = vmul.f32 %v4248_v38, %v4247_v52  ;;  %v1908_v57 = vadd.f32 %v1900_v25, %v1880_v40  ;;  %v1099_v13 = vadd.f32 %v4249_v26, %v1071_v37  ;;  %v4254_v25 = vld [vmem:[#allocation29_spill] sm:$0xff]  ;;  %v4255_v37 = vld [vmem:[#allocation82_spill] sm:$0xff] }
 0x228   : > { %v1431_v48 = vadd.f32 %v1423_v29, %v1402_v56  ;;  %v1451_v5 = vmul.f32 %v4250_v19, %v4247_v52  ;;  %v1956_v20 = vmul.f32 %v4245_v35, %v4251_v63  ;;  %v1983_v39 = vmul.f32 %v3377_v15, %v4252_v60  ;;  %v4256_v56 = vld [vmem:[#allocation98_spill] sm:$0xff]  ;;  %v4257_v35 = vld [vmem:[#allocation23_spill] sm:$0xff] }
 0x229   : > { %v1263_v46 = vadd.f32 %v1255_v44, %v1235_v54  ;;  %v1283_v14 = vmul.f32 %v4253_v7, %v4204_v24  ;;  %v1936_v51 = vadd.f32 %v1928_v1, %v1908_v57  ;;  %v1963_v61 = vadd.f32 %v1955_v59, %v1935_v21  ;;  %v4258_v54 = vld [vmem:[#allocation91_spill] sm:$0xff]  ;;  %v4259_v1 = vld [vmem:[#allocation30_spill] sm:$0xff] }
 0x22a   : > { %v1459_v38 = vadd.f32 %v1451_v5, %v1431_v48  ;;  %v1479_v26 = vmul.f32 %v4254_v25, %v4204_v24  ;;  %v1984_v40 = vmul.f32 %v3377_v15, %v4255_v37  ;;  %v1266_v29 = vadd.f32 %v4256_v56, %v1238_v42  ;;  %v4260_v48 = vld [vmem:[#allocation86_spill] sm:$0xff]  ;;  %v4261_v24 = vld [vmem:[#allocation69_spill] sm:$0xff]  ;;  %v4267_v56 = vld [vmem:[#allocation56_spill] sm:$0xff] }
 0x22b   : > { %v1291_v52 = vadd.f32 %v1283_v14, %v1263_v46  ;;  %v1311_v32 = vmul.f32 %v4257_v35, %v4207_v4  ;;  %v1964_v16 = vadd.f32 %v1956_v20, %v1936_v51  ;;  %v1127_v44 = vadd.f32 %v4258_v54, %v1099_v13  ;;  %v4262_v59 = vld [vmem:[#allocation46_spill] sm:$0xff]  ;;  %v3411_v46 = vld [vmem:[#allocation2 + $0xf9] sm:$0xff]  ;;  %v4264_v13 = vld [vmem:[#allocation31_spill] sm:$0xff] }
 0x22c   : > { %v1487_v11 = vadd.f32 %v1479_v26, %v1459_v38  ;;  %v1507_v57 = vmul.f32 %v4259_v1, %v4207_v4  ;;  %v1342_v21 = vmul.f32 %v4238_v43, %v4260_v48  ;;  %v703_v5 = vadd.f32 %v4262_v59, %v4261_v24  ;;  %4263 = vst [vmem:[#allocation59_spill] sm:$0xff] %v3411_v46  ;;  %v3415_v26 = vld [vmem:[#allocation2 + $0xfa] sm:$0xff]  ;;  %v4266_v4 = vld [vmem:[#allocation6_spill] sm:$0xff] }
 0x22d   : > { %v1319_v7 = vadd.f32 %v1311_v32, %v1291_v52  ;;  %v1339_v42 = vmul.f32 %v4238_v43, %v4209_v62  ;;  %v1991_v14 = vadd.f32 %v1983_v39, %v1963_v61  ;;  %v1992_v20 = vadd.f32 %v1984_v40, %v1964_v16  ;;  %4265 = vst [vmem:[#allocation63_spill] sm:$0xff] %v3415_v26  ;;  %v4268_v35 = vld [vmem:[#allocation101_spill] sm:$0xff]  ;;  %v4269_v59 = vld [vmem:[#allocation92_spill] sm:$0xff]  ;;  %v4271_v61 = vld [vmem:[#allocation87_spill] sm:$0xff] }
 0x22e   : > { %v1515_v51 = vadd.f32 %v1507_v57, %v1487_v11  ;;  %v1535_v38 = vmul.f32 %v4264_v13, %v4209_v62  ;;  %v723_v54 = vmul.f32 %v4267_v56, %v4266_v4  ;;  %v1294_v15 = vadd.f32 %v4268_v35, %v1266_v29  ;;  %v4270_v11 = vld [vmem:[#allocation32_spill] sm:$0xff] }
 0x22f   : > { %v1347_v24 = vadd.f32 %v1339_v42, %v1319_v7  ;;  %v1367_v32 = vmul.f32 %v4239_v50, %v4244_v33  ;;  %v1999_v52 = vpack.c.bf16 %v1992_v20, %v1991_v14  ;;  %v1155_v48 = vadd.f32 %v4269_v59, %v1127_v44  ;;  %v3437_v29 = vld [vmem:[#allocation2 + $0xfb] sm:$0xff] }
 0x230   : > { %v1543_v39 = vadd.f32 %v1535_v38, %v1515_v51  ;;  %v1563_v16 = vmul.f32 %v4270_v11, %v4244_v33  ;;  %v3427_v62 = vmul.f32 %v4238_v43, %v3411_v46  ;;  %v1370_v40 = vmul.f32 %v4239_v50, %v4271_v61  ;;  %4272 = vst [vmem:[#allocation67_spill] sm:$0xff] %v3437_v29  ;;  %v4273_v42 = vld [vmem:[#allocation33_spill] sm:$0xff]  ;;  %v4274_v20 = vld [vmem:[#allocation88_spill] sm:$0xff]  ;;  %v4275_v38 = vld [vmem:[#allocation7_spill] sm:$0xff] }
 0x231   : > { %v1375_v57 = vadd.f32 %v1367_v32, %v1347_v24  ;;  %v1395_v35 = vmul.f32 %v2816_v12, %v4252_v60  ;;  %v3435_v7 = vmul.f32 %v4239_v50, %v3415_v26  ;;  %v731_v44 = vadd.f32 %v723_v54, %v703_v5  ;;  %2432 = vmatprep.mubr.msk.bf16.mxu0 %vm493_vm1, %v1999_v52  ;;  %v4276_v59 = vld [vmem:[#allocation93_spill] sm:$0xff]  ;;  %v4277_v5 = vld [vmem:[#allocation104_spill] sm:$0xff] }
 0x232   : > { %v1571_v33 = vadd.f32 %v1563_v16, %v1543_v39  ;;  %v1591_v14 = vmul.f32 %v4273_v42, %v4252_v60  ;;  %v3444_v51 = vmul.f32 %v2816_v12, %v4274_v20  ;;  %v751_v56 = vmul.f32 %v4275_v38, %v3222_v47  ;;  %v4278_v39 = vld [vmem:[#allocation34_spill] sm:$0xff]  ;;  %v4280_v43 = vld [vmem:[#allocation89_spill] sm:$0xff] }
 0x233   : > { %v1403_v24 = vadd.f32 %v1395_v35, %v1375_v57  ;;  %v1424_v32 = vmul.f32 %v4243_v0, %v4227_v9  ;;  %v1183_v50 = vadd.f32 %v4276_v59, %v1155_v48  ;;  %v1322_v54 = vadd.f32 %v4277_v5, %v1294_v15  ;;  %v4281_v20 = vld [vmem:[#allocation94_spill] sm:$0xff]  ;;  %v4283_v59 = vld [vmem:[#allocation99_spill] sm:$0xff]  ;;  %v4290_v46 = vld [vmem:[#allocation9_spill] sm:$0xff] }
 0x234   : > { %v1599_v52 = vadd.f32 %v1591_v14, %v1571_v33  ;;  %v1620_v16 = vmul.f32 %v4278_v39, %v4227_v9  ;;  %v3456_v60 = vmul.f32 %v2816_v12, %v3437_v29  ;;  %v3460_v26 = vmul.f32 %v4243_v0, %v4280_v43  ;;  %v4282_v9 = vld [vmem:[#allocation35_spill] sm:$0xff]  ;;  %v4285_v43 = vld [vmem:[#allocation8_spill] sm:$0xff] }
 0x235   : > { %v1432_v57 = vadd.f32 %v1424_v32, %v1403_v24  ;;  %v1452_v35 = vmul.f32 %v4250_v19, %v4230_v55  ;;  %v3466_v48 = vmul.f32 %v4250_v19, %v4281_v20  ;;  %v759_v15 = vadd.f32 %v751_v56, %v731_v44  ;;  %v4286_v12 = vld [vmem:[#allocation95_spill] sm:$0xff]  ;;  %v4287_v44 = vld [vmem:[#allocation36_spill] sm:$0xff] }
 0x236   : > { %4279 = vst [vmem:[#allocation71_spill] sm:$0xff] %v3456_v60  ;;  %v1628_v33 = vadd.f32 %v1620_v16, %v1599_v52  ;;  %v1648_v14 = vmul.f32 %v4282_v9, %v4230_v55  ;;  %v3472_v5 = vmul.f32 %v4254_v25, %v4283_v59  ;;  %v779_v0 = vmul.f32 %v4285_v43, %v3224_v6  ;;  %v626_v52 = vld [vmem:[#allocation2 + $0x65] sm:$0xff]  ;;  %v4293_v60 = vld [vmem:[#allocation4_spill] sm:$0xff] }
 0x237   : > { %v1460_v24 = vadd.f32 %v1452_v35, %v1432_v57  ;;  %v1480_v32 = vmul.f32 %v4254_v25, %v3031_v58  ;;  %v1211_v29 = vadd.f32 %v4286_v12, %v1183_v50  ;;  %v1350_v20 = vadd.f32 %v1342_v21, %v1322_v54  ;;  %v654_v55 = vld [vmem:[#allocation2 + $0x66] sm:$0xff] }
 0x238   : > { %4284 = vst [vmem:[#allocation44_spill] sm:$0xff] %v3472_v5  ;;  %v1656_v19 = vadd.f32 %v1648_v14, %v1628_v33  ;;  %v1676_v56 = vmul.f32 %v4287_v44, %v3031_v58  ;;  %v4288_v16 = vld [vmem:[#allocation102_spill] sm:$0xff]  ;;  %v807_v61 = vmul.f32 %v4290_v46, %v3226_v31  ;;  %v1508_v35 = vmul.f32 %v4259_v1, %v3065_v23  ;;  %v4291_v58 = vld [vmem:[#allocation37_spill] sm:$0xff] }
 0x239   : > { %v3483_v59 = vmul.f32 %v4259_v1, %v4288_v16  ;;  %v1488_v57 = vadd.f32 %v1480_v32, %v1460_v24  ;;  %v787_v25 = vadd.f32 %v779_v0, %v759_v15  ;;  %v1536_v12 = vmul.f32 %v4264_v13, %v3079_v3  ;;  %v682_v54 = vld [vmem:[#allocation2 + $0x67] sm:$0xff]  ;;  %v4292_v16 = vld [vmem:[#allocation3_spill] sm:$0xff] }
 0x23a   : > { %v1684_v50 = vadd.f32 %v1676_v56, %v1656_v19  ;;  %v1704_v21 = vmul.f32 %v4291_v58, %v3065_v23  ;;  %v1564_v14 = vmul.f32 %v4270_v11, %v4251_v63  ;;  %v666_v24 = vmul.f32 %v4293_v60, %v654_v55  ;;  %v4294_v32 = vld [vmem:[#allocation97_spill] sm:$0xff]  ;;  %v4295_v15 = vld [vmem:[#allocation38_spill] sm:$0xff]  ;;  %v3500_v56 = vld [vmem:[#allocation2 + $0x95] sm:$0xff] }
 0x23b   : > { %4289 = vst [vmem:[#allocation77_spill] sm:$0xff] %v3483_v59  ;;  %v1516_v33 = vadd.f32 %v1508_v35, %v1488_v57  ;;  %v638_v59 = vmul.f32 %v4292_v16, %v626_v52  ;;  %v1239_v31 = vadd.f32 %v4294_v32, %v1211_v29  ;;  %v1378_v1 = vadd.f32 %v1370_v40, %v1350_v20  ;;  %v710_v19 = vld [vmem:[#allocation2 + $0x68] sm:$0xff]  ;;  %v4296_v11 = vld [vmem:[#allocation5_spill] sm:$0xff]  ;;  %v4297_v16 = vld [vmem:[#allocation76_spill] sm:$0xff] }
 0x23c   : > { %v1712_v0 = vadd.f32 %v1704_v21, %v1684_v50  ;;  %v1732_v13 = vmul.f32 %v4295_v15, %v3079_v3  ;;  %v1592_v57 = vmul.f32 %v4273_v42, %v4255_v37  ;;  %v694_v5 = vmul.f32 %v4296_v11, %v682_v54  ;;  %v738_v52 = vld [vmem:[#allocation2 + $0x69] sm:$0xff]  ;;  %v3509_v3 = vld [vmem:[#allocation2 + $0x96] sm:$0xff] }
 0x23d   : > { %v1544_v23 = vadd.f32 %v1536_v12, %v1516_v33  ;;  %v674_v35 = vadd.f32 %v666_v24, %v638_v59  ;;  %v1621_v60 = vmul.f32 %v4278_v39, %v4297_v16  ;;  %v4298_v40 = vld [vmem:[#allocation42_spill] sm:$0xff]  ;;  %v815_v55 = vadd.f32 %v807_v61, %v787_v25  ;;  %v4300_v11 = vld [vmem:[#allocation100_spill] sm:$0xff]  ;;  %v4301_v39 = vld [vmem:[#allocation43_spill] sm:$0xff] }
 0x23e   : > { %v1740_v29 = vadd.f32 %v1732_v13, %v1712_v0  ;;  %v1760_v20 = vmul.f32 %v4298_v40, %v4251_v63  ;;  %v722_v12 = vmul.f32 %v4266_v4, %v710_v19  ;;  %v766_v33 = vld [vmem:[#allocation2 + $0x6a] sm:$0xff]  ;;  %v1267_v54 = vadd.f32 %v4300_v11, %v1239_v31  ;;  %v3518_v63 = vld [vmem:[#allocation2 + $0x97] sm:$0xff] }
 0x23f   : > { %v1572_v50 = vadd.f32 %v1564_v14, %v1544_v23  ;;  %v702_v21 = vadd.f32 %v694_v5, %v674_v35  ;;  %v4299_v59 = vld [vmem:[#allocation10_spill] sm:$0xff]  ;;  %v1788_v13 = vmul.f32 %v4301_v39, %v4255_v37  ;;  %v750_v0 = vmul.f32 %v4275_v38, %v738_v52  ;;  %v4302_v4 = vld [vmem:[#allocation11_spill] sm:$0xff]  ;;  %v3522_v23 = vld [vmem:[#allocation2 + $0x98] sm:$0xff] }
 0x240   : > { %v836_v24 = vmul.f32 %v4299_v59, %v3500_v56  ;;  %v1768_v32 = vadd.f32 %v1760_v20, %v1740_v29  ;;  %v794_v14 = vld [vmem:[#allocation2 + $0x6b] sm:$0xff]  ;;  %v864_v19 = vmul.f32 %v4302_v4, %v3509_v3  ;;  %v1649_v31 = vmul.f32 %v4282_v9, %v3266_v17 }
 0x241   : > { %v1600_v25 = vadd.f32 %v1592_v57, %v1572_v50  ;;  %v730_v61 = vadd.f32 %v722_v12, %v702_v21  ;;  %v1817_v37 = vmul.f32 %v4215_v41, %v4297_v16  ;;  %v778_v38 = vmul.f32 %v4285_v43, %v766_v33  ;;  %v823_v57 = vld [vmem:[#allocation2 + $0x7d] sm:$0xff]  ;;  %v4303_v50 = vld [vmem:[#allocation103_spill] sm:$0xff] }
 0x242   : > { %v844_v5 = vadd.f32 %v836_v24, %v815_v55  ;;  %v1796_v35 = vadd.f32 %v1788_v13, %v1768_v32  ;;  %v892_v55 = vmul.f32 %v2681_v22, %v3518_v63  ;;  %v1295_v21 = vadd.f32 %v4303_v50, %v1267_v54  ;;  %v3537_v16 = vld [vmem:[#allocation2 + $0x99] sm:$0xff]  ;;  %v3557_v50 = vld [vmem:[#allocation2 + $0xad] sm:$0xff] }
 0x243   : > { %v1629_v52 = vadd.f32 %v1621_v60, %v1600_v25  ;;  %v758_v29 = vadd.f32 %v750_v0, %v730_v61  ;;  %v1677_v12 = vmul.f32 %v4287_v44, %v3283_v30  ;;  %v806_v24 = vmul.f32 %v4290_v46, %v794_v14  ;;  %v851_v32 = vld [vmem:[#allocation2 + $0x7e] sm:$0xff] }
 0x244   : > { %v872_v20 = vadd.f32 %v864_v19, %v844_v5  ;;  %v920_v11 = vmul.f32 %v2686_v28, %v3522_v23  ;;  %v1825_v60 = vadd.f32 %v1817_v37, %v1796_v35  ;;  %v3539_v0 = vld [vmem:[#allocation2 + $0x9a] sm:$0xff]  ;;  %v1406_v25 = vadd.f32 %v3444_v51, %v1378_v1 }
 0x245   : > { %v1657_v43 = vadd.f32 %v1649_v31, %v1629_v52  ;;  %v786_v33 = vadd.f32 %v778_v38, %v758_v29  ;;  %v1705_v54 = vmul.f32 %v4291_v58, %v3296_v8  ;;  %v1845_v46 = vmul.f32 %v4218_v49, %v3266_v17  ;;  %v879_v19 = vld [vmem:[#allocation2 + $0x7f] sm:$0xff] }
 0x246   : > { %v900_v13 = vadd.f32 %v892_v55, %v872_v20  ;;  %v835_v61 = vmul.f32 %v4299_v59, %v823_v57  ;;  %v948_v35 = vmul.f32 %v2691_v34, %v3537_v16  ;;  %v4304_v37 = vld [vmem:[#allocation68_spill] sm:$0xff]  ;;  %v1733_v1 = vmul.f32 %v4295_v15, %v3304_v2  ;;  %v907_v20 = vld [vmem:[#allocation2 + $0x80] sm:$0xff] }
 0x247   : > { %v1685_v14 = vadd.f32 %v1677_v12, %v1657_v43  ;;  %v814_v5 = vadd.f32 %v806_v24, %v786_v33  ;;  %v1323_v38 = vadd.f32 %v4304_v37, %v1295_v21  ;;  %v863_v51 = vmul.f32 %v4302_v4, %v851_v32  ;;  %v3555_v17 = vld [vmem:[#allocation2 + $0x9b] sm:$0xff] }
 0x248   : > { %v928_v31 = vadd.f32 %v920_v11, %v900_v13  ;;  %v976_v52 = vmul.f32 %v2696_v45, %v3539_v0  ;;  %v1853_v29 = vadd.f32 %v1845_v46, %v1825_v60  ;;  %v1435_v12 = vadd.f32 %v3460_v26, %v1406_v25  ;;  %v4305_v25 = vld [vmem:[#allocation12_spill] sm:$0xff]  ;;  %v3573_v46 = vld [vmem:[#allocation2 + $0xae] sm:$0xff] }
 0x249   : > { %v1713_v59 = vadd.f32 %v1705_v54, %v1685_v14  ;;  %v843_v57 = vadd.f32 %v835_v61, %v814_v5  ;;  %v1761_v21 = vmul.f32 %v4298_v40, %v3315_v18  ;;  %v1873_v4 = vmul.f32 %v4231_v10, %v3283_v30  ;;  %v3575_v5 = vld [vmem:[#allocation2 + $0xaf] sm:$0xff] }
 0x24a   : > { %v956_v55 = vadd.f32 %v948_v35, %v928_v31  ;;  %v891_v24 = vmul.f32 %v2681_v22, %v879_v19  ;;  %v1004_v60 = vmul.f32 %v2701_v53, %v3555_v17  ;;  %v1351_v32 = vadd.f32 %v3427_v62, %v1323_v38  ;;  %v4306_v31 = vld [vmem:[#allocation19_spill] sm:$0xff] }
 0x24b   : > { %v1741_v11 = vadd.f32 %v1733_v1, %v1713_v59  ;;  %v871_v43 = vadd.f32 %v863_v51, %v843_v57  ;;  %v1789_v13 = vmul.f32 %v4301_v39, %v3323_v36  ;;  %v919_v26 = vmul.f32 %v2686_v28, %v907_v20  ;;  %v4307_v51 = vld [vmem:[#allocation13_spill] sm:$0xff]  ;;  %v4309_v20 = vld [vmem:[#allocation14_spill] sm:$0xff] }
 0x24c   : > { %v984_v33 = vadd.f32 %v976_v52, %v956_v55  ;;  %v1033_v54 = vmul.f32 %v4305_v25, %v3557_v50  ;;  %v1881_v22 = vadd.f32 %v1873_v4, %v1853_v29  ;;  %v1463_v19 = vadd.f32 %v3466_v48, %v1435_v12  ;;  %v4308_v29 = vld [vmem:[#allocation83_spill] sm:$0xff] }
 0x24d   : > { %v1769_v30 = vadd.f32 %v1761_v21, %v1741_v11  ;;  %v899_v61 = vadd.f32 %v891_v24, %v871_v43  ;;  %v1818_v62 = vmul.f32 %v4215_v41, %v4306_v31  ;;  %v1901_v35 = vmul.f32 %v4236_v27, %v3296_v8  ;;  %v3593_v55 = vld [vmem:[#allocation2 + $0xb0] sm:$0xff]  ;;  %v4310_v24 = vld [vmem:[#allocation44_spill] sm:$0xff] }
 0x24e   : > { %v1012_v14 = vadd.f32 %v1004_v60, %v984_v33  ;;  %v947_v28 = vmul.f32 %v2691_v34, %v3222_v47  ;;  %v1061_v52 = vmul.f32 %v4307_v51, %v3573_v46  ;;  %v1379_v59 = vadd.f32 %v3435_v7, %v1351_v32  ;;  %v3595_v4 = vld [vmem:[#allocation2 + $0xb1] sm:$0xff]  ;;  %v4312_v33 = vld [vmem:[#allocation50_spill] sm:$0xff] }
 0x24f   : > { %v1797_v37 = vadd.f32 %v1789_v13, %v1769_v30  ;;  %v927_v38 = vadd.f32 %v919_v26, %v899_v61  ;;  %v1846_v48 = vmul.f32 %v4218_v49, %v4308_v29  ;;  %v975_v57 = vmul.f32 %v2696_v45, %v3224_v6  ;;  %v4311_v7 = vld [vmem:[#allocation84_spill] sm:$0xff]  ;;  %v4313_v45 = vld [vmem:[#allocation45_spill] sm:$0xff] }
 0x250   : > { %v1041_v1 = vadd.f32 %v1033_v54, %v1012_v14  ;;  %v1089_v8 = vmul.f32 %v4309_v20, %v3575_v5  ;;  %v1909_v47 = vadd.f32 %v1901_v35, %v1881_v22  ;;  %v1491_v11 = vadd.f32 %v4310_v24, %v1463_v19  ;;  %v4314_v54 = vld [vmem:[#allocation15_spill] sm:$0xff]  ;;  %v4316_v14 = vld [vmem:[#allocation85_spill] sm:$0xff] }
 0x251   : > { %v1826_v34 = vadd.f32 %v1818_v62, %v1797_v37  ;;  %v955_v12 = vadd.f32 %v947_v28, %v927_v38  ;;  %v1874_v43 = vmul.f32 %v4231_v10, %v4311_v7  ;;  %v1929_v60 = vmul.f32 %v4312_v33, %v3304_v2  ;;  %v4315_v22 = vld [vmem:[#allocation71_spill] sm:$0xff]  ;;  %v4317_v62 = vld [vmem:[#allocation16_spill] sm:$0xff] }
 0x252   : > { %v1069_v21 = vadd.f32 %v1061_v52, %v1041_v1  ;;  %v1003_v6 = vmul.f32 %v2701_v53, %v4313_v45  ;;  %v1117_v30 = vmul.f32 %v4314_v54, %v3593_v55  ;;  %v1407_v61 = vadd.f32 %v4315_v22, %v1379_v59  ;;  %v3613_v35 = vld [vmem:[#allocation2 + $0xb2] sm:$0xff]  ;;  %v4318_v52 = vld [vmem:[#allocation77_spill] sm:$0xff]  ;;  %v4319_v59 = vld [vmem:[#allocation86_spill] sm:$0xff] }
 0x253   : > { %v1854_v32 = vadd.f32 %v1846_v48, %v1826_v34  ;;  %v983_v13 = vadd.f32 %v975_v57, %v955_v12  ;;  %v1902_v19 = vmul.f32 %v4236_v27, %v4316_v14  ;;  %v1032_v31 = vmul.f32 %v4305_v25, %v3500_v56  ;;  %v3615_v1 = vld [vmem:[#allocation2 + $0xb3] sm:$0xff]  ;;  %v4324_v45 = vld [vmem:[#allocation18_spill] sm:$0xff] }
 0x254   : > { %v1097_v26 = vadd.f32 %v1089_v8, %v1069_v21  ;;  %v1145_v2 = vmul.f32 %v4317_v62, %v3595_v4  ;;  %v1937_v28 = vadd.f32 %v1929_v60, %v1909_v47  ;;  %v1519_v29 = vadd.f32 %v4318_v52, %v1491_v11  ;;  %v4320_v57 = vld [vmem:[#allocation52_spill] sm:$0xff]  ;;  %v4321_v47 = vld [vmem:[#allocation17_spill] sm:$0xff]  ;;  %v4322_v24 = vld [vmem:[#allocation39_spill] sm:$0xff] }
 0x255   : > { %v1882_v53 = vadd.f32 %v1874_v43, %v1854_v32  ;;  %v1011_v37 = vadd.f32 %v1003_v6, %v983_v13  ;;  %v1930_v48 = vmul.f32 %v4312_v33, %v4319_v59  ;;  %v1957_v8 = vmul.f32 %v4320_v57, %v3315_v18  ;;  %v4323_v43 = vld [vmem:[#allocation87_spill] sm:$0xff]  ;;  %v3633_v6 = vld [vmem:[#allocation2 + $0xc5] sm:$0xff]  ;;  %v4330_v52 = vld [vmem:[#allocation40_spill] sm:$0xff] }
 0x256   : > { %v1125_v38 = vadd.f32 %v1117_v30, %v1097_v26  ;;  %v1060_v56 = vmul.f32 %v4307_v51, %v3509_v3  ;;  %v1173_v21 = vmul.f32 %v4321_v47, %v3613_v35  ;;  %v1436_v7 = vadd.f32 %v4322_v24, %v1407_v61  ;;  %v3635_v26 = vld [vmem:[#allocation2 + $0xc6] sm:$0xff]  ;;  %v4325_v30 = vld [vmem:[#allocation59_spill] sm:$0xff]  ;;  %v4333_v24 = vld [vmem:[#allocation32_spill] sm:$0xff] }
 0x257   : > { %v1910_v25 = vadd.f32 %v1902_v19, %v1882_v53  ;;  %v1040_v34 = vadd.f32 %v1032_v31, %v1011_v37  ;;  %v1958_v11 = vmul.f32 %v4320_v57, %v4323_v43  ;;  %v1088_v60 = vmul.f32 %v4309_v20, %v3518_v63  ;;  %v4326_v22 = vld [vmem:[#allocation31_spill] sm:$0xff]  ;;  %v4328_v31 = vld [vmem:[#allocation88_spill] sm:$0xff] }
 0x258   : > { %v1153_v12 = vadd.f32 %v1145_v2, %v1125_v38  ;;  %v1201_v18 = vmul.f32 %v4324_v45, %v3615_v1  ;;  %v1965_v51 = vadd.f32 %v1957_v8, %v1937_v28  ;;  %v1539_v61 = vmul.f32 %v4326_v22, %v4325_v30  ;;  %v4327_v14 = vld [vmem:[#allocation55_spill] sm:$0xff]  ;;  %v4329_v28 = vld [vmem:[#allocation20_spill] sm:$0xff] }
 0x259   : > { %v1938_v3 = vadd.f32 %v1930_v48, %v1910_v25  ;;  %v1068_v32 = vadd.f32 %v1060_v56, %v1040_v34  ;;  %v1985_v19 = vmul.f32 %v4327_v14, %v3323_v36  ;;  %v1986_v63 = vmul.f32 %v4327_v14, %v4328_v31  ;;  %v4331_v36 = vld [vmem:[#allocation21_spill] sm:$0xff]  ;;  %v3665_v30 = vld [vmem:[#allocation2 + $0x110] sm:$0xff] }
 0x25a   : > { %v1181_v13 = vadd.f32 %v1173_v21, %v1153_v12  ;;  %v1116_v20 = vmul.f32 %v4314_v54, %v3522_v23  ;;  %v1229_v38 = vmul.f32 %v4329_v28, %v3633_v6  ;;  %v1464_v59 = vadd.f32 %v4330_v52, %v1436_v7  ;;  %v3652_v25 = vld [vmem:[#allocation2 + $0xc7] sm:$0xff]  ;;  %v4332_v21 = vld [vmem:[#allocation63_spill] sm:$0xff]  ;;  %v3726_v33 = vld [vmem:[#allocation2 + $0xdf] sm:$0xff] }
 0x25b   : > { %v1966_v2 = vadd.f32 %v1958_v11, %v1938_v3  ;;  %v1096_v53 = vadd.f32 %v1088_v60, %v1068_v32  ;;  %v1547_v48 = vadd.f32 %v1539_v61, %v1519_v29  ;;  %v1144_v8 = vmul.f32 %v4317_v62, %v3537_v16  ;;  %v3658_v7 = vld [vmem:[#allocation2 + $0xc8] sm:$0xff]  ;;  %v4335_v3 = vld [vmem:[#allocation41_spill] sm:$0xff] }
 0x25c   : > { %v1209_v37 = vadd.f32 %v1201_v18, %v1181_v13  ;;  %v1257_v56 = vmul.f32 %v4331_v36, %v3635_v26  ;;  %v1993_v34 = vadd.f32 %v1985_v19, %v1965_v51  ;;  %v1567_v43 = vmul.f32 %v4333_v24, %v4332_v21  ;;  %v4334_v62 = vld [vmem:[#allocation22_spill] sm:$0xff]  ;;  %v4336_v19 = vld [vmem:[#allocation23_spill] sm:$0xff] }
 0x25d   : > { %v1994_v12 = vadd.f32 %v1986_v63, %v1966_v2  ;;  %v1124_v23 = vadd.f32 %v1116_v20, %v1096_v53  ;;  %v1172_v11 = vmul.f32 %v4321_v47, %v3539_v0  ;;  %v1285_v18 = vmul.f32 %v4334_v62, %v3652_v25  ;;  %v3663_v13 = vld [vmem:[#allocation2 + $0xc9] sm:$0xff]  ;;  %v3674_v20 = vld [vmem:[#allocation2 + $0x111] sm:$0xff] }
 0x25e   : > { %v1237_v54 = vadd.f32 %v1229_v38, %v1209_v37  ;;  %v1492_v32 = vadd.f32 %v4335_v3, %v1464_v59  ;;  %v1575_v51 = vadd.f32 %v1567_v43, %v1547_v48  ;;  %v1200_v0 = vmul.f32 %v4324_v45, %v3555_v17  ;;  %v3672_v63 = vld [vmem:[#allocation2 + $0xca] sm:$0xff]  ;;  %v3676_v2 = vld [vmem:[#allocation2 + $0x112] sm:$0xff] }
 0x25f   : > { %v2000_v29 = vpack.c.bf16 %v1994_v12, %v1993_v34  ;;  %v1152_v60 = vadd.f32 %v1144_v8, %v1124_v23  ;;  %v1313_v31 = vmul.f32 %v4336_v19, %v3658_v7  ;;  %v4337_v53 = vld [vmem:[#allocation67_spill] sm:$0xff]  ;;  %v1228_v38 = vmul.f32 %v4329_v28, %v3557_v50  ;;  %v4338_v48 = vld [vmem:[#allocation24_spill] sm:$0xff]  ;;  %v4339_v23 = vld [vmem:[#allocation30_spill] sm:$0xff] }
 0x260   : > { %v1265_v16 = vadd.f32 %v1257_v56, %v1237_v54  ;;  %v1595_v37 = vmul.f32 %v4273_v42, %v4337_v53  ;;  %v1256_v52 = vmul.f32 %v4331_v36, %v3573_v46  ;;  %v3684_v17 = vld [vmem:[#allocation2 + $0x10d] sm:$0xff]  ;;  %v1341_v8 = vmul.f32 %v4338_v48, %v3663_v13  ;;  %v4340_v50 = vld [vmem:[#allocation25_spill] sm:$0xff] }
 0x261   : > { %2433 = vmatmul.mubr.msk.bf16.vlgmr.msra.gmra.mrb[8].mxu0 %vm493_vm1, %v2000_v29  ;;  %v1180_v61 = vadd.f32 %v1172_v11, %v1152_v60  ;;  %v3688_v56 = vld [vmem:[#allocation2 + $0xcb] sm:$0xff]  ;;  %v3692_v12 = vld [vmem:[#allocation2 + $0x113] sm:$0xff]  ;;  %v1512_v54 = vmul.f32 %v3665_v30, %v4339_v23  ;;  %v1369_v28 = vmul.f32 %v4340_v50, %v3672_v63  ;;  %v1540_v46 = vmul.f32 %v3674_v20, %v4326_v22  ;;  %v3702_v29 = vld [vmem:[#allocation2 + $0xdd] sm:$0xff] }
 0x262   : > { %v1293_v47 = vadd.f32 %v1285_v18, %v1265_v16  ;;  %v3690_v34 = vld [vmem:[#allocation2 + $0x10e] sm:$0xff]  ;;  %v1568_v36 = vmul.f32 %v3676_v2, %v4333_v24  ;;  %v1603_v21 = vadd.f32 %v1595_v37, %v1575_v51  ;;  %v1284_v3 = vmul.f32 %v4334_v62, %v3575_v5 }
 0x263   : > { %v1208_v45 = vadd.f32 %v1200_v0, %v1180_v61  ;;  %v1520_v60 = vadd.f32 %v1512_v54, %v1492_v32  ;;  %v4341_v16 = vld [vmem:[#allocation34_spill] sm:$0xff]  ;;  %v1652_v51 = vmul.f32 %v3690_v34, %v4282_v9  ;;  %v3716_v32 = vld [vmem:[#allocation2 + $0xde] sm:$0xff]  ;;  %v1312_v5 = vmul.f32 %v4336_v19, %v3593_v55  ;;  %v4343_v62 = vld [vmem:[#allocation27_spill] sm:$0xff] }
 0x264   : > { %v1321_v59 = vadd.f32 %v1313_v31, %v1293_v47  ;;  %v1624_v18 = vmul.f32 %v3684_v17, %v4341_v16  ;;  %v4342_v61 = vld [vmem:[#allocation26_spill] sm:$0xff]  ;;  %v1596_v47 = vmul.f32 %v3692_v12, %v4273_v42 }
 0x265   : > { %v1236_v43 = vadd.f32 %v1228_v38, %v1208_v45  ;;  %v1397_v0 = vmul.f32 %v4342_v61, %v3688_v56  ;;  %v3712_v31 = vld [vmem:[#allocation2 + $0x125] sm:$0xff]  ;;  %v3718_v38 = vld [vmem:[#allocation2 + $0x10f] sm:$0xff]  ;;  %v1548_v45 = vadd.f32 %v1540_v46, %v1520_v60  ;;  %v1340_v46 = vmul.f32 %v4338_v48, %v3595_v4 }
 0x266   : > { %v1349_v11 = vadd.f32 %v1341_v8, %v1321_v59  ;;  %v1632_v59 = vadd.f32 %v1624_v18, %v1603_v21  ;;  %v1426_v8 = vmul.f32 %v4343_v62, %v3702_v29  ;;  %v3724_v54 = vld [vmem:[#allocation2 + $0x126] sm:$0xff]  ;;  %v4344_v21 = vld [vmem:[#allocation28_spill] sm:$0xff]  ;;  %v1368_v4 = vmul.f32 %v4340_v50, %v3613_v35 }
 0x267   : > { %v1264_v53 = vadd.f32 %v1256_v52, %v1236_v43  ;;  %v1576_v52 = vadd.f32 %v1568_v36, %v1548_v45  ;;  %v1454_v43 = vmul.f32 %v4344_v21, %v3716_v32  ;;  %v3734_v19 = vld [vmem:[#allocation2 + $0x127] sm:$0xff]  ;;  %v1708_v50 = vmul.f32 %v3665_v30, %v4291_v58 }
 0x268   : > { %v1377_v37 = vadd.f32 %v1369_v28, %v1349_v11  ;;  %v1625_v28 = vmul.f32 %v4341_v16, %v3712_v31  ;;  %v1660_v55 = vadd.f32 %v1652_v51, %v1632_v59  ;;  %v1680_v11 = vmul.f32 %v3718_v38, %v4287_v44  ;;  %v4345_v48 = vld [vmem:[#allocation29_spill] sm:$0xff]  ;;  %v3746_v51 = vld [vmem:[#allocation2 + $0x128] sm:$0xff] }
 0x269   : > { %v1292_v14 = vadd.f32 %v1284_v3, %v1264_v53  ;;  %v3738_v3 = vld [vmem:[#allocation2 + $0xe0] sm:$0xff]  ;;  %v1604_v36 = vadd.f32 %v1596_v47, %v1576_v52  ;;  %v1482_v53 = vmul.f32 %v4345_v48, %v3726_v33  ;;  %v1396_v47 = vmul.f32 %v4342_v61, %v3615_v1 }
 0x26a   : > { %v1405_v57 = vadd.f32 %v1397_v0, %v1377_v37  ;;  %v1653_v0 = vmul.f32 %v4282_v9, %v3724_v54  ;;  %v3748_v59 = vld [vmem:[#allocation2 + $0xe1] sm:$0xff]  ;;  %v1688_v35 = vadd.f32 %v1680_v11, %v1660_v55 }
 0x26b   : > { %v1320_v60 = vadd.f32 %v1312_v5, %v1292_v14  ;;  %v1633_v14 = vadd.f32 %v1625_v28, %v1604_v36  ;;  %v1510_v5 = vmul.f32 %v4339_v23, %v3738_v3  ;;  %v1709_v28 = vmul.f32 %v4291_v58, %v3746_v51  ;;  %v3766_v61 = vld [vmem:[#allocation2 + $0xe2] sm:$0xff] }
 0x26c   : > { %v1434_v18 = vadd.f32 %v1426_v8, %v1405_v57  ;;  %v1681_v57 = vmul.f32 %v4287_v44, %v3734_v19  ;;  %v3758_v8 = vld [vmem:[#allocation2 + $0x129] sm:$0xff]  ;;  %v1538_v1 = vmul.f32 %v4326_v22, %v3748_v59 }
 0x26d   : > { %v1348_v37 = vadd.f32 %v1340_v46, %v1320_v60  ;;  %v1425_v60 = vmul.f32 %v4343_v62, %v3633_v6  ;;  %v1737_v36 = vmul.f32 %v4295_v15, %v3758_v8  ;;  %v1736_v6 = vmul.f32 %v3674_v20, %v4295_v15 }
 0x26e   : > { %v1462_v45 = vadd.f32 %v1454_v43, %v1434_v18  ;;  %v1661_v43 = vadd.f32 %v1653_v0, %v1633_v14  ;;  %v1453_v0 = vmul.f32 %v4344_v21, %v3635_v26  ;;  %v1566_v14 = vmul.f32 %v4333_v24, %v3766_v61 }
 0x26f   : > { %v1376_v52 = vadd.f32 %v1368_v4, %v1348_v37  ;;  %v3770_v4 = vld [vmem:[#allocation2 + $0x12a] sm:$0xff]  ;;  %v1716_v37 = vadd.f32 %v1708_v50, %v1688_v35 }
 0x270   : > { %v1490_v46 = vadd.f32 %v1482_v53, %v1462_v45  ;;  %v1689_v18 = vadd.f32 %v1681_v57, %v1661_v43  ;;  %v3774_v53 = vld [vmem:[#allocation2 + $0xe3] sm:$0xff]  ;;  %v3786_v50 = vld [vmem:[#allocation2 + $0x12b] sm:$0xff]  ;;  %v1764_v43 = vmul.f32 %v3676_v2, %v4298_v40 }
 0x271   : > { %v1404_v55 = vadd.f32 %v1396_v47, %v1376_v52  ;;  %v1481_v47 = vmul.f32 %v4345_v48, %v3652_v25  ;;  %v1594_v21 = vmul.f32 %v4273_v42, %v3774_v53  ;;  %v1509_v25 = vmul.f32 %v4339_v23, %v3658_v7 }
 0x272   : > { %v1518_v11 = vadd.f32 %v1510_v5, %v1490_v46  ;;  %v1717_v57 = vadd.f32 %v1709_v28, %v1689_v18  ;;  %v1765_v5 = vmul.f32 %v4298_v40, %v3770_v4  ;;  %v1744_v46 = vadd.f32 %v1736_v6, %v1716_v37  ;;  %v2485_v6 = vld [vmem:[#allocation2 + $0xf6] sm:$0xff] }
 0x273   : > { %v1433_v62 = vadd.f32 %v1425_v60, %v1404_v55  ;;  %v2484_v60 = vld [vmem:[#allocation2 + $0xf5] sm:$0xff]  ;;  %v1793_v18 = vmul.f32 %v4301_v39, %v3786_v50  ;;  %v1792_v7 = vmul.f32 %v3692_v12, %v4301_v39 }
 0x274   : > { %v1546_v45 = vadd.f32 %v1538_v1, %v1518_v11  ;;  %v1745_v35 = vadd.f32 %v1737_v36, %v1717_v57  ;;  %v1623_v28 = vmul.f32 %v2484_v60, %v4341_v16  ;;  %v3793_v55 = vld [vmem:[#allocation2 + $0xf7] sm:$0xff]  ;;  %v1772_v57 = vadd.f32 %v1764_v43, %v1744_v46 }
 0x275   : > { %v1461_v52 = vadd.f32 %v1453_v0, %v1433_v62  ;;  %v1537_v0 = vmul.f32 %v4326_v22, %v3663_v13  ;;  %v1651_v62 = vmul.f32 %v2485_v6, %v4282_v9  ;;  %v3808_v22 = vld [vmem:[#allocation2 + $0xf9] sm:$0xff] }
 0x276   : > { %v1574_v26 = vadd.f32 %v1566_v14, %v1546_v45  ;;  %v1773_v11 = vadd.f32 %v1765_v5, %v1745_v35  ;;  %v1810_v45 = vld [vmem:[#allocation2 + $0x13d] sm:$0xff]  ;;  %v1593_v35 = vmul.f32 %v4273_v42, %v3688_v56 }
 0x277   : > { %v1489_v1 = vadd.f32 %v1481_v47, %v1461_v52  ;;  %v3800_v14 = vld [vmem:[#allocation2 + $0xf8] sm:$0xff]  ;;  %v1565_v47 = vmul.f32 %v4333_v24, %v3672_v63  ;;  %v1679_v52 = vmul.f32 %v4287_v44, %v3793_v55  ;;  %v1800_v24 = vadd.f32 %v1792_v7, %v1772_v57 }
 0x278   : > { %v1602_v48 = vadd.f32 %v1594_v21, %v1574_v26  ;;  %v1801_v13 = vadd.f32 %v1793_v18, %v1773_v11  ;;  %v1822_v26 = vmul.f32 %v4215_v41, %v1810_v45  ;;  %v1707_v43 = vmul.f32 %v4291_v58, %v3800_v14  ;;  %v1838_v60 = vld [vmem:[#allocation2 + $0x13e] sm:$0xff] }
 0x279   : > { %v1517_v36 = vadd.f32 %v1509_v25, %v1489_v1  ;;  %v1821_v63 = vmul.f32 %v4215_v41, %v3712_v31  ;;  %v1622_v25 = vmul.f32 %v4341_v16, %v3702_v29  ;;  %v1735_v11 = vmul.f32 %v4295_v15, %v3808_v22  ;;  %v3823_v42 = vld [vmem:[#allocation2 + $0xfb] sm:$0xff] }
 0x27a   : > { %v1631_v37 = vadd.f32 %v1623_v28, %v1602_v48  ;;  %v3815_v28 = vld [vmem:[#allocation2 + $0xfa] sm:$0xff]  ;;  %v1830_v56 = vadd.f32 %v1822_v26, %v1801_v13  ;;  %v1850_v18 = vmul.f32 %v4218_v49, %v1838_v60  ;;  %v1678_v29 = vmul.f32 %v4287_v44, %v3726_v33 }
 0x27b   : > { %v1545_v23 = vadd.f32 %v1537_v0, %v1517_v36  ;;  %v1650_v0 = vmul.f32 %v4282_v9, %v3716_v32  ;;  %v1763_v31 = vmul.f32 %v4298_v40, %v3815_v28  ;;  %v1866_v6 = vld [vmem:[#allocation2 + $0x13f] sm:$0xff]  ;;  %v1829_v16 = vadd.f32 %v1821_v63, %v1800_v24  ;;  %v1807_v24 = vld [vmem:[#allocation2 + $0xf5] sm:$0xff] }
 0x27c   : > { %v1659_v5 = vadd.f32 %v1651_v62, %v1631_v37  ;;  %v1849_v62 = vmul.f32 %v4218_v49, %v3724_v54  ;;  %v1791_v7 = vmul.f32 %v4301_v39, %v3823_v42  ;;  %v1820_v9 = vmul.f32 %v4215_v41, %v3684_v17  ;;  %v1894_v54 = vld [vmem:[#allocation2 + $0x140] sm:$0xff] }
 0x27d   : > { %v1573_v21 = vadd.f32 %v1565_v47, %v1545_v23  ;;  %v1858_v32 = vadd.f32 %v1850_v18, %v1830_v56  ;;  %v1878_v23 = vmul.f32 %v4231_v10, %v1866_v6  ;;  %v1848_v33 = vmul.f32 %v4218_v49, %v3690_v34  ;;  %v1922_v60 = vld [vmem:[#allocation2 + $0x141] sm:$0xff] }
 0x27e   : > { %v1687_v46 = vadd.f32 %v1679_v52, %v1659_v5  ;;  %v1706_v5 = vmul.f32 %v4291_v58, %v3738_v3  ;;  %v1857_v52 = vadd.f32 %v1849_v62, %v1829_v16  ;;  %v1877_v13 = vmul.f32 %v4231_v10, %v3734_v19  ;;  %v1950_v18 = vld [vmem:[#allocation2 + $0x142] sm:$0xff] }
 0x27f   : > { %v1601_v1 = vadd.f32 %v1593_v35, %v1573_v21  ;;  %v1734_v17 = vmul.f32 %v4295_v15, %v3748_v59  ;;  %v1876_v35 = vmul.f32 %v4231_v10, %v3718_v38  ;;  %v1906_v58 = vmul.f32 %v4236_v27, %v1894_v54 }
 0x280   : > { %v1715_v48 = vadd.f32 %v1707_v43, %v1687_v46  ;;  %v1886_v46 = vadd.f32 %v1878_v23, %v1858_v32  ;;  %v1762_v34 = vmul.f32 %v4298_v40, %v3766_v61  ;;  %v1885_v63 = vadd.f32 %v1877_v13, %v1857_v52 }
 0x281   : > { %v1630_v36 = vadd.f32 %v1622_v25, %v1601_v1  ;;  %v1905_v19 = vmul.f32 %v4236_v27, %v3746_v51  ;;  %v1790_v15 = vmul.f32 %v4301_v39, %v3774_v53  ;;  %v1904_v38 = vmul.f32 %v4236_v27, %v3665_v30  ;;  %v1835_v25 = vld [vmem:[#allocation2 + $0xf6] sm:$0xff] }
 0x282   : > { %v1743_v37 = vadd.f32 %v1735_v11, %v1715_v48  ;;  %v1914_v48 = vadd.f32 %v1906_v58, %v1886_v46  ;;  %v4346_v11 = vld [vmem:[#allocation50_spill] sm:$0xff]  ;;  %v1819_v61 = vmul.f32 %v4215_v41, %v1807_v24  ;;  %v1875_v16 = vmul.f32 %v4231_v10, %v3793_v55 }
 0x283   : > { %v1658_v45 = vadd.f32 %v1650_v0, %v1630_v36  ;;  %v1934_v56 = vmul.f32 %v4346_v11, %v1922_v60  ;;  %v1913_v36 = vadd.f32 %v1905_v19, %v1885_v63  ;;  %v1933_v51 = vmul.f32 %v4346_v11, %v3758_v8  ;;  %v1978_v41 = vld [vmem:[#allocation2 + $0x143] sm:$0xff] }
 0x284   : > { %v1771_v57 = vadd.f32 %v1763_v31, %v1743_v37  ;;  %v1847_v37 = vmul.f32 %v4218_v49, %v1835_v25  ;;  %v1932_v53 = vmul.f32 %v4346_v11, %v3674_v20  ;;  %v4347_v31 = vld [vmem:[#allocation52_spill] sm:$0xff]  ;;  %v1903_v49 = vmul.f32 %v4236_v27, %v3800_v14 }
 0x285   : > { %v1686_v47 = vadd.f32 %v1678_v29, %v1658_v45  ;;  %v1942_v30 = vadd.f32 %v1934_v56, %v1914_v48  ;;  %v1962_v6 = vmul.f32 %v4347_v31, %v1950_v18  ;;  %v1941_v62 = vadd.f32 %v1933_v51, %v1913_v36 }
 0x286   : > { %v1799_v44 = vadd.f32 %v1791_v7, %v1771_v57  ;;  %v1961_v45 = vmul.f32 %v4347_v31, %v3770_v4  ;;  %v1960_v20 = vmul.f32 %v4347_v31, %v3676_v2  ;;  %v1931_v10 = vmul.f32 %v4346_v11, %v3808_v22 }
 0x287   : > { %v1714_v26 = vadd.f32 %v1706_v5, %v1686_v47  ;;  %v1970_v7 = vadd.f32 %v1962_v6, %v1942_v30  ;;  %v1959_v5 = vmul.f32 %v4347_v31, %v3815_v28  ;;  %v2365_v28 = vld [vmem:[%s3926_s7] ss:$0 sm:$0xff] }
 0x288   : > { %v1828_v21 = vadd.f32 %v1820_v9, %v1799_v44  ;;  %v4348_v9 = vld [vmem:[#allocation55_spill] sm:$0xff]  ;;  %v1969_v55 = vadd.f32 %v1961_v45, %v1941_v62 }
 0x289   : > { %v1742_v3 = vadd.f32 %v1734_v17, %v1714_v26  ;;  %v1990_v32 = vmul.f32 %v4348_v9, %v1978_v41  ;;  %v1989_v47 = vmul.f32 %v4348_v9, %v3786_v50  ;;  %v1988_v14 = vmul.f32 %v4348_v9, %v3692_v12  ;;  %v2466_v50 = vld [vmem:[%s3927_s8] sm:$0xff]   ;;  %v2467_v12 = vld [vmem:[%s3927_s8 + $0x8] sm:$0xff]  }
 0x28a   : > { %v1856_v43 = vadd.f32 %v1848_v33, %v1828_v21  ;;  %v1987_v33 = vmul.f32 %v4348_v9, %v3823_v42  ;;  %2440 = vmatprep.subr.bf16.mxu1 %v2466_v50 }
 0x28b   : > { %v1770_v1 = vadd.f32 %v1762_v34, %v1742_v3  ;;  %v1998_v2 = vadd.f32 %v1990_v32, %v1970_v7  ;;  %v1997_v54 = vadd.f32 %v1989_v47, %v1969_v55  ;;  %2441 = vmatpush3.bf16.msra.mxu1 %v2466_v50 }
 0x28c   : > { %v1884_v59 = vadd.f32 %v1876_v35, %v1856_v43  ;;  %2442 = vmatprep.subr.bf16.mxu1 %v2467_v12 }
 0x28d   : > { %v1798_v40 = vadd.f32 %v1790_v15, %v1770_v1  ;;  %v2002_v13 = vpack.c.bf16 %v1998_v2, %v1997_v54 }
 0x28e   : > { %v1912_v39 = vadd.f32 %v1904_v38, %v1884_v59 }
 0x28f   : > { %v1827_v0 = vadd.f32 %v1819_v61, %v1798_v40  ;;  %2443 = vmatpush3.bf16.msra.mxu1 %v2467_v12 }
 0x290   : > { %v1940_v57 = vadd.f32 %v1932_v53, %v1912_v39 }
 0x291   : > { %v1855_v29 = vadd.f32 %v1847_v37, %v1827_v0 }
 0x292   : > { %v1968_v27 = vadd.f32 %v1960_v20, %v1940_v57 }
 0x293   : > { %v1883_v8 = vadd.f32 %v1875_v16, %v1855_v29 }
 0x294   : > { %v1996_v22 = vadd.f32 %v1988_v14, %v1968_v27 }
 0x295   : > { %v1911_v23 = vadd.f32 %v1903_v49, %v1883_v8 }
 0x297   : > { %v1939_v4 = vadd.f32 %v1931_v10, %v1911_v23 }
 0x299   : > { %v1967_v44 = vadd.f32 %v1959_v5, %v1939_v4 }
 0x29b   : > { %v1995_v52 = vadd.f32 %v1987_v33, %v1967_v44 }
 0x29d   : > { %v2001_v26 = vpack.c.bf16 %v1996_v22, %v1995_v52 }
 0x29f   : > { %2436 = vmatprep.mubr.msk.bf16.mxu0 %vm493_vm1, %v2001_v26 }
 0x2a0   : > { %2437 = vmatmul.mubr.msk.bf16.gmra.mrb[12].mxu0 %vm493_vm1, %v2002_v13 }
 0x334   : > { %v2434_v42 = vpop.f32.mrb[8].mxu0 }
 0x335   : > { %v2081_v17 = vadd.f32 %v2434_v42, %v2365_v28  ;;  %v2072_v21 = vpop.f32.mrb[9].mxu0 }
 0x336   : > { %v2073_v35 = vadd.f32 %v2365_v28, %v2072_v21  ;;  %v2435_v46 = vpop.f32.mrb[10].mxu0 }
 0x337   : > { %v2113_v58 = vmul.f32 0.044715, %v2081_v17  ;;  %v2084_v3 = vadd.f32 %v2435_v46, %v2365_v28  ;;  %v2075_v34 = vpop.f32.mrb[11].mxu0  ;;  %v2105_v16 = vmul.f32 0.5, %v2081_v17 }
 0x338   : > { %v2111_v43 = vmul.f32 0.044715, %v2073_v35  ;;  %v2076_v60 = vadd.f32 %v2365_v28, %v2075_v34  ;;  %v2103_v45 = vmul.f32 0.5, %v2073_v35 }
 0x339   : > { %v2121_v24 = vmul.f32 %v2113_v58, %v2081_v17  ;;  %v2114_v63 = vmul.f32 0.044715, %v2084_v3  ;;  %v2106_v41 = vmul.f32 0.5, %v2084_v3 }
 0x33a   : > { %v2119_v19 = vmul.f32 %v2111_v43, %v2073_v35  ;;  %v2112_v1 = vmul.f32 0.044715, %v2076_v60  ;;  %v2104_v8 = vmul.f32 0.5, %v2076_v60 }
 0x33b   : > { %v2129_v15 = vmul.f32 %v2121_v24, %v2081_v17  ;;  %v2122_v59 = vmul.f32 %v2114_v63, %v2084_v3 }
 0x33c   : > { %v2127_v38 = vmul.f32 %v2119_v19, %v2073_v35  ;;  %v2120_v25 = vmul.f32 %v2112_v1, %v2076_v60 }
 0x33d   : > { %v2137_v48 = vadd.f32 %v2129_v15, %v2081_v17  ;;  %v2130_v11 = vmul.f32 %v2122_v59, %v2084_v3 }
 0x33e   : > { %v2135_v56 = vadd.f32 %v2127_v38, %v2073_v35  ;;  %v2128_v40 = vmul.f32 %v2120_v25, %v2076_v60 }
 0x33f   : > { %v2145_v61 = vmul.f32 0.7978846, %v2137_v48  ;;  %v2138_v18 = vadd.f32 %v2130_v11, %v2084_v3 }
 0x340   : > { %v2143_v36 = vmul.f32 0.7978846, %v2135_v56  ;;  %v2136_v51 = vadd.f32 %v2128_v40, %v2076_v60 }
 0x341   : > { %2468 = vtanh.f32 %v2145_v61  ;;  %v2146_v0 = vmul.f32 0.7978846, %v2138_v18 }
 0x342   : > { %2470 = vtanh.f32 %v2143_v36  ;;  %v2144_v37 = vmul.f32 0.7978846, %v2136_v51 }
 0x343   : > { %2472 = vtanh.f32 %v2146_v0 }
 0x344   : > { %2474 = vtanh.f32 %v2144_v37 }
 0x34b   : > { %v2469_v39 = vpop.eup %2468 }
 0x34c   : > { %v2471_v53 = vpop.eup %2470  ;;  %v2161_v30 = vadd.f32 1.0, %v2469_v39  ;;  %v2372_v39 = vld [vmem:[%s3928_s9] ss:$0 sm:$0xff] }
 0x34d   : > { %v2473_v31 = vpop.eup %2472  ;;  %v2159_v6 = vadd.f32 1.0, %v2471_v53 }
 0x34e   : > { %v2475_v29 = vpop.eup %2474  ;;  %v2162_v62 = vadd.f32 1.0, %v2473_v31  ;;  %v2169_v57 = vmul.f32 %v2161_v30, %v2105_v16 }
 0x34f   : > { %v2160_v49 = vadd.f32 1.0, %v2475_v29  ;;  %v2167_v7 = vmul.f32 %v2159_v6, %v2103_v45 }
 0x350   : > { %v2170_v20 = vmul.f32 %v2162_v62, %v2106_v41 }
 0x351   : > { %v2168_v9 = vmul.f32 %v2160_v49, %v2104_v8 }
 0x352   : > { %v2176_v32 = vpack.c.bf16 %v2170_v20, %v2169_v57 }
 0x353   : > { %v2175_v23 = vpack.c.bf16 %v2168_v9, %v2167_v7 }
 0x355   : > { %2444 = vmatprep.mubr.msk.bf16.mxu1 %vm493_vm1, %v2175_v23 }
 0x356   : > { %2445 = vmatmul.mubr.msk.bf16.vlgmr.msra.gmra.mrb[8].mxu1 %vm493_vm1, %v2176_v32 }
 0x373   : > { %v2438_v10 = vpop.f32.mrb[12].mxu0 }
 0x374   : > { %v2097_v55 = vadd.f32 %v2438_v10, %v2365_v28  ;;  %v2088_v47 = vpop.f32.mrb[13].mxu0 }
 0x375   : > { %v2089_v4 = vadd.f32 %v2365_v28, %v2088_v47  ;;  %v2439_v5 = vpop.f32.mrb[14].mxu0 }
 0x376   : > { %v2117_v27 = vmul.f32 0.044715, %v2097_v55  ;;  %v2100_v14 = vadd.f32 %v2439_v5, %v2365_v28  ;;  %v2091_v2 = vpop.f32.mrb[15].mxu0  ;;  %v2109_v38 = vmul.f32 0.5, %v2097_v55 }
 0x377   : > { %v2115_v44 = vmul.f32 0.044715, %v2089_v4  ;;  %v2092_v33 = vadd.f32 %v2365_v28, %v2091_v2  ;;  %v2107_v11 = vmul.f32 0.5, %v2089_v4 }
 0x378   : > { %v2125_v54 = vmul.f32 %v2117_v27, %v2097_v55  ;;  %v2118_v52 = vmul.f32 0.044715, %v2100_v14  ;;  %v2110_v25 = vmul.f32 0.5, %v2100_v14 }
 0x379   : > { %v2123_v22 = vmul.f32 %v2115_v44, %v2089_v4  ;;  %v2116_v13 = vmul.f32 0.044715, %v2092_v33  ;;  %v2108_v56 = vmul.f32 0.5, %v2092_v33 }
 0x37a   : > { %v2133_v26 = vmul.f32 %v2125_v54, %v2097_v55  ;;  %v2126_v50 = vmul.f32 %v2118_v52, %v2100_v14 }
 0x37b   : > { %v2131_v12 = vmul.f32 %v2123_v22, %v2089_v4  ;;  %v2124_v42 = vmul.f32 %v2116_v13, %v2092_v33 }
 0x37c   : > { %v2141_v17 = vadd.f32 %v2133_v26, %v2097_v55  ;;  %v2134_v21 = vmul.f32 %v2126_v50, %v2100_v14 }
 0x37d   : > { %v2139_v35 = vadd.f32 %v2131_v12, %v2089_v4  ;;  %v2132_v46 = vmul.f32 %v2124_v42, %v2092_v33 }
 0x37e   : > { %v2149_v58 = vmul.f32 0.7978846, %v2141_v17  ;;  %v2142_v3 = vadd.f32 %v2134_v21, %v2100_v14 }
 0x37f   : > { %v2147_v34 = vmul.f32 0.7978846, %v2139_v35  ;;  %v2140_v43 = vadd.f32 %v2132_v46, %v2092_v33 }
 0x380   : > { %2476 = vtanh.f32 %v2149_v58  ;;  %v2150_v60 = vmul.f32 0.7978846, %v2142_v3 }
 0x381   : > { %2478 = vtanh.f32 %v2147_v34  ;;  %v2148_v28 = vmul.f32 0.7978846, %v2140_v43 }
 0x382   : > { %2480 = vtanh.f32 %v2150_v60 }
 0x383   : > { %2482 = vtanh.f32 %v2148_v28 }
 0x38a   : > { %v2477_v24 = vpop.eup %2476 }
 0x38b   : > { %v2479_v63 = vpop.eup %2478  ;;  %v2165_v19 = vadd.f32 1.0, %v2477_v24 }
 0x38c   : > { %v2481_v1 = vpop.eup %2480  ;;  %v2163_v15 = vadd.f32 1.0, %v2479_v63 }
 0x38d   : > { %v2483_v59 = vpop.eup %2482  ;;  %v2166_v48 = vadd.f32 1.0, %v2481_v1  ;;  %v2173_v61 = vmul.f32 %v2165_v19, %v2109_v38 }
 0x38e   : > { %v2164_v40 = vadd.f32 1.0, %v2483_v59  ;;  %v2171_v36 = vmul.f32 %v2163_v15, %v2107_v11 }
 0x38f   : > { %v2174_v18 = vmul.f32 %v2166_v48, %v2110_v25 }
 0x390   : > { %v2172_v51 = vmul.f32 %v2164_v40, %v2108_v56 }
 0x391   : > { %v2178_v0 = vpack.c.bf16 %v2174_v18, %v2173_v61 }
 0x392   : > { %v2177_v37 = vpack.c.bf16 %v2172_v51, %v2171_v36 }
 0x394   : > { %2448 = vmatprep.mubr.msk.bf16.mxu1 %vm493_vm1, %v2177_v37 }
 0x395   : > { %2449 = vmatmul.mubr.msk.bf16.gmra.mrb[12].mxu1 %vm493_vm1, %v2178_v0 }
 0x429   : > { %v2446_v53 = vpop.f32.mrb[8].mxu1 }
 0x42a   : > { %v2257_v30 = vadd.f32 %v2446_v53, %v2372_v39  ;;  %v2248_v31 = vpop.f32.mrb[9].mxu1 }
 0x42b   : > { %v2249_v6 = vadd.f32 %v2372_v39, %v2248_v31  ;;  %v2447_v29 = vpop.f32.mrb[10].mxu1 }
 0x42c   : > { %2281 = vst.msk [vmem:[%s359_s23 + $0x10] sm:$0xff] %vm388_vm0, %v2257_v30  ;;  %v2260_v16 = vadd.f32 %v2447_v29, %v2372_v39  ;;  %v2251_v41 = vpop.f32.mrb[11].mxu1 }
 0x42d   : > { %2279 = vst.msk [vmem:[%s359_s23] sm:$0xff] %vm388_vm0, %v2249_v6  ;;  %v2252_v62 = vadd.f32 %v2372_v39, %v2251_v41 }
 0x42e   : > { %2282 = vst.msk [vmem:[%s359_s23 + $0x18] sm:$0xff] %vm388_vm0, %v2260_v16 }
 0x42f   : > { %2280 = vst.msk [vmem:[%s359_s23 + $0x8] sm:$0xff] %vm388_vm0, %v2252_v62 }
 0x468   : > { %v2450_v45 = vpop.f32.mrb[12].mxu1 }
 0x469   : > { %v2273_v8 = vadd.f32 %v2450_v45, %v2372_v39  ;;  %v2264_v49 = vpop.f32.mrb[13].mxu1 }
 0x46a   : > { %v2265_v57 = vadd.f32 %v2372_v39, %v2264_v49  ;;  %v2451_v20 = vpop.f32.mrb[14].mxu1 }
 0x46b   : > { %2285 = vst.msk [vmem:[%s359_s23 + $0x30] sm:$0xff] %vm388_vm0, %v2273_v8  ;;  %v2276_v7 = vadd.f32 %v2451_v20, %v2372_v39  ;;  %v2267_v9 = vpop.f32.mrb[15].mxu1 }
 0x46c   : > { %2283 = vst.msk [vmem:[%s359_s23 + $0x20] sm:$0xff] %vm388_vm0, %v2265_v57  ;;  %v2268_v32 = vadd.f32 %v2372_v39, %v2267_v9 }
 0x46d   : > { %2286 = vst.msk [vmem:[%s359_s23 + $0x38] sm:$0xff] %vm388_vm0, %v2276_v7 }
 0x46e   : > { %2284 = vst.msk [vmem:[%s359_s23 + $0x28] sm:$0xff] %vm388_vm0, %v2268_v32 }
 0x46f PF: > { %s20_s13 = sadd.s32 1, %s2492_s13  }
 0x470   : > { %p17_p4 = scmp.ge.s32.totalorder %s20_s13, 4  }
 0x472   :  { %19 = sbr.rel (!%p17_p4) target bundleno = 1 (0x1), region = 97 }

</bundles_post_ra>
